<compile_context>
chip_gen: v7x
topology: tpu7x:2x2x1
jax: 0.10.0
libtpu: 0.0.40
codegen_flags: <defaults>
</compile_context>

<pallas_src>
import functools
import math

import jax
import jax.numpy as jnp
from jax.experimental import pallas as pl
from jax.experimental.pallas import tpu as pltpu

NEG_SLOPE = 0.01                       # nn.LeakyReLU default
_VMEM_LIMIT = 32 * 1024 * 1024         # safe on v5e/v6e/v7x (blocks here are tiny)


def _leaky(x):
    return jnp.where(x >= 0, x, NEG_SLOPE * x)


# ---------------------------------------------------------------------------
# Pallas kernels
# ---------------------------------------------------------------------------
def _linear_kernel(x_ref, w_ref, b_ref, o_ref, *, act):
    y = jnp.dot(x_ref[...], w_ref[...], preferred_element_type=jnp.float32)
    y = y + b_ref[...]
    if act:
        y = _leaky(y)
    o_ref[...] = y.astype(o_ref.dtype)


def _conv_kernel(x_ref, w_ref, b_ref, *rest, H, W, ksize, prologue_act,
                 post_act, sigmoid, has_residual, shuffle):
    """Fused conv over one image: in-kernel k*k tap accumulation, f32 accumulate,
    fused bias / residual / LeakyReLU / Sigmoid, optional fused 2x pixel-shuffle."""
    r_ref = rest[0] if has_residual else None
    o_ref = rest[1] if has_residual else rest[0]
    nout = w_ref.shape[2]

    # Loop invariants: per-tap weight tiles + bias stay resident across output rows.
    w_taps = [w_ref[t] for t in range(ksize * ksize)]      # each [cin, nout] bf16
    bias = b_ref[...]                                      # [1, nout] f32

    def row_body(h, carry):
        acc = jnp.zeros((W, nout), jnp.float32)
        for ti in range(ksize):
            for tj in range(ksize):
                win = x_ref[0, h + ti, tj:tj + W, :]       # [W, cin] bf16 (VMEM)
                if prologue_act:
                    win = _leaky(win)                      # previous layer's LeakyReLU
                acc = acc + jnp.dot(win, w_taps[ti * ksize + tj],
                                    preferred_element_type=jnp.float32)
        acc = acc + bias
        if has_residual:
            acc = acc + r_ref[0, h, :, :].astype(jnp.float32)
        if post_act:
            acc = _leaky(acc)
        if sigmoid:
            acc = 1.0 / (1.0 + jnp.exp(-acc))
        if shuffle:
            # output channels are ordered (ph, pw, c); write row parity ph so that a
            # free row-major reshape yields the 2x upsampled NHWC image.
            half = nout // 2
            o_ref[0, h, 0, :, :] = acc[:, :half].astype(o_ref.dtype)
            o_ref[0, h, 1, :, :] = acc[:, half:].astype(o_ref.dtype)
        else:
            o_ref[0, h, :, :] = acc.astype(o_ref.dtype)
        return carry

    jax.lax.fori_loop(0, H, row_body, 0)


# ---------------------------------------------------------------------------
# Wrappers (pallas_call plumbing)
# ---------------------------------------------------------------------------
def _row_tile(m):
    for t in (1024, 512, 256, 128, 64, 32, 16, 8):
        if m % t == 0:
            return t
    return m


def linear(x, w, b, *, act):
    """x: [M, K] bf16, w: [K, N] bf16, b: [1, N] f32 -> [M, N] bf16."""
    M, K = x.shape
    Kw, N = w.shape
    assert K == Kw
    tm = _row_tile(M)
    return pl.pallas_call(
        functools.partial(_linear_kernel, act=act),
        grid=(M // tm,),
        in_specs=[pl.BlockSpec((tm, K), lambda i: (i, 0)),
                  pl.BlockSpec((K, N), lambda i: (0, 0)),
                  pl.BlockSpec((1, N), lambda i: (0, 0))],
        out_specs=pl.BlockSpec((tm, N), lambda i: (i, 0)),
        out_shape=jax.ShapeDtypeStruct((M, N), jnp.bfloat16),
        compiler_params=pltpu.CompilerParams(
            dimension_semantics=("parallel",), vmem_limit_bytes=_VMEM_LIMIT),
    )(x, w, b)


def conv_block(x, w, b, *, ksize, pad, residual=None, prologue_act=False,
               post_act=False, sigmoid=False, shuffle=False,
               out_dtype=jnp.bfloat16):
    """x: [B, H, W, Cin] NHWC bf16.  w: [k*k, Cin, Nout] bf16.  b: [1, Nout] f32.
    shuffle=True: Nout = 4*Cg ordered (ph, pw, c); returns [B, 2H, 2W, Cg]."""
    B, H, W, cin = x.shape
    taps, cin_w, nout = w.shape
    assert taps == ksize * ksize and cin_w == cin
    # TODO(synk): fold this zero-pad halo into the kernel (VMEM scratch) to drop one
    #             HBM read+write pass per 3x3 conv.
    xp = jnp.pad(x, ((0, 0), (pad, pad), (pad, pad), (0, 0))) if pad else x
    Hp, Wp = H + 2 * pad, W + 2 * pad
    assert Hp - ksize + 1 == H and Wp - ksize + 1 == W   # only "same" convs here

    in_specs = [pl.BlockSpec((1, Hp, Wp, cin), lambda bi: (bi, 0, 0, 0)),
                pl.BlockSpec((taps, cin, nout), lambda bi: (0, 0, 0)),
                pl.BlockSpec((1, nout), lambda bi: (0, 0))]
    args = [xp, w, b]
    if residual is not None:
        assert residual.shape == (B, H, W, nout)
        in_specs.append(pl.BlockSpec((1, H, W, nout), lambda bi: (bi, 0, 0, 0)))
        args.append(residual)

    if shuffle:
        assert nout % 4 == 0
        out_shape = jax.ShapeDtypeStruct((B, H, 2, W, nout // 2), out_dtype)
        out_spec = pl.BlockSpec((1, H, 2, W, nout // 2),
                                lambda bi: (bi, 0, 0, 0, 0))
    else:
        out_shape = jax.ShapeDtypeStruct((B, H, W, nout), out_dtype)
        out_spec = pl.BlockSpec((1, H, W, nout), lambda bi: (bi, 0, 0, 0))

    kernel = functools.partial(
        _conv_kernel, H=H, W=W, ksize=ksize, prologue_act=prologue_act,
        post_act=post_act, sigmoid=sigmoid, has_residual=residual is not None,
        shuffle=shuffle)

    out = pl.pallas_call(
        kernel, grid=(B,), in_specs=in_specs, out_specs=out_spec,
        out_shape=out_shape,
        compiler_params=pltpu.CompilerParams(
            dimension_semantics=("parallel",), vmem_limit_bytes=_VMEM_LIMIT),
    )(*args)

    if shuffle:
        # [B, H, 2, W, 2*Cg] -> [B, 2H, 2W, Cg]: pure row-major merge (free reshape)
        return out.reshape(B, 2 * H, 2 * W, nout // 4)
    return out


# ---------------------------------------------------------------------------
# Parameter construction (PyTorch-style init -> kernel-ready packed matrices)
# ---------------------------------------------------------------------------
def _round_bf16(w):                     # make kernel (bf16) and reference weights equal
    return w.astype(jnp.bfloat16).astype(jnp.float32)


def _uniform(key, shape, bound):
    return jax.random.uniform(key, shape, jnp.float32, -bound, bound)


def _linear_init(key, fan_in, fan_out):
    k1, k2 = jax.random.split(key)
    bound = 1.0 / math.sqrt(fan_in)
    return _round_bf16(_uniform(k1, (fan_in, fan_out), bound)), _uniform(k2, (fan_out,), bound)


def _conv_init(key, k, cin, cout):
    k1, k2 = jax.random.split(key)
    bound = 1.0 / math.sqrt(cin * k * k)
    return _round_bf16(_uniform(k1, (k, k, cin, cout), bound)), _uniform(k2, (cout,), bound)  # HWIO


def _convT_init(key, cin, cout, k=4):
    k1, k2 = jax.random.split(key)
    bound = 1.0 / math.sqrt(cout * k * k)
    return _round_bf16(_uniform(k1, (cin, cout, k, k), bound)), _uniform(k2, (cout,), bound)  # torch layout


def _pack_linear(w, b):
    return w.astype(jnp.bfloat16), b.reshape(1, -1).astype(jnp.float32)


def _pack_conv(w_hwio, b):
    kh, kw, cin, cout = w_hwio.shape
    return (w_hwio.reshape(kh * kw, cin, cout).astype(jnp.bfloat16),
            b.reshape(1, -1).astype(jnp.float32))


def _convT_as_conv3x3(w_t):
    """ConvTranspose2d(4, stride=2, padding=1) weight [Cin,Cout,4,4] -> equivalent
    3x3 stride-1 pad-1 conv weight [3,3,Cin,4*Cout]; channel group g = 2*ph + pw holds
    output parity (ph, pw):  y[2m+ph, 2n+pw] = conv3x3(x)[m, n, g]."""
    cin, cout = w_t.shape[:2]
    wc = jnp.zeros((3, 3, cin, 4 * cout), jnp.float32)
    for ph in range(2):
        for pw in range(2):
            g = 2 * ph + pw
            for a in range(2):
                for b_ in range(2):
                    sub = w_t[:, :, 3 - ph - 2 * a, 3 - pw - 2 * b_]   # [Cin, Cout]
                    wc = wc.at[ph + a, pw + b_, :, g * cout:(g + 1) * cout].set(sub)
    return wc


def _pack_convT(w_t, b):
    cin, cout = w_t.shape[:2]
    wc = _convT_as_conv3x3(w_t)                                  # [3,3,cin,4*cout]
    return (wc.reshape(9, cin, 4 * cout).astype(jnp.bfloat16),
            jnp.tile(b, 4).reshape(1, -1).astype(jnp.float32))


class DecoderConfig:
    def __init__(self, img_size, input_size, hidden_size, n_res_block):
        assert img_size % 8 == 0 and hidden_size % 32 == 0
        self.img_size = img_size
        self.input_size = input_size
        self.hidden_size = hidden_size
        self.n_res_block = n_res_block
        self.channel_b1 = hidden_size // 4
        self.ini_channel = hidden_size // 32
        self.ini_size = img_size // 8
        self.ini_mapping = self.ini_size * self.ini_size * self.ini_channel


def init_params(key, cfg):
    keys = iter(jax.random.split(key, 7 + 2 * cfg.n_res_block))
    packed, raw = {}, {}

    w1, b1 = _linear_init(next(keys), cfg.input_size, cfg.hidden_size)
    packed["fc1"] = _pack_linear(w1, b1)
    raw["fc1"] = (w1, b1)

    w2, b2 = _linear_init(next(keys), cfg.hidden_size, cfg.ini_mapping)
    raw["fc2"] = (w2, b2)
    # permute output features from NCHW flatten order (c*S*S + h*S + w) to NHWC order
    # ((h*S + w)*C + c) so the .view to the feature map is a free reshape.
    S, C = cfg.ini_size, cfg.ini_channel
    g = jnp.arange(cfg.ini_mapping)
    perm = (g % C) * (S * S) + g // C
    packed["fc2"] = _pack_linear(w2[:, perm], b2[perm])

    w0, b0 = _conv_init(next(keys), 3, cfg.ini_channel, cfg.channel_b1)
    packed["conv0"] = _pack_conv(w0, b0)
    raw["conv0"] = (w0, b0)

    packed["res"], raw["res"] = [], []
    for _ in range(cfg.n_res_block):
        wa, ba = _conv_init(next(keys), 3, cfg.channel_b1, cfg.input_size)
        wb, bb = _conv_init(next(keys), 1, cfg.input_size, cfg.channel_b1)
        packed["res"].append((_pack_conv(wa, ba), _pack_conv(wb, bb)))
        raw["res"].append(((wa, ba), (wb, bb)))

    packed["convT"], raw["convT"] = [], []
    cin = cfg.channel_b1
    for _ in range(3):
        cout = cin // 2
        wt, bt = _convT_init(next(keys), cin, cout)
        packed["convT"].append(_pack_convT(wt, bt))
        raw["convT"].append((wt, bt))
        cin = cout

    wo, bo = _conv_init(next(keys), 3, cfg.channel_b1 // 8, 3)
    packed["conv_out"] = _pack_conv(wo, bo)
    raw["conv_out"] = (wo, bo)
    return packed, raw


# ---------------------------------------------------------------------------
# Forward pass (mirrors ImageDecoder.forward)
# ---------------------------------------------------------------------------
def image_decoder_forward(inputs, params, *, cfg):
    B = inputs.shape[0]

    # input_mapping: Linear + LeakyReLU, Linear + LeakyReLU (fused kernels)
    h = linear(inputs.astype(jnp.bfloat16), *params["fc1"], act=True)
    h = linear(h, *params["fc2"], act=True)
    y = h.reshape(B, cfg.ini_size, cfg.ini_size, cfg.ini_channel)   # free NHWC view

    # first Conv2d (no activation; the consumer applies LeakyReLU in its prologue)
    y = conv_block(y, *params["conv0"], ksize=3, pad=1)

    # ResBlock: LeakyReLU -> 3x3 -> LeakyReLU -> 1x1, += input (pre-activation)
    for (wa, ba), (wb, bb) in params["res"]:
        mid = conv_block(y, wa, ba, ksize=3, pad=1, prologue_act=True)
        y = conv_block(mid, wb, bb, ksize=1, pad=0, prologue_act=True, residual=y)

    # 3x (ConvTranspose2d(4, s2, p1) + LeakyReLU) as 3x3 conv over 4 output parities
    # with the 2x pixel shuffle fused into the kernel's output layout.
    first = True
    for wt, bt in params["convT"]:
        y = conv_block(y, wt, bt, ksize=3, pad=1, prologue_act=first,
                       post_act=True, shuffle=True)
        first = False

    # final Conv2d(channel_b1//8 -> 3) + Sigmoid: exact 3-channel f32 output
    out = conv_block(y, *params["conv_out"], ksize=3, pad=1, sigmoid=True,
                     out_dtype=jnp.float32)
    return jnp.transpose(out, (0, 3, 1, 2))       # NHWC -> NCHW [B, 3, H, W]


# ---------------------------------------------------------------------------
# Plain-JAX / XLA reference (f32, NCHW, exactly the PyTorch op sequence)
# ---------------------------------------------------------------------------
def _ref_forward(inputs, raw, *, cfg):
    dn = ("NCHW", "OIHW", "NCHW")

    def conv(x, w_hwio, bias, pad):
        w = jnp.transpose(w_hwio, (3, 2, 0, 1))
        y = jax.lax.conv_general_dilated(x, w, (1, 1), [(pad, pad), (pad, pad)],
                                         dimension_numbers=dn)
        return y + bias[None, :, None, None]

    def conv_t(x, w_t, bias):          # ConvTranspose2d(4, stride=2, padding=1)
        w = jnp.flip(jnp.transpose(w_t, (1, 0, 2, 3)), axis=(2, 3))
        y = jax.lax.conv_general_dilated(x, w, (1, 1), [(2, 2), (2, 2)],
                                         lhs_dilation=(2, 2), dimension_numbers=dn)
        return y + bias[None, :, None, None]

    h = _leaky(inputs @ raw["fc1"][0] + raw["fc1"][1])
    h = _leaky(h @ raw["fc2"][0] + raw["fc2"][1])
    y = h.reshape(-1, cfg.ini_channel, cfg.ini_size, cfg.ini_size)   # torch .view

    y = conv(y, *raw["conv0"], pad=1)
    for (wa, ba), (wb, bb) in raw["res"]:
        t = conv(_leaky(y), wa, ba, pad=1)
        t = conv(_leaky(t), wb, bb, pad=0)
        y = y + t
    y = _leaky(y)
    for wt, bt in raw["convT"]:
        y = _leaky(conv_t(y, wt, bt))
    y = conv(y, *raw["conv_out"], pad=1)
    return jax.nn.sigmoid(y)


if __name__ == "__main__":
    cfg = DecoderConfig(img_size=16, input_size=16, hidden_size=32, n_res_block=1)
    key = jax.random.PRNGKey(0)
    kx, kp = jax.random.split(key)

    x = jax.random.normal(kx, (2, cfg.input_size), jnp.float32)   # [B*NT, C_in]
    params, raw = init_params(kp, cfg)

    fwd = jax.jit(functools.partial(image_decoder_forward, cfg=cfg))
    out = jax.block_until_ready(fwd(x, params))

    assert out.shape == (2, 3, cfg.img_size, cfg.img_size), out.shape
    assert out.dtype == jnp.float32
    assert bool(jnp.all((out >= 0.0) & (out <= 1.0)))             # sigmoid range

    ref = jax.block_until_ready(jax.jit(functools.partial(_ref_forward, cfg=cfg))(x, raw))
    max_err = float(jnp.max(jnp.abs(out - ref)))
    assert max_err < 0.05, f"kernel/reference mismatch: {max_err}"

    print("KERNEL_OK")
</pallas_src>

<mosaic_0001>
module attributes {stable_mosaic.version = 11 : i64} {
  func.func @_linear_kernel(%arg0: i32, %arg1: memref<2x16xbf16, #tpu.memory_space<vmem>>, %arg2: memref<16x32xbf16, #tpu.memory_space<vmem>>, %arg3: memref<1x32xf32, #tpu.memory_space<vmem>>, %arg4: memref<2x32xbf16, #tpu.memory_space<vmem>>) attributes {dimension_semantics = [#tpu.dimension_semantics<parallel>], iteration_bounds = array<i64: 1>, scalar_prefetch = 0 : i64, scratch_operands = 0 : i64, tpu.core_type = #tpu.core_type<tc>, window_params = [{transform_indices = @transform_0, window_bounds = array<i64: 2, 16>}, {pipeline_mode = #tpu.pipeline_mode<synchronous>, transform_indices = @transform_1, window_bounds = array<i64: 16, 32>}, {pipeline_mode = #tpu.pipeline_mode<synchronous>, transform_indices = @transform_2, window_bounds = array<i64: 1, 32>}, {transform_indices = @transform_3, window_bounds = array<i64: 2, 32>}]} {
    %c0 = arith.constant 0 : index
    %c0_0 = arith.constant 0 : index
    %0 = vector.load %arg1[%c0, %c0_0] : memref<2x16xbf16, #tpu.memory_space<vmem>>, vector<2x16xbf16>
    %c0_1 = arith.constant 0 : index
    %c0_2 = arith.constant 0 : index
    %1 = vector.load %arg2[%c0_1, %c0_2] : memref<16x32xbf16, #tpu.memory_space<vmem>>, vector<16x32xbf16>
    %cst = arith.constant dense<0.000000e+00> : vector<2x32xf32>
    %2 = tpu.matmul %0, %1, %cst {dimension_numbers = #tpu.dot_dimension_numbers<[1], [0], [0], [1], [0, 0, 1, 1], [], []>} : vector<2x16xbf16>, vector<16x32xbf16>, vector<2x32xf32> -> vector<2x32xf32>
    %c0_3 = arith.constant 0 : index
    %c0_4 = arith.constant 0 : index
    %3 = vector.load %arg3[%c0_3, %c0_4] : memref<1x32xf32, #tpu.memory_space<vmem>>, vector<1x32xf32>
    %4 = vector.broadcast %3 : vector<1x32xf32> to vector<2x32xf32>
    %5 = arith.addf %2, %4 : vector<2x32xf32>
    %cst_5 = arith.constant 0.000000e+00 : f32
    %6 = vector.broadcast %cst_5 : f32 to vector<2x32xf32>
    %7 = arith.cmpf oge, %5, %6 : vector<2x32xf32>
    %cst_6 = arith.constant 0.00999999977 : f32
    %8 = vector.broadcast %cst_6 : f32 to vector<2x32xf32>
    %9 = arith.mulf %8, %5 : vector<2x32xf32>
    %10 = arith.select %7, %5, %9 : vector<2x32xi1>, vector<2x32xf32>
    %11 = arith.truncf %10 : vector<2x32xf32> to vector<2x32xbf16>
    %c0_7 = arith.constant 0 : index
    %c0_8 = arith.constant 0 : index
    %12 = vector.load %arg4[%c0_7, %c0_8] : memref<2x32xbf16, #tpu.memory_space<vmem>>, vector<2x32xbf16>
    tpu.vector_store %arg4[%c0_7, %c0_8], %11 {strides = array<i32>} : memref<2x32xbf16, #tpu.memory_space<vmem>>, vector<2x32xbf16>,
    return
  }
  func.func @transform_0(%arg0: i32) -> (i32, i32) {
    %c0_i32 = arith.constant 0 : i32
    %c0_i32_0 = arith.constant 0 : i32
    return %arg0, %c0_i32 : i32, i32
  }
  func.func @transform_1(%arg0: i32) -> (i32, i32) {
    %c0_i32 = arith.constant 0 : i32
    %c0_i32_0 = arith.constant 0 : i32
    %c0_i32_1 = arith.constant 0 : i32
    return %c0_i32, %c0_i32_0 : i32, i32
  }
  func.func @transform_2(%arg0: i32) -> (i32, i32) {
    %c0_i32 = arith.constant 0 : i32
    %c0_i32_0 = arith.constant 0 : i32
    %c0_i32_1 = arith.constant 0 : i32
    return %c0_i32, %c0_i32_0 : i32, i32
  }
  func.func @transform_3(%arg0: i32) -> (i32, i32) {
    %c0_i32 = arith.constant 0 : i32
    %c0_i32_0 = arith.constant 0 : i32
    return %arg0, %c0_i32 : i32, i32
  }
}

module attributes {stable_mosaic.version = 11 : i64} {
  func.func @_linear_kernel(%arg0: i32, %arg1: memref<2x32xbf16, #tpu.memory_space<vmem>>, %arg2: memref<32x4xbf16, #tpu.memory_space<vmem>>, %arg3: memref<1x4xf32, #tpu.memory_space<vmem>>, %arg4: memref<2x4xbf16, #tpu.memory_space<vmem>>) attributes {dimension_semantics = [#tpu.dimension_semantics<parallel>], iteration_bounds = array<i64: 1>, scalar_prefetch = 0 : i64, scratch_operands = 0 : i64, tpu.core_type = #tpu.core_type<tc>, window_params = [{transform_indices = @transform_0, window_bounds = array<i64: 2, 32>}, {pipeline_mode = #tpu.pipeline_mode<synchronous>, transform_indices = @transform_1, window_bounds = array<i64: 32, 4>}, {pipeline_mode = #tpu.pipeline_mode<synchronous>, transform_indices = @transform_2, window_bounds = array<i64: 1, 4>}, {transform_indices = @transform_3, window_bounds = array<i64: 2, 4>}]} {
    %c0 = arith.constant 0 : index
    %c0_0 = arith.constant 0 : index
    %0 = vector.load %arg1[%c0, %c0_0] : memref<2x32xbf16, #tpu.memory_space<vmem>>, vector<2x32xbf16>
    %c0_1 = arith.constant 0 : index
    %c0_2 = arith.constant 0 : index
    %1 = vector.load %arg2[%c0_1, %c0_2] : memref<32x4xbf16, #tpu.memory_space<vmem>>, vector<32x4xbf16>
    %cst = arith.constant dense<0.000000e+00> : vector<2x4xf32>
    %2 = tpu.matmul %0, %1, %cst {dimension_numbers = #tpu.dot_dimension_numbers<[1], [0], [0], [1], [0, 0, 1, 1], [], []>} : vector<2x32xbf16>, vector<32x4xbf16>, vector<2x4xf32> -> vector<2x4xf32>
    %c0_3 = arith.constant 0 : index
    %c0_4 = arith.constant 0 : index
    %3 = vector.load %arg3[%c0_3, %c0_4] : memref<1x4xf32, #tpu.memory_space<vmem>>, vector<1x4xf32>
    %4 = vector.broadcast %3 : vector<1x4xf32> to vector<2x4xf32>
    %5 = arith.addf %2, %4 : vector<2x4xf32>
    %cst_5 = arith.constant 0.000000e+00 : f32
    %6 = vector.broadcast %cst_5 : f32 to vector<2x4xf32>
    %7 = arith.cmpf oge, %5, %6 : vector<2x4xf32>
    %cst_6 = arith.constant 0.00999999977 : f32
    %8 = vector.broadcast %cst_6 : f32 to vector<2x4xf32>
    %9 = arith.mulf %8, %5 : vector<2x4xf32>
    %10 = arith.select %7, %5, %9 : vector<2x4xi1>, vector<2x4xf32>
    %11 = arith.truncf %10 : vector<2x4xf32> to vector<2x4xbf16>
    %c0_7 = arith.constant 0 : index
    %c0_8 = arith.constant 0 : index
    %12 = vector.load %arg4[%c0_7, %c0_8] : memref<2x4xbf16, #tpu.memory_space<vmem>>, vector<2x4xbf16>
    tpu.vector_store %arg4[%c0_7, %c0_8], %11 {strides = array<i32>} : memref<2x4xbf16, #tpu.memory_space<vmem>>, vector<2x4xbf16>,
    return
  }
  func.func @transform_0(%arg0: i32) -> (i32, i32) {
    %c0_i32 = arith.constant 0 : i32
    %c0_i32_0 = arith.constant 0 : i32
    return %arg0, %c0_i32 : i32, i32
  }
  func.func @transform_1(%arg0: i32) -> (i32, i32) {
    %c0_i32 = arith.constant 0 : i32
    %c0_i32_0 = arith.constant 0 : i32
    %c0_i32_1 = arith.constant 0 : i32
    return %c0_i32, %c0_i32_0 : i32, i32
  }
  func.func @transform_2(%arg0: i32) -> (i32, i32) {
    %c0_i32 = arith.constant 0 : i32
    %c0_i32_0 = arith.constant 0 : i32
    %c0_i32_1 = arith.constant 0 : i32
    return %c0_i32, %c0_i32_0 : i32, i32
  }
  func.func @transform_3(%arg0: i32) -> (i32, i32) {
    %c0_i32 = arith.constant 0 : i32
    %c0_i32_0 = arith.constant 0 : i32
    return %arg0, %c0_i32 : i32, i32
  }
}

module attributes {stable_mosaic.version = 11 : i64} {
  func.func @_conv_kernel(%arg0: i32, %arg1: memref<1x4x4x1xbf16, #tpu.memory_space<vmem>>, %arg2: memref<9x1x8xbf16, #tpu.memory_space<vmem>>, %arg3: memref<1x8xf32, #tpu.memory_space<vmem>>, %arg4: memref<1x2x2x8xbf16, #tpu.memory_space<vmem>>) attributes {dimension_semantics = [#tpu.dimension_semantics<parallel>], iteration_bounds = array<i64: 2>, scalar_prefetch = 0 : i64, scratch_operands = 0 : i64, tpu.core_type = #tpu.core_type<tc>, window_params = [{transform_indices = @transform_0, window_bounds = array<i64: 1, 4, 4, 1>}, {pipeline_mode = #tpu.pipeline_mode<synchronous>, transform_indices = @transform_1, window_bounds = array<i64: 9, 1, 8>}, {pipeline_mode = #tpu.pipeline_mode<synchronous>, transform_indices = @transform_2, window_bounds = array<i64: 1, 8>}, {transform_indices = @transform_3, window_bounds = array<i64: 1, 2, 2, 8>}]} {
    %c0 = arith.constant 0 : index
    %c0_0 = arith.constant 0 : index
    %c0_1 = arith.constant 0 : index
    %0 = vector.load %arg2[%c0, %c0_0, %c0_1] : memref<9x1x8xbf16, #tpu.memory_space<vmem>>, vector<1x1x8xbf16>
    %1 = vector.shape_cast %0 : vector<1x1x8xbf16> to vector<1x8xbf16>
    %c1 = arith.constant 1 : index
    %c0_2 = arith.constant 0 : index
    %c0_3 = arith.constant 0 : index
    %2 = vector.load %arg2[%c1, %c0_2, %c0_3] : memref<9x1x8xbf16, #tpu.memory_space<vmem>>, vector<1x1x8xbf16>
    %3 = vector.shape_cast %2 : vector<1x1x8xbf16> to vector<1x8xbf16>
    %c2 = arith.constant 2 : index
    %c0_4 = arith.constant 0 : index
    %c0_5 = arith.constant 0 : index
    %4 = vector.load %arg2[%c2, %c0_4, %c0_5] : memref<9x1x8xbf16, #tpu.memory_space<vmem>>, vector<1x1x8xbf16>
    %5 = vector.shape_cast %4 : vector<1x1x8xbf16> to vector<1x8xbf16>
    %c3 = arith.constant 3 : index
    %c0_6 = arith.constant 0 : index
    %c0_7 = arith.constant 0 : index
    %6 = vector.load %arg2[%c3, %c0_6, %c0_7] : memref<9x1x8xbf16, #tpu.memory_space<vmem>>, vector<1x1x8xbf16>
    %7 = vector.shape_cast %6 : vector<1x1x8xbf16> to vector<1x8xbf16>
    %c4 = arith.constant 4 : index
    %c0_8 = arith.constant 0 : index
    %c0_9 = arith.constant 0 : index
    %8 = vector.load %arg2[%c4, %c0_8, %c0_9] : memref<9x1x8xbf16, #tpu.memory_space<vmem>>, vector<1x1x8xbf16>
    %9 = vector.shape_cast %8 : vector<1x1x8xbf16> to vector<1x8xbf16>
    %c5 = arith.constant 5 : index
    %c0_10 = arith.constant 0 : index
    %c0_11 = arith.constant 0 : index
    %10 = vector.load %arg2[%c5, %c0_10, %c0_11] : memref<9x1x8xbf16, #tpu.memory_space<vmem>>, vector<1x1x8xbf16>
    %11 = vector.shape_cast %10 : vector<1x1x8xbf16> to vector<1x8xbf16>
    %c6 = arith.constant 6 : index
    %c0_12 = arith.constant 0 : index
    %c0_13 = arith.constant 0 : index
    %12 = vector.load %arg2[%c6, %c0_12, %c0_13] : memref<9x1x8xbf16, #tpu.memory_space<vmem>>, vector<1x1x8xbf16>
    %13 = vector.shape_cast %12 : vector<1x1x8xbf16> to vector<1x8xbf16>
    %c7 = arith.constant 7 : index
    %c0_14 = arith.constant 0 : index
    %c0_15 = arith.constant 0 : index
    %14 = vector.load %arg2[%c7, %c0_14, %c0_15] : memref<9x1x8xbf16, #tpu.memory_space<vmem>>, vector<1x1x8xbf16>
    %15 = vector.shape_cast %14 : vector<1x1x8xbf16> to vector<1x8xbf16>
    %c8 = arith.constant 8 : index
    %c0_16 = arith.constant 0 : index
    %c0_17 = arith.constant 0 : index
    %16 = vector.load %arg2[%c8, %c0_16, %c0_17] : memref<9x1x8xbf16, #tpu.memory_space<vmem>>, vector<1x1x8xbf16>
    %17 = vector.shape_cast %16 : vector<1x1x8xbf16> to vector<1x8xbf16>
    %c0_18 = arith.constant 0 : index
    %c0_19 = arith.constant 0 : index
    %18 = vector.load %arg3[%c0_18, %c0_19] : memref<1x8xf32, #tpu.memory_space<vmem>>, vector<1x8xf32>
    %c0_i32 = arith.constant 0 : i32
    %c2_i32 = arith.constant 2 : i32
    %19 = arith.addi %c0_i32, %c2_i32 : i32
    %c1_i32 = arith.constant 1 : i32
    scf.for %arg5 = %c0_i32 to %19 step %c1_i32  : i32 {
      %cst = arith.constant 0.000000e+00 : f32
      %20 = vector.broadcast %cst : f32 to vector<2x8xf32>
      %c0_i32_21 = arith.constant 0 : i32
      %21 = arith.addi %arg5, %c0_i32_21 : i32
      %c0_22 = arith.constant 0 : index
      %22 = arith.index_cast %21 : i32 to index
      %c0_23 = arith.constant 0 : index
      %c0_24 = arith.constant 0 : index
      %23 = vector.load %arg1[%c0_22, %22, %c0_23, %c0_24] : memref<1x4x4x1xbf16, #tpu.memory_space<vmem>>, vector<1x1x2x1xbf16>
      %24 = vector.shape_cast %23 : vector<1x1x2x1xbf16> to vector<2x1xbf16>
      %cst_25 = arith.constant dense<0.000000e+00> : vector<2x8xf32>
      %25 = tpu.matmul %24, %1, %cst_25 {dimension_numbers = #tpu.dot_dimension_numbers<[1], [0], [0], [1], [0, 0, 1, 1], [], []>} : vector<2x1xbf16>, vector<1x8xbf16>, vector<2x8xf32> -> vector<2x8xf32>
      %26 = arith.addf %20, %25 : vector<2x8xf32>
      %c0_i32_26 = arith.constant 0 : i32
      %27 = arith.addi %arg5, %c0_i32_26 : i32
      %c0_27 = arith.constant 0 : index
      %28 = arith.index_cast %27 : i32 to index
      %c1_28 = arith.constant 1 : index
      %c0_29 = arith.constant 0 : index
      %29 = vector.load %arg1[%c0_27, %28, %c1_28, %c0_29] : memref<1x4x4x1xbf16, #tpu.memory_space<vmem>>, vector<1x1x2x1xbf16>
      %30 = vector.shape_cast %29 : vector<1x1x2x1xbf16> to vector<2x1xbf16>
      %cst_30 = arith.constant dense<0.000000e+00> : vector<2x8xf32>
      %31 = tpu.matmul %30, %3, %cst_30 {dimension_numbers = #tpu.dot_dimension_numbers<[1], [0], [0], [1], [0, 0, 1, 1], [], []>} : vector<2x1xbf16>, vector<1x8xbf16>, vector<2x8xf32> -> vector<2x8xf32>
      %32 = arith.addf %26, %31 : vector<2x8xf32>
      %c0_i32_31 = arith.constant 0 : i32
      %33 = arith.addi %arg5, %c0_i32_31 : i32
      %c0_32 = arith.constant 0 : index
      %34 = arith.index_cast %33 : i32 to index
      %c2_33 = arith.constant 2 : index
      %c0_34 = arith.constant 0 : index
      %35 = vector.load %arg1[%c0_32, %34, %c2_33, %c0_34] : memref<1x4x4x1xbf16, #tpu.memory_space<vmem>>, vector<1x1x2x1xbf16>
      %36 = vector.shape_cast %35 : vector<1x1x2x1xbf16> to vector<2x1xbf16>
      %cst_35 = arith.constant dense<0.000000e+00> : vector<2x8xf32>
      %37 = tpu.matmul %36, %5, %cst_35 {dimension_numbers = #tpu.dot_dimension_numbers<[1], [0], [0], [1], [0, 0, 1, 1], [], []>} : vector<2x1xbf16>, vector<1x8xbf16>, vector<2x8xf32> -> vector<2x8xf32>
      %38 = arith.addf %32, %37 : vector<2x8xf32>
      %c1_i32_36 = arith.constant 1 : i32
      %39 = arith.addi %arg5, %c1_i32_36 : i32
      %c0_37 = arith.constant 0 : index
      %40 = arith.index_cast %39 : i32 to index
      %c0_38 = arith.constant 0 : index
      %c0_39 = arith.constant 0 : index
      %41 = vector.load %arg1[%c0_37, %40, %c0_38, %c0_39] : memref<1x4x4x1xbf16, #tpu.memory_space<vmem>>, vector<1x1x2x1xbf16>
      %42 = vector.shape_cast %41 : vector<1x1x2x1xbf16> to vector<2x1xbf16>
      %cst_40 = arith.constant dense<0.000000e+00> : vector<2x8xf32>
      %43 = tpu.matmul %42, %7, %cst_40 {dimension_numbers = #tpu.dot_dimension_numbers<[1], [0], [0], [1], [0, 0, 1, 1], [], []>} : vector<2x1xbf16>, vector<1x8xbf16>, vector<2x8xf32> -> vector<2x8xf32>
      %44 = arith.addf %38, %43 : vector<2x8xf32>
      %c1_i32_41 = arith.constant 1 : i32
      %45 = arith.addi %arg5, %c1_i32_41 : i32
      %c0_42 = arith.constant 0 : index
      %46 = arith.index_cast %45 : i32 to index
      %c1_43 = arith.constant 1 : index
      %c0_44 = arith.constant 0 : index
      %47 = vector.load %arg1[%c0_42, %46, %c1_43, %c0_44] : memref<1x4x4x1xbf16, #tpu.memory_space<vmem>>, vector<1x1x2x1xbf16>
      %48 = vector.shape_cast %47 : vector<1x1x2x1xbf16> to vector<2x1xbf16>
      %cst_45 = arith.constant dense<0.000000e+00> : vector<2x8xf32>
      %49 = tpu.matmul %48, %9, %cst_45 {dimension_numbers = #tpu.dot_dimension_numbers<[1], [0], [0], [1], [0, 0, 1, 1], [], []>} : vector<2x1xbf16>, vector<1x8xbf16>, vector<2x8xf32> -> vector<2x8xf32>
      %50 = arith.addf %44, %49 : vector<2x8xf32>
      %c1_i32_46 = arith.constant 1 : i32
      %51 = arith.addi %arg5, %c1_i32_46 : i32
      %c0_47 = arith.constant 0 : index
      %52 = arith.index_cast %51 : i32 to index
      %c2_48 = arith.constant 2 : index
      %c0_49 = arith.constant 0 : index
      %53 = vector.load %arg1[%c0_47, %52, %c2_48, %c0_49] : memref<1x4x4x1xbf16, #tpu.memory_space<vmem>>, vector<1x1x2x1xbf16>
      %54 = vector.shape_cast %53 : vector<1x1x2x1xbf16> to vector<2x1xbf16>
      %cst_50 = arith.constant dense<0.000000e+00> : vector<2x8xf32>
      %55 = tpu.matmul %54, %11, %cst_50 {dimension_numbers = #tpu.dot_dimension_numbers<[1], [0], [0], [1], [0, 0, 1, 1], [], []>} : vector<2x1xbf16>, vector<1x8xbf16>, vector<2x8xf32> -> vector<2x8xf32>
      %56 = arith.addf %50, %55 : vector<2x8xf32>
      %c2_i32_51 = arith.constant 2 : i32
      %57 = arith.addi %arg5, %c2_i32_51 : i32
      %c0_52 = arith.constant 0 : index
      %58 = arith.index_cast %57 : i32 to index
      %c0_53 = arith.constant 0 : index
      %c0_54 = arith.constant 0 : index
      %59 = vector.load %arg1[%c0_52, %58, %c0_53, %c0_54] : memref<1x4x4x1xbf16, #tpu.memory_space<vmem>>, vector<1x1x2x1xbf16>
      %60 = vector.shape_cast %59 : vector<1x1x2x1xbf16> to vector<2x1xbf16>
      %cst_55 = arith.constant dense<0.000000e+00> : vector<2x8xf32>
      %61 = tpu.matmul %60, %13, %cst_55 {dimension_numbers = #tpu.dot_dimension_numbers<[1], [0], [0], [1], [0, 0, 1, 1], [], []>} : vector<2x1xbf16>, vector<1x8xbf16>, vector<2x8xf32> -> vector<2x8xf32>
      %62 = arith.addf %56, %61 : vector<2x8xf32>
      %c2_i32_56 = arith.constant 2 : i32
      %63 = arith.addi %arg5, %c2_i32_56 : i32
      %c0_57 = arith.constant 0 : index
      %64 = arith.index_cast %63 : i32 to index
      %c1_58 = arith.constant 1 : index
      %c0_59 = arith.constant 0 : index
      %65 = vector.load %arg1[%c0_57, %64, %c1_58, %c0_59] : memref<1x4x4x1xbf16, #tpu.memory_space<vmem>>, vector<1x1x2x1xbf16>
      %66 = vector.shape_cast %65 : vector<1x1x2x1xbf16> to vector<2x1xbf16>
      %cst_60 = arith.constant dense<0.000000e+00> : vector<2x8xf32>
      %67 = tpu.matmul %66, %15, %cst_60 {dimension_numbers = #tpu.dot_dimension_numbers<[1], [0], [0], [1], [0, 0, 1, 1], [], []>} : vector<2x1xbf16>, vector<1x8xbf16>, vector<2x8xf32> -> vector<2x8xf32>
      %68 = arith.addf %62, %67 : vector<2x8xf32>
      %c2_i32_61 = arith.constant 2 : i32
      %69 = arith.addi %arg5, %c2_i32_61 : i32
      %c0_62 = arith.constant 0 : index
      %70 = arith.index_cast %69 : i32 to index
      %c2_63 = arith.constant 2 : index
      %c0_64 = arith.constant 0 : index
      %71 = vector.load %arg1[%c0_62, %70, %c2_63, %c0_64] : memref<1x4x4x1xbf16, #tpu.memory_space<vmem>>, vector<1x1x2x1xbf16>
      %72 = vector.shape_cast %71 : vector<1x1x2x1xbf16> to vector<2x1xbf16>
      %cst_65 = arith.constant dense<0.000000e+00> : vector<2x8xf32>
      %73 = tpu.matmul %72, %17, %cst_65 {dimension_numbers = #tpu.dot_dimension_numbers<[1], [0], [0], [1], [0, 0, 1, 1], [], []>} : vector<2x1xbf16>, vector<1x8xbf16>, vector<2x8xf32> -> vector<2x8xf32>
      %74 = arith.addf %68, %73 : vector<2x8xf32>
      %75 = vector.broadcast %18 : vector<1x8xf32> to vector<2x8xf32>
      %76 = arith.addf %74, %75 : vector<2x8xf32>
      %77 = arith.truncf %76 : vector<2x8xf32> to vector<2x8xbf16>
      %c0_66 = arith.constant 0 : index
      %78 = arith.index_cast %arg5 : i32 to index
      %c0_67 = arith.constant 0 : index
      %c0_68 = arith.constant 0 : index
      %79 = vector.load %arg4[%c0_66, %78, %c0_67, %c0_68] : memref<1x2x2x8xbf16, #tpu.memory_space<vmem>>, vector<1x1x2x8xbf16>
      %80 = vector.shape_cast %79 : vector<1x1x2x8xbf16> to vector<2x8xbf16>
      %81 = vector.shape_cast %77 : vector<2x8xbf16> to vector<1x1x2x8xbf16>
      tpu.vector_store %arg4[%c0_66, %78, %c0_67, %c0_68], %81 {strides = array<i32>} : memref<1x2x2x8xbf16, #tpu.memory_space<vmem>>, vector<1x1x2x8xbf16>,
    }
    %c2_i32_20 = arith.constant 2 : i32
    return
  }
  func.func @transform_0(%arg0: i32) -> (i32, i32, i32, i32) {
    %c0_i32 = arith.constant 0 : i32
    %c0_i32_0 = arith.constant 0 : i32
    %c0_i32_1 = arith.constant 0 : i32
    %c0_i32_2 = arith.constant 0 : i32
    return %arg0, %c0_i32, %c0_i32_0, %c0_i32_1 : i32, i32, i32, i32
  }
  func.func @transform_1(%arg0: i32) -> (i32, i32, i32) {
    %c0_i32 = arith.constant 0 : i32
    %c0_i32_0 = arith.constant 0 : i32
    %c0_i32_1 = arith.constant 0 : i32
    %c0_i32_2 = arith.constant 0 : i32
    return %c0_i32, %c0_i32_0, %c0_i32_1 : i32, i32, i32
  }
  func.func @transform_2(%arg0: i32) -> (i32, i32) {
    %c0_i32 = arith.constant 0 : i32
    %c0_i32_0 = arith.constant 0 : i32
    %c0_i32_1 = arith.constant 0 : i32
    return %c0_i32, %c0_i32_0 : i32, i32
  }
  func.func @transform_3(%arg0: i32) -> (i32, i32, i32, i32) {
    %c0_i32 = arith.constant 0 : i32
    %c0_i32_0 = arith.constant 0 : i32
    %c0_i32_1 = arith.constant 0 : i32
    %c0_i32_2 = arith.constant 0 : i32
    return %arg0, %c0_i32, %c0_i32_0, %c0_i32_1 : i32, i32, i32, i32
  }
}

module attributes {stable_mosaic.version = 11 : i64} {
  func.func @_conv_kernel(%arg0: i32, %arg1: memref<1x4x4x8xbf16, #tpu.memory_space<vmem>>, %arg2: memref<9x8x16xbf16, #tpu.memory_space<vmem>>, %arg3: memref<1x16xf32, #tpu.memory_space<vmem>>, %arg4: memref<1x2x2x16xbf16, #tpu.memory_space<vmem>>) attributes {dimension_semantics = [#tpu.dimension_semantics<parallel>], iteration_bounds = array<i64: 2>, scalar_prefetch = 0 : i64, scratch_operands = 0 : i64, tpu.core_type = #tpu.core_type<tc>, window_params = [{transform_indices = @transform_0, window_bounds = array<i64: 1, 4, 4, 8>}, {pipeline_mode = #tpu.pipeline_mode<synchronous>, transform_indices = @transform_1, window_bounds = array<i64: 9, 8, 16>}, {pipeline_mode = #tpu.pipeline_mode<synchronous>, transform_indices = @transform_2, window_bounds = array<i64: 1, 16>}, {transform_indices = @transform_3, window_bounds = array<i64: 1, 2, 2, 16>}]} {
    %c0 = arith.constant 0 : index
    %c0_0 = arith.constant 0 : index
    %c0_1 = arith.constant 0 : index
    %0 = vector.load %arg2[%c0, %c0_0, %c0_1] : memref<9x8x16xbf16, #tpu.memory_space<vmem>>, vector<1x8x16xbf16>
    %1 = vector.shape_cast %0 : vector<1x8x16xbf16> to vector<8x16xbf16>
    %c1 = arith.constant 1 : index
    %c0_2 = arith.constant 0 : index
    %c0_3 = arith.constant 0 : index
    %2 = vector.load %arg2[%c1, %c0_2, %c0_3] : memref<9x8x16xbf16, #tpu.memory_space<vmem>>, vector<1x8x16xbf16>
    %3 = vector.shape_cast %2 : vector<1x8x16xbf16> to vector<8x16xbf16>
    %c2 = arith.constant 2 : index
    %c0_4 = arith.constant 0 : index
    %c0_5 = arith.constant 0 : index
    %4 = vector.load %arg2[%c2, %c0_4, %c0_5] : memref<9x8x16xbf16, #tpu.memory_space<vmem>>, vector<1x8x16xbf16>
    %5 = vector.shape_cast %4 : vector<1x8x16xbf16> to vector<8x16xbf16>
    %c3 = arith.constant 3 : index
    %c0_6 = arith.constant 0 : index
    %c0_7 = arith.constant 0 : index
    %6 = vector.load %arg2[%c3, %c0_6, %c0_7] : memref<9x8x16xbf16, #tpu.memory_space<vmem>>, vector<1x8x16xbf16>
    %7 = vector.shape_cast %6 : vector<1x8x16xbf16> to vector<8x16xbf16>
    %c4 = arith.constant 4 : index
    %c0_8 = arith.constant 0 : index
    %c0_9 = arith.constant 0 : index
    %8 = vector.load %arg2[%c4, %c0_8, %c0_9] : memref<9x8x16xbf16, #tpu.memory_space<vmem>>, vector<1x8x16xbf16>
    %9 = vector.shape_cast %8 : vector<1x8x16xbf16> to vector<8x16xbf16>
    %c5 = arith.constant 5 : index
    %c0_10 = arith.constant 0 : index
    %c0_11 = arith.constant 0 : index
    %10 = vector.load %arg2[%c5, %c0_10, %c0_11] : memref<9x8x16xbf16, #tpu.memory_space<vmem>>, vector<1x8x16xbf16>
    %11 = vector.shape_cast %10 : vector<1x8x16xbf16> to vector<8x16xbf16>
    %c6 = arith.constant 6 : index
    %c0_12 = arith.constant 0 : index
    %c0_13 = arith.constant 0 : index
    %12 = vector.load %arg2[%c6, %c0_12, %c0_13] : memref<9x8x16xbf16, #tpu.memory_space<vmem>>, vector<1x8x16xbf16>
    %13 = vector.shape_cast %12 : vector<1x8x16xbf16> to vector<8x16xbf16>
    %c7 = arith.constant 7 : index
    %c0_14 = arith.constant 0 : index
    %c0_15 = arith.constant 0 : index
    %14 = vector.load %arg2[%c7, %c0_14, %c0_15] : memref<9x8x16xbf16, #tpu.memory_space<vmem>>, vector<1x8x16xbf16>
    %15 = vector.shape_cast %14 : vector<1x8x16xbf16> to vector<8x16xbf16>
    %c8 = arith.constant 8 : index
    %c0_16 = arith.constant 0 : index
    %c0_17 = arith.constant 0 : index
    %16 = vector.load %arg2[%c8, %c0_16, %c0_17] : memref<9x8x16xbf16, #tpu.memory_space<vmem>>, vector<1x8x16xbf16>
    %17 = vector.shape_cast %16 : vector<1x8x16xbf16> to vector<8x16xbf16>
    %c0_18 = arith.constant 0 : index
    %c0_19 = arith.constant 0 : index
    %18 = vector.load %arg3[%c0_18, %c0_19] : memref<1x16xf32, #tpu.memory_space<vmem>>, vector<1x16xf32>
    %c0_i32 = arith.constant 0 : i32
    %c2_i32 = arith.constant 2 : i32
    %19 = arith.addi %c0_i32, %c2_i32 : i32
    %c1_i32 = arith.constant 1 : i32
    scf.for %arg5 = %c0_i32 to %19 step %c1_i32  : i32 {
      %cst = arith.constant 0.000000e+00 : f32
      %20 = vector.broadcast %cst : f32 to vector<2x16xf32>
      %c0_i32_21 = arith.constant 0 : i32
      %21 = arith.addi %arg5, %c0_i32_21 : i32
      %c0_22 = arith.constant 0 : index
      %22 = arith.index_cast %21 : i32 to index
      %c0_23 = arith.constant 0 : index
      %c0_24 = arith.constant 0 : index
      %23 = vector.load %arg1[%c0_22, %22, %c0_23, %c0_24] : memref<1x4x4x8xbf16, #tpu.memory_space<vmem>>, vector<1x1x2x8xbf16>
      %24 = vector.shape_cast %23 : vector<1x1x2x8xbf16> to vector<2x8xbf16>
      %cst_25 = arith.constant 0.000000e+00 : bf16
      %25 = vector.broadcast %cst_25 : bf16 to vector<2x8xbf16>
      %26 = arith.cmpf oge, %24, %25 : vector<2x8xbf16>
      %cst_26 = arith.constant 1.000980e-02 : bf16
      %27 = vector.broadcast %cst_26 : bf16 to vector<2x8xbf16>
      %28 = arith.mulf %27, %24 : vector<2x8xbf16>
      %29 = arith.select %26, %24, %28 : vector<2x8xi1>, vector<2x8xbf16>
      %cst_27 = arith.constant dense<0.000000e+00> : vector<2x16xf32>
      %30 = tpu.matmul %29, %1, %cst_27 {dimension_numbers = #tpu.dot_dimension_numbers<[1], [0], [0], [1], [0, 0, 1, 1], [], []>} : vector<2x8xbf16>, vector<8x16xbf16>, vector<2x16xf32> -> vector<2x16xf32>
      %31 = arith.addf %20, %30 : vector<2x16xf32>
      %c0_i32_28 = arith.constant 0 : i32
      %32 = arith.addi %arg5, %c0_i32_28 : i32
      %c0_29 = arith.constant 0 : index
      %33 = arith.index_cast %32 : i32 to index
      %c1_30 = arith.constant 1 : index
      %c0_31 = arith.constant 0 : index
      %34 = vector.load %arg1[%c0_29, %33, %c1_30, %c0_31] : memref<1x4x4x8xbf16, #tpu.memory_space<vmem>>, vector<1x1x2x8xbf16>
      %35 = vector.shape_cast %34 : vector<1x1x2x8xbf16> to vector<2x8xbf16>
      %cst_32 = arith.constant 0.000000e+00 : bf16
      %36 = vector.broadcast %cst_32 : bf16 to vector<2x8xbf16>
      %37 = arith.cmpf oge, %35, %36 : vector<2x8xbf16>
      %cst_33 = arith.constant 1.000980e-02 : bf16
      %38 = vector.broadcast %cst_33 : bf16 to vector<2x8xbf16>
      %39 = arith.mulf %38, %35 : vector<2x8xbf16>
      %40 = arith.select %37, %35, %39 : vector<2x8xi1>, vector<2x8xbf16>
      %cst_34 = arith.constant dense<0.000000e+00> : vector<2x16xf32>
      %41 = tpu.matmul %40, %3, %cst_34 {dimension_numbers = #tpu.dot_dimension_numbers<[1], [0], [0], [1], [0, 0, 1, 1], [], []>} : vector<2x8xbf16>, vector<8x16xbf16>, vector<2x16xf32> -> vector<2x16xf32>
      %42 = arith.addf %31, %41 : vector<2x16xf32>
      %c0_i32_35 = arith.constant 0 : i32
      %43 = arith.addi %arg5, %c0_i32_35 : i32
      %c0_36 = arith.constant 0 : index
      %44 = arith.index_cast %43 : i32 to index
      %c2_37 = arith.constant 2 : index
      %c0_38 = arith.constant 0 : index
      %45 = vector.load %arg1[%c0_36, %44, %c2_37, %c0_38] : memref<1x4x4x8xbf16, #tpu.memory_space<vmem>>, vector<1x1x2x8xbf16>
      %46 = vector.shape_cast %45 : vector<1x1x2x8xbf16> to vector<2x8xbf16>
      %cst_39 = arith.constant 0.000000e+00 : bf16
      %47 = vector.broadcast %cst_39 : bf16 to vector<2x8xbf16>
      %48 = arith.cmpf oge, %46, %47 : vector<2x8xbf16>
      %cst_40 = arith.constant 1.000980e-02 : bf16
      %49 = vector.broadcast %cst_40 : bf16 to vector<2x8xbf16>
      %50 = arith.mulf %49, %46 : vector<2x8xbf16>
      %51 = arith.select %48, %46, %50 : vector<2x8xi1>, vector<2x8xbf16>
      %cst_41 = arith.constant dense<0.000000e+00> : vector<2x16xf32>
      %52 = tpu.matmul %51, %5, %cst_41 {dimension_numbers = #tpu.dot_dimension_numbers<[1], [0], [0], [1], [0, 0, 1, 1], [], []>} : vector<2x8xbf16>, vector<8x16xbf16>, vector<2x16xf32> -> vector<2x16xf32>
      %53 = arith.addf %42, %52 : vector<2x16xf32>
      %c1_i32_42 = arith.constant 1 : i32
      %54 = arith.addi %arg5, %c1_i32_42 : i32
      %c0_43 = arith.constant 0 : index
      %55 = arith.index_cast %54 : i32 to index
      %c0_44 = arith.constant 0 : index
      %c0_45 = arith.constant 0 : index
      %56 = vector.load %arg1[%c0_43, %55, %c0_44, %c0_45] : memref<1x4x4x8xbf16, #tpu.memory_space<vmem>>, vector<1x1x2x8xbf16>
      %57 = vector.shape_cast %56 : vector<1x1x2x8xbf16> to vector<2x8xbf16>
      %cst_46 = arith.constant 0.000000e+00 : bf16
      %58 = vector.broadcast %cst_46 : bf16 to vector<2x8xbf16>
      %59 = arith.cmpf oge, %57, %58 : vector<2x8xbf16>
      %cst_47 = arith.constant 1.000980e-02 : bf16
      %60 = vector.broadcast %cst_47 : bf16 to vector<2x8xbf16>
      %61 = arith.mulf %60, %57 : vector<2x8xbf16>
      %62 = arith.select %59, %57, %61 : vector<2x8xi1>, vector<2x8xbf16>
      %cst_48 = arith.constant dense<0.000000e+00> : vector<2x16xf32>
      %63 = tpu.matmul %62, %7, %cst_48 {dimension_numbers = #tpu.dot_dimension_numbers<[1], [0], [0], [1], [0, 0, 1, 1], [], []>} : vector<2x8xbf16>, vector<8x16xbf16>, vector<2x16xf32> -> vector<2x16xf32>
      %64 = arith.addf %53, %63 : vector<2x16xf32>
      %c1_i32_49 = arith.constant 1 : i32
      %65 = arith.addi %arg5, %c1_i32_49 : i32
      %c0_50 = arith.constant 0 : index
      %66 = arith.index_cast %65 : i32 to index
      %c1_51 = arith.constant 1 : index
      %c0_52 = arith.constant 0 : index
      %67 = vector.load %arg1[%c0_50, %66, %c1_51, %c0_52] : memref<1x4x4x8xbf16, #tpu.memory_space<vmem>>, vector<1x1x2x8xbf16>
      %68 = vector.shape_cast %67 : vector<1x1x2x8xbf16> to vector<2x8xbf16>
      %cst_53 = arith.constant 0.000000e+00 : bf16
      %69 = vector.broadcast %cst_53 : bf16 to vector<2x8xbf16>
      %70 = arith.cmpf oge, %68, %69 : vector<2x8xbf16>
      %cst_54 = arith.constant 1.000980e-02 : bf16
      %71 = vector.broadcast %cst_54 : bf16 to vector<2x8xbf16>
      %72 = arith.mulf %71, %68 : vector<2x8xbf16>
      %73 = arith.select %70, %68, %72 : vector<2x8xi1>, vector<2x8xbf16>
      %cst_55 = arith.constant dense<0.000000e+00> : vector<2x16xf32>
      %74 = tpu.matmul %73, %9, %cst_55 {dimension_numbers = #tpu.dot_dimension_numbers<[1], [0], [0], [1], [0, 0, 1, 1], [], []>} : vector<2x8xbf16>, vector<8x16xbf16>, vector<2x16xf32> -> vector<2x16xf32>
      %75 = arith.addf %64, %74 : vector<2x16xf32>
      %c1_i32_56 = arith.constant 1 : i32
      %76 = arith.addi %arg5, %c1_i32_56 : i32
      %c0_57 = arith.constant 0 : index
      %77 = arith.index_cast %76 : i32 to index
      %c2_58 = arith.constant 2 : index
      %c0_59 = arith.constant 0 : index
      %78 = vector.load %arg1[%c0_57, %77, %c2_58, %c0_59] : memref<1x4x4x8xbf16, #tpu.memory_space<vmem>>, vector<1x1x2x8xbf16>
      %79 = vector.shape_cast %78 : vector<1x1x2x8xbf16> to vector<2x8xbf16>
      %cst_60 = arith.constant 0.000000e+00 : bf16
      %80 = vector.broadcast %cst_60 : bf16 to vector<2x8xbf16>
      %81 = arith.cmpf oge, %79, %80 : vector<2x8xbf16>
      %cst_61 = arith.constant 1.000980e-02 : bf16
      %82 = vector.broadcast %cst_61 : bf16 to vector<2x8xbf16>
      %83 = arith.mulf %82, %79 : vector<2x8xbf16>
      %84 = arith.select %81, %79, %83 : vector<2x8xi1>, vector<2x8xbf16>
      %cst_62 = arith.constant dense<0.000000e+00> : vector<2x16xf32>
      %85 = tpu.matmul %84, %11, %cst_62 {dimension_numbers = #tpu.dot_dimension_numbers<[1], [0], [0], [1], [0, 0, 1, 1], [], []>} : vector<2x8xbf16>, vector<8x16xbf16>, vector<2x16xf32> -> vector<2x16xf32>
      %86 = arith.addf %75, %85 : vector<2x16xf32>
      %c2_i32_63 = arith.constant 2 : i32
      %87 = arith.addi %arg5, %c2_i32_63 : i32
      %c0_64 = arith.constant 0 : index
      %88 = arith.index_cast %87 : i32 to index
      %c0_65 = arith.constant 0 : index
      %c0_66 = arith.constant 0 : index
      %89 = vector.load %arg1[%c0_64, %88, %c0_65, %c0_66] : memref<1x4x4x8xbf16, #tpu.memory_space<vmem>>, vector<1x1x2x8xbf16>
      %90 = vector.shape_cast %89 : vector<1x1x2x8xbf16> to vector<2x8xbf16>
      %cst_67 = arith.constant 0.000000e+00 : bf16
      %91 = vector.broadcast %cst_67 : bf16 to vector<2x8xbf16>
      %92 = arith.cmpf oge, %90, %91 : vector<2x8xbf16>
      %cst_68 = arith.constant 1.000980e-02 : bf16
      %93 = vector.broadcast %cst_68 : bf16 to vector<2x8xbf16>
      %94 = arith.mulf %93, %90 : vector<2x8xbf16>
      %95 = arith.select %92, %90, %94 : vector<2x8xi1>, vector<2x8xbf16>
      %cst_69 = arith.constant dense<0.000000e+00> : vector<2x16xf32>
      %96 = tpu.matmul %95, %13, %cst_69 {dimension_numbers = #tpu.dot_dimension_numbers<[1], [0], [0], [1], [0, 0, 1, 1], [], []>} : vector<2x8xbf16>, vector<8x16xbf16>, vector<2x16xf32> -> vector<2x16xf32>
      %97 = arith.addf %86, %96 : vector<2x16xf32>
      %c2_i32_70 = arith.constant 2 : i32
      %98 = arith.addi %arg5, %c2_i32_70 : i32
      %c0_71 = arith.constant 0 : index
      %99 = arith.index_cast %98 : i32 to index
      %c1_72 = arith.constant 1 : index
      %c0_73 = arith.constant 0 : index
      %100 = vector.load %arg1[%c0_71, %99, %c1_72, %c0_73] : memref<1x4x4x8xbf16, #tpu.memory_space<vmem>>, vector<1x1x2x8xbf16>
      %101 = vector.shape_cast %100 : vector<1x1x2x8xbf16> to vector<2x8xbf16>
      %cst_74 = arith.constant 0.000000e+00 : bf16
      %102 = vector.broadcast %cst_74 : bf16 to vector<2x8xbf16>
      %103 = arith.cmpf oge, %101, %102 : vector<2x8xbf16>
      %cst_75 = arith.constant 1.000980e-02 : bf16
      %104 = vector.broadcast %cst_75 : bf16 to vector<2x8xbf16>
      %105 = arith.mulf %104, %101 : vector<2x8xbf16>
      %106 = arith.select %103, %101, %105 : vector<2x8xi1>, vector<2x8xbf16>
      %cst_76 = arith.constant dense<0.000000e+00> : vector<2x16xf32>
      %107 = tpu.matmul %106, %15, %cst_76 {dimension_numbers = #tpu.dot_dimension_numbers<[1], [0], [0], [1], [0, 0, 1, 1], [], []>} : vector<2x8xbf16>, vector<8x16xbf16>, vector<2x16xf32> -> vector<2x16xf32>
      %108 = arith.addf %97, %107 : vector<2x16xf32>
      %c2_i32_77 = arith.constant 2 : i32
      %109 = arith.addi %arg5, %c2_i32_77 : i32
      %c0_78 = arith.constant 0 : index
      %110 = arith.index_cast %109 : i32 to index
      %c2_79 = arith.constant 2 : index
      %c0_80 = arith.constant 0 : index
      %111 = vector.load %arg1[%c0_78, %110, %c2_79, %c0_80] : memref<1x4x4x8xbf16, #tpu.memory_space<vmem>>, vector<1x1x2x8xbf16>
      %112 = vector.shape_cast %111 : vector<1x1x2x8xbf16> to vector<2x8xbf16>
      %cst_81 = arith.constant 0.000000e+00 : bf16
      %113 = vector.broadcast %cst_81 : bf16 to vector<2x8xbf16>
      %114 = arith.cmpf oge, %112, %113 : vector<2x8xbf16>
      %cst_82 = arith.constant 1.000980e-02 : bf16
      %115 = vector.broadcast %cst_82 : bf16 to vector<2x8xbf16>
      %116 = arith.mulf %115, %112 : vector<2x8xbf16>
      %117 = arith.select %114, %112, %116 : vector<2x8xi1>, vector<2x8xbf16>
      %cst_83 = arith.constant dense<0.000000e+00> : vector<2x16xf32>
      %118 = tpu.matmul %117, %17, %cst_83 {dimension_numbers = #tpu.dot_dimension_numbers<[1], [0], [0], [1], [0, 0, 1, 1], [], []>} : vector<2x8xbf16>, vector<8x16xbf16>, vector<2x16xf32> -> vector<2x16xf32>
      %119 = arith.addf %108, %118 : vector<2x16xf32>
      %120 = vector.broadcast %18 : vector<1x16xf32> to vector<2x16xf32>
      %121 = arith.addf %119, %120 : vector<2x16xf32>
      %122 = arith.truncf %121 : vector<2x16xf32> to vector<2x16xbf16>
      %c0_84 = arith.constant 0 : index
      %123 = arith.index_cast %arg5 : i32 to index
      %c0_85 = arith.constant 0 : index
      %c0_86 = arith.constant 0 : index
      %124 = vector.load %arg4[%c0_84, %123, %c0_85, %c0_86] : memref<1x2x2x16xbf16, #tpu.memory_space<vmem>>, vector<1x1x2x16xbf16>
      %125 = vector.shape_cast %124 : vector<1x1x2x16xbf16> to vector<2x16xbf16>
      %126 = vector.shape_cast %122 : vector<2x16xbf16> to vector<1x1x2x16xbf16>
      tpu.vector_store %arg4[%c0_84, %123, %c0_85, %c0_86], %126 {strides = array<i32>} : memref<1x2x2x16xbf16, #tpu.memory_space<vmem>>, vector<1x1x2x16xbf16>,
    }
    %c2_i32_20 = arith.constant 2 : i32
    return
  }
  func.func @transform_0(%arg0: i32) -> (i32, i32, i32, i32) {
    %c0_i32 = arith.constant 0 : i32
    %c0_i32_0 = arith.constant 0 : i32
    %c0_i32_1 = arith.constant 0 : i32
    %c0_i32_2 = arith.constant 0 : i32
    return %arg0, %c0_i32, %c0_i32_0, %c0_i32_1 : i32, i32, i32, i32
  }
  func.func @transform_1(%arg0: i32) -> (i32, i32, i32) {
    %c0_i32 = arith.constant 0 : i32
    %c0_i32_0 = arith.constant 0 : i32
    %c0_i32_1 = arith.constant 0 : i32
    %c0_i32_2 = arith.constant 0 : i32
    return %c0_i32, %c0_i32_0, %c0_i32_1 : i32, i32, i32
  }
  func.func @transform_2(%arg0: i32) -> (i32, i32) {
    %c0_i32 = arith.constant 0 : i32
    %c0_i32_0 = arith.constant 0 : i32
    %c0_i32_1 = arith.constant 0 : i32
    return %c0_i32, %c0_i32_0 : i32, i32
  }
  func.func @transform_3(%arg0: i32) -> (i32, i32, i32, i32) {
    %c0_i32 = arith.constant 0 : i32
    %c0_i32_0 = arith.constant 0 : i32
    %c0_i32_1 = arith.constant 0 : i32
    %c0_i32_2 = arith.constant 0 : i32
    return %arg0, %c0_i32, %c0_i32_0, %c0_i32_1 : i32, i32, i32, i32
  }
}

module attributes {stable_mosaic.version = 11 : i64} {
  func.func @_conv_kernel(%arg0: i32, %arg1: memref<1x2x2x16xbf16, #tpu.memory_space<vmem>>, %arg2: memref<1x16x8xbf16, #tpu.memory_space<vmem>>, %arg3: memref<1x8xf32, #tpu.memory_space<vmem>>, %arg4: memref<1x2x2x8xbf16, #tpu.memory_space<vmem>>, %arg5: memref<1x2x2x8xbf16, #tpu.memory_space<vmem>>) attributes {dimension_semantics = [#tpu.dimension_semantics<parallel>], iteration_bounds = array<i64: 2>, scalar_prefetch = 0 : i64, scratch_operands = 0 : i64, tpu.core_type = #tpu.core_type<tc>, window_params = [{transform_indices = @transform_0, window_bounds = array<i64: 1, 2, 2, 16>}, {pipeline_mode = #tpu.pipeline_mode<synchronous>, transform_indices = @transform_1, window_bounds = array<i64: 1, 16, 8>}, {pipeline_mode = #tpu.pipeline_mode<synchronous>, transform_indices = @transform_2, window_bounds = array<i64: 1, 8>}, {transform_indices = @transform_3, window_bounds = array<i64: 1, 2, 2, 8>}, {transform_indices = @transform_4, window_bounds = array<i64: 1, 2, 2, 8>}]} {
    %c0 = arith.constant 0 : index
    %c0_0 = arith.constant 0 : index
    %c0_1 = arith.constant 0 : index
    %0 = vector.load %arg2[%c0, %c0_0, %c0_1] : memref<1x16x8xbf16, #tpu.memory_space<vmem>>, vector<1x16x8xbf16>
    %1 = vector.shape_cast %0 : vector<1x16x8xbf16> to vector<16x8xbf16>
    %c0_2 = arith.constant 0 : index
    %c0_3 = arith.constant 0 : index
    %2 = vector.load %arg3[%c0_2, %c0_3] : memref<1x8xf32, #tpu.memory_space<vmem>>, vector<1x8xf32>
    %c0_i32 = arith.constant 0 : i32
    %c2_i32 = arith.constant 2 : i32
    %3 = arith.addi %c0_i32, %c2_i32 : i32
    %c1_i32 = arith.constant 1 : i32
    scf.for %arg6 = %c0_i32 to %3 step %c1_i32  : i32 {
      %cst = arith.constant 0.000000e+00 : f32
      %4 = vector.broadcast %cst : f32 to vector<2x8xf32>
      %c0_i32_5 = arith.constant 0 : i32
      %5 = arith.addi %arg6, %c0_i32_5 : i32
      %c0_6 = arith.constant 0 : index
      %6 = arith.index_cast %5 : i32 to index
      %c0_7 = arith.constant 0 : index
      %c0_8 = arith.constant 0 : index
      %7 = vector.load %arg1[%c0_6, %6, %c0_7, %c0_8] : memref<1x2x2x16xbf16, #tpu.memory_space<vmem>>, vector<1x1x2x16xbf16>
      %8 = vector.shape_cast %7 : vector<1x1x2x16xbf16> to vector<2x16xbf16>
      %cst_9 = arith.constant 0.000000e+00 : bf16
      %9 = vector.broadcast %cst_9 : bf16 to vector<2x16xbf16>
      %10 = arith.cmpf oge, %8, %9 : vector<2x16xbf16>
      %cst_10 = arith.constant 1.000980e-02 : bf16
      %11 = vector.broadcast %cst_10 : bf16 to vector<2x16xbf16>
      %12 = arith.mulf %11, %8 : vector<2x16xbf16>
      %13 = arith.select %10, %8, %12 : vector<2x16xi1>, vector<2x16xbf16>
      %cst_11 = arith.constant dense<0.000000e+00> : vector<2x8xf32>
      %14 = tpu.matmul %13, %1, %cst_11 {dimension_numbers = #tpu.dot_dimension_numbers<[1], [0], [0], [1], [0, 0, 1, 1], [], []>} : vector<2x16xbf16>, vector<16x8xbf16>, vector<2x8xf32> -> vector<2x8xf32>
      %15 = arith.addf %4, %14 : vector<2x8xf32>
      %16 = vector.broadcast %2 : vector<1x8xf32> to vector<2x8xf32>
      %17 = arith.addf %15, %16 : vector<2x8xf32>
      %c0_12 = arith.constant 0 : index
      %18 = arith.index_cast %arg6 : i32 to index
      %c0_13 = arith.constant 0 : index
      %c0_14 = arith.constant 0 : index
      %19 = vector.load %arg4[%c0_12, %18, %c0_13, %c0_14] : memref<1x2x2x8xbf16, #tpu.memory_space<vmem>>, vector<1x1x2x8xbf16>
      %20 = vector.shape_cast %19 : vector<1x1x2x8xbf16> to vector<2x8xbf16>
      %21 = arith.extf %20 : vector<2x8xbf16> to vector<2x8xf32>
      %22 = arith.addf %17, %21 : vector<2x8xf32>
      %23 = arith.truncf %22 : vector<2x8xf32> to vector<2x8xbf16>
      %c0_15 = arith.constant 0 : index
      %24 = arith.index_cast %arg6 : i32 to index
      %c0_16 = arith.constant 0 : index
      %c0_17 = arith.constant 0 : index
      %25 = vector.load %arg5[%c0_15, %24, %c0_16, %c0_17] : memref<1x2x2x8xbf16, #tpu.memory_space<vmem>>, vector<1x1x2x8xbf16>
      %26 = vector.shape_cast %25 : vector<1x1x2x8xbf16> to vector<2x8xbf16>
      %27 = vector.shape_cast %23 : vector<2x8xbf16> to vector<1x1x2x8xbf16>
      tpu.vector_store %arg5[%c0_15, %24, %c0_16, %c0_17], %27 {strides = array<i32>} : memref<1x2x2x8xbf16, #tpu.memory_space<vmem>>, vector<1x1x2x8xbf16>,
    }
    %c2_i32_4 = arith.constant 2 : i32
    return
  }
  func.func @transform_0(%arg0: i32) -> (i32, i32, i32, i32) {
    %c0_i32 = arith.constant 0 : i32
    %c0_i32_0 = arith.constant 0 : i32
    %c0_i32_1 = arith.constant 0 : i32
    %c0_i32_2 = arith.constant 0 : i32
    return %arg0, %c0_i32, %c0_i32_0, %c0_i32_1 : i32, i32, i32, i32
  }
  func.func @transform_1(%arg0: i32) -> (i32, i32, i32) {
    %c0_i32 = arith.constant 0 : i32
    %c0_i32_0 = arith.constant 0 : i32
    %c0_i32_1 = arith.constant 0 : i32
    %c0_i32_2 = arith.constant 0 : i32
    return %c0_i32, %c0_i32_0, %c0_i32_1 : i32, i32, i32
  }
  func.func @transform_2(%arg0: i32) -> (i32, i32) {
    %c0_i32 = arith.constant 0 : i32
    %c0_i32_0 = arith.constant 0 : i32
    %c0_i32_1 = arith.constant 0 : i32
    return %c0_i32, %c0_i32_0 : i32, i32
  }
  func.func @transform_3(%arg0: i32) -> (i32, i32, i32, i32) {
    %c0_i32 = arith.constant 0 : i32
    %c0_i32_0 = arith.constant 0 : i32
    %c0_i32_1 = arith.constant 0 : i32
    %c0_i32_2 = arith.constant 0 : i32
    return %arg0, %c0_i32, %c0_i32_0, %c0_i32_1 : i32, i32, i32, i32
  }
  func.func @transform_4(%arg0: i32) -> (i32, i32, i32, i32) {
    %c0_i32 = arith.constant 0 : i32
    %c0_i32_0 = arith.constant 0 : i32
    %c0_i32_1 = arith.constant 0 : i32
    %c0_i32_2 = arith.constant 0 : i32
    return %arg0, %c0_i32, %c0_i32_0, %c0_i32_1 : i32, i32, i32, i32
  }
}

module attributes {stable_mosaic.version = 11 : i64} {
  func.func @_conv_kernel(%arg0: i32, %arg1: memref<1x4x4x8xbf16, #tpu.memory_space<vmem>>, %arg2: memref<9x8x16xbf16, #tpu.memory_space<vmem>>, %arg3: memref<1x16xf32, #tpu.memory_space<vmem>>, %arg4: memref<1x2x2x2x8xbf16, #tpu.memory_space<vmem>>) attributes {dimension_semantics = [#tpu.dimension_semantics<parallel>], iteration_bounds = array<i64: 2>, scalar_prefetch = 0 : i64, scratch_operands = 0 : i64, tpu.core_type = #tpu.core_type<tc>, window_params = [{transform_indices = @transform_0, window_bounds = array<i64: 1, 4, 4, 8>}, {pipeline_mode = #tpu.pipeline_mode<synchronous>, transform_indices = @transform_1, window_bounds = array<i64: 9, 8, 16>}, {pipeline_mode = #tpu.pipeline_mode<synchronous>, transform_indices = @transform_2, window_bounds = array<i64: 1, 16>}, {transform_indices = @transform_3, window_bounds = array<i64: 1, 2, 2, 2, 8>}]} {
    %c0 = arith.constant 0 : index
    %c0_0 = arith.constant 0 : index
    %c0_1 = arith.constant 0 : index
    %0 = vector.load %arg2[%c0, %c0_0, %c0_1] : memref<9x8x16xbf16, #tpu.memory_space<vmem>>, vector<1x8x16xbf16>
    %1 = vector.shape_cast %0 : vector<1x8x16xbf16> to vector<8x16xbf16>
    %c1 = arith.constant 1 : index
    %c0_2 = arith.constant 0 : index
    %c0_3 = arith.constant 0 : index
    %2 = vector.load %arg2[%c1, %c0_2, %c0_3] : memref<9x8x16xbf16, #tpu.memory_space<vmem>>, vector<1x8x16xbf16>
    %3 = vector.shape_cast %2 : vector<1x8x16xbf16> to vector<8x16xbf16>
    %c2 = arith.constant 2 : index
    %c0_4 = arith.constant 0 : index
    %c0_5 = arith.constant 0 : index
    %4 = vector.load %arg2[%c2, %c0_4, %c0_5] : memref<9x8x16xbf16, #tpu.memory_space<vmem>>, vector<1x8x16xbf16>
    %5 = vector.shape_cast %4 : vector<1x8x16xbf16> to vector<8x16xbf16>
    %c3 = arith.constant 3 : index
    %c0_6 = arith.constant 0 : index
    %c0_7 = arith.constant 0 : index
    %6 = vector.load %arg2[%c3, %c0_6, %c0_7] : memref<9x8x16xbf16, #tpu.memory_space<vmem>>, vector<1x8x16xbf16>
    %7 = vector.shape_cast %6 : vector<1x8x16xbf16> to vector<8x16xbf16>
    %c4 = arith.constant 4 : index
    %c0_8 = arith.constant 0 : index
    %c0_9 = arith.constant 0 : index
    %8 = vector.load %arg2[%c4, %c0_8, %c0_9] : memref<9x8x16xbf16, #tpu.memory_space<vmem>>, vector<1x8x16xbf16>
    %9 = vector.shape_cast %8 : vector<1x8x16xbf16> to vector<8x16xbf16>
    %c5 = arith.constant 5 : index
    %c0_10 = arith.constant 0 : index
    %c0_11 = arith.constant 0 : index
    %10 = vector.load %arg2[%c5, %c0_10, %c0_11] : memref<9x8x16xbf16, #tpu.memory_space<vmem>>, vector<1x8x16xbf16>
    %11 = vector.shape_cast %10 : vector<1x8x16xbf16> to vector<8x16xbf16>
    %c6 = arith.constant 6 : index
    %c0_12 = arith.constant 0 : index
    %c0_13 = arith.constant 0 : index
    %12 = vector.load %arg2[%c6, %c0_12, %c0_13] : memref<9x8x16xbf16, #tpu.memory_space<vmem>>, vector<1x8x16xbf16>
    %13 = vector.shape_cast %12 : vector<1x8x16xbf16> to vector<8x16xbf16>
    %c7 = arith.constant 7 : index
    %c0_14 = arith.constant 0 : index
    %c0_15 = arith.constant 0 : index
    %14 = vector.load %arg2[%c7, %c0_14, %c0_15] : memref<9x8x16xbf16, #tpu.memory_space<vmem>>, vector<1x8x16xbf16>
    %15 = vector.shape_cast %14 : vector<1x8x16xbf16> to vector<8x16xbf16>
    %c8 = arith.constant 8 : index
    %c0_16 = arith.constant 0 : index
    %c0_17 = arith.constant 0 : index
    %16 = vector.load %arg2[%c8, %c0_16, %c0_17] : memref<9x8x16xbf16, #tpu.memory_space<vmem>>, vector<1x8x16xbf16>
    %17 = vector.shape_cast %16 : vector<1x8x16xbf16> to vector<8x16xbf16>
    %c0_18 = arith.constant 0 : index
    %c0_19 = arith.constant 0 : index
    %18 = vector.load %arg3[%c0_18, %c0_19] : memref<1x16xf32, #tpu.memory_space<vmem>>, vector<1x16xf32>
    %c0_i32 = arith.constant 0 : i32
    %c2_i32 = arith.constant 2 : i32
    %19 = arith.addi %c0_i32, %c2_i32 : i32
    %c1_i32 = arith.constant 1 : i32
    scf.for %arg5 = %c0_i32 to %19 step %c1_i32  : i32 {
      %cst = arith.constant 0.000000e+00 : f32
      %20 = vector.broadcast %cst : f32 to vector<2x16xf32>
      %c0_i32_21 = arith.constant 0 : i32
      %21 = arith.addi %arg5, %c0_i32_21 : i32
      %c0_22 = arith.constant 0 : index
      %22 = arith.index_cast %21 : i32 to index
      %c0_23 = arith.constant 0 : index
      %c0_24 = arith.constant 0 : index
      %23 = vector.load %arg1[%c0_22, %22, %c0_23, %c0_24] : memref<1x4x4x8xbf16, #tpu.memory_space<vmem>>, vector<1x1x2x8xbf16>
      %24 = vector.shape_cast %23 : vector<1x1x2x8xbf16> to vector<2x8xbf16>
      %cst_25 = arith.constant 0.000000e+00 : bf16
      %25 = vector.broadcast %cst_25 : bf16 to vector<2x8xbf16>
      %26 = arith.cmpf oge, %24, %25 : vector<2x8xbf16>
      %cst_26 = arith.constant 1.000980e-02 : bf16
      %27 = vector.broadcast %cst_26 : bf16 to vector<2x8xbf16>
      %28 = arith.mulf %27, %24 : vector<2x8xbf16>
      %29 = arith.select %26, %24, %28 : vector<2x8xi1>, vector<2x8xbf16>
      %cst_27 = arith.constant dense<0.000000e+00> : vector<2x16xf32>
      %30 = tpu.matmul %29, %1, %cst_27 {dimension_numbers = #tpu.dot_dimension_numbers<[1], [0], [0], [1], [0, 0, 1, 1], [], []>} : vector<2x8xbf16>, vector<8x16xbf16>, vector<2x16xf32> -> vector<2x16xf32>
      %31 = arith.addf %20, %30 : vector<2x16xf32>
      %c0_i32_28 = arith.constant 0 : i32
      %32 = arith.addi %arg5, %c0_i32_28 : i32
      %c0_29 = arith.constant 0 : index
      %33 = arith.index_cast %32 : i32 to index
      %c1_30 = arith.constant 1 : index
      %c0_31 = arith.constant 0 : index
      %34 = vector.load %arg1[%c0_29, %33, %c1_30, %c0_31] : memref<1x4x4x8xbf16, #tpu.memory_space<vmem>>, vector<1x1x2x8xbf16>
      %35 = vector.shape_cast %34 : vector<1x1x2x8xbf16> to vector<2x8xbf16>
      %cst_32 = arith.constant 0.000000e+00 : bf16
      %36 = vector.broadcast %cst_32 : bf16 to vector<2x8xbf16>
      %37 = arith.cmpf oge, %35, %36 : vector<2x8xbf16>
      %cst_33 = arith.constant 1.000980e-02 : bf16
      %38 = vector.broadcast %cst_33 : bf16 to vector<2x8xbf16>
      %39 = arith.mulf %38, %35 : vector<2x8xbf16>
      %40 = arith.select %37, %35, %39 : vector<2x8xi1>, vector<2x8xbf16>
      %cst_34 = arith.constant dense<0.000000e+00> : vector<2x16xf32>
      %41 = tpu.matmul %40, %3, %cst_34 {dimension_numbers = #tpu.dot_dimension_numbers<[1], [0], [0], [1], [0, 0, 1, 1], [], []>} : vector<2x8xbf16>, vector<8x16xbf16>, vector<2x16xf32> -> vector<2x16xf32>
      %42 = arith.addf %31, %41 : vector<2x16xf32>
      %c0_i32_35 = arith.constant 0 : i32
      %43 = arith.addi %arg5, %c0_i32_35 : i32
      %c0_36 = arith.constant 0 : index
      %44 = arith.index_cast %43 : i32 to index
      %c2_37 = arith.constant 2 : index
      %c0_38 = arith.constant 0 : index
      %45 = vector.load %arg1[%c0_36, %44, %c2_37, %c0_38] : memref<1x4x4x8xbf16, #tpu.memory_space<vmem>>, vector<1x1x2x8xbf16>
      %46 = vector.shape_cast %45 : vector<1x1x2x8xbf16> to vector<2x8xbf16>
      %cst_39 = arith.constant 0.000000e+00 : bf16
      %47 = vector.broadcast %cst_39 : bf16 to vector<2x8xbf16>
      %48 = arith.cmpf oge, %46, %47 : vector<2x8xbf16>
      %cst_40 = arith.constant 1.000980e-02 : bf16
      %49 = vector.broadcast %cst_40 : bf16 to vector<2x8xbf16>
      %50 = arith.mulf %49, %46 : vector<2x8xbf16>
      %51 = arith.select %48, %46, %50 : vector<2x8xi1>, vector<2x8xbf16>
      %cst_41 = arith.constant dense<0.000000e+00> : vector<2x16xf32>
      %52 = tpu.matmul %51, %5, %cst_41 {dimension_numbers = #tpu.dot_dimension_numbers<[1], [0], [0], [1], [0, 0, 1, 1], [], []>} : vector<2x8xbf16>, vector<8x16xbf16>, vector<2x16xf32> -> vector<2x16xf32>
      %53 = arith.addf %42, %52 : vector<2x16xf32>
      %c1_i32_42 = arith.constant 1 : i32
      %54 = arith.addi %arg5, %c1_i32_42 : i32
      %c0_43 = arith.constant 0 : index
      %55 = arith.index_cast %54 : i32 to index
      %c0_44 = arith.constant 0 : index
      %c0_45 = arith.constant 0 : index
      %56 = vector.load %arg1[%c0_43, %55, %c0_44, %c0_45] : memref<1x4x4x8xbf16, #tpu.memory_space<vmem>>, vector<1x1x2x8xbf16>
      %57 = vector.shape_cast %56 : vector<1x1x2x8xbf16> to vector<2x8xbf16>
      %cst_46 = arith.constant 0.000000e+00 : bf16
      %58 = vector.broadcast %cst_46 : bf16 to vector<2x8xbf16>
      %59 = arith.cmpf oge, %57, %58 : vector<2x8xbf16>
      %cst_47 = arith.constant 1.000980e-02 : bf16
      %60 = vector.broadcast %cst_47 : bf16 to vector<2x8xbf16>
      %61 = arith.mulf %60, %57 : vector<2x8xbf16>
      %62 = arith.select %59, %57, %61 : vector<2x8xi1>, vector<2x8xbf16>
      %cst_48 = arith.constant dense<0.000000e+00> : vector<2x16xf32>
      %63 = tpu.matmul %62, %7, %cst_48 {dimension_numbers = #tpu.dot_dimension_numbers<[1], [0], [0], [1], [0, 0, 1, 1], [], []>} : vector<2x8xbf16>, vector<8x16xbf16>, vector<2x16xf32> -> vector<2x16xf32>
      %64 = arith.addf %53, %63 : vector<2x16xf32>
      %c1_i32_49 = arith.constant 1 : i32
      %65 = arith.addi %arg5, %c1_i32_49 : i32
      %c0_50 = arith.constant 0 : index
      %66 = arith.index_cast %65 : i32 to index
      %c1_51 = arith.constant 1 : index
      %c0_52 = arith.constant 0 : index
      %67 = vector.load %arg1[%c0_50, %66, %c1_51, %c0_52] : memref<1x4x4x8xbf16, #tpu.memory_space<vmem>>, vector<1x1x2x8xbf16>
      %68 = vector.shape_cast %67 : vector<1x1x2x8xbf16> to vector<2x8xbf16>
      %cst_53 = arith.constant 0.000000e+00 : bf16
      %69 = vector.broadcast %cst_53 : bf16 to vector<2x8xbf16>
      %70 = arith.cmpf oge, %68, %69 : vector<2x8xbf16>
      %cst_54 = arith.constant 1.000980e-02 : bf16
      %71 = vector.broadcast %cst_54 : bf16 to vector<2x8xbf16>
      %72 = arith.mulf %71, %68 : vector<2x8xbf16>
      %73 = arith.select %70, %68, %72 : vector<2x8xi1>, vector<2x8xbf16>
      %cst_55 = arith.constant dense<0.000000e+00> : vector<2x16xf32>
      %74 = tpu.matmul %73, %9, %cst_55 {dimension_numbers = #tpu.dot_dimension_numbers<[1], [0], [0], [1], [0, 0, 1, 1], [], []>} : vector<2x8xbf16>, vector<8x16xbf16>, vector<2x16xf32> -> vector<2x16xf32>
      %75 = arith.addf %64, %74 : vector<2x16xf32>
      %c1_i32_56 = arith.constant 1 : i32
      %76 = arith.addi %arg5, %c1_i32_56 : i32
      %c0_57 = arith.constant 0 : index
      %77 = arith.index_cast %76 : i32 to index
      %c2_58 = arith.constant 2 : index
      %c0_59 = arith.constant 0 : index
      %78 = vector.load %arg1[%c0_57, %77, %c2_58, %c0_59] : memref<1x4x4x8xbf16, #tpu.memory_space<vmem>>, vector<1x1x2x8xbf16>
      %79 = vector.shape_cast %78 : vector<1x1x2x8xbf16> to vector<2x8xbf16>
      %cst_60 = arith.constant 0.000000e+00 : bf16
      %80 = vector.broadcast %cst_60 : bf16 to vector<2x8xbf16>
      %81 = arith.cmpf oge, %79, %80 : vector<2x8xbf16>
      %cst_61 = arith.constant 1.000980e-02 : bf16
      %82 = vector.broadcast %cst_61 : bf16 to vector<2x8xbf16>
      %83 = arith.mulf %82, %79 : vector<2x8xbf16>
      %84 = arith.select %81, %79, %83 : vector<2x8xi1>, vector<2x8xbf16>
      %cst_62 = arith.constant dense<0.000000e+00> : vector<2x16xf32>
      %85 = tpu.matmul %84, %11, %cst_62 {dimension_numbers = #tpu.dot_dimension_numbers<[1], [0], [0], [1], [0, 0, 1, 1], [], []>} : vector<2x8xbf16>, vector<8x16xbf16>, vector<2x16xf32> -> vector<2x16xf32>
      %86 = arith.addf %75, %85 : vector<2x16xf32>
      %c2_i32_63 = arith.constant 2 : i32
      %87 = arith.addi %arg5, %c2_i32_63 : i32
      %c0_64 = arith.constant 0 : index
      %88 = arith.index_cast %87 : i32 to index
      %c0_65 = arith.constant 0 : index
      %c0_66 = arith.constant 0 : index
      %89 = vector.load %arg1[%c0_64, %88, %c0_65, %c0_66] : memref<1x4x4x8xbf16, #tpu.memory_space<vmem>>, vector<1x1x2x8xbf16>
      %90 = vector.shape_cast %89 : vector<1x1x2x8xbf16> to vector<2x8xbf16>
      %cst_67 = arith.constant 0.000000e+00 : bf16
      %91 = vector.broadcast %cst_67 : bf16 to vector<2x8xbf16>
      %92 = arith.cmpf oge, %90, %91 : vector<2x8xbf16>
      %cst_68 = arith.constant 1.000980e-02 : bf16
      %93 = vector.broadcast %cst_68 : bf16 to vector<2x8xbf16>
      %94 = arith.mulf %93, %90 : vector<2x8xbf16>
      %95 = arith.select %92, %90, %94 : vector<2x8xi1>, vector<2x8xbf16>
      %cst_69 = arith.constant dense<0.000000e+00> : vector<2x16xf32>
      %96 = tpu.matmul %95, %13, %cst_69 {dimension_numbers = #tpu.dot_dimension_numbers<[1], [0], [0], [1], [0, 0, 1, 1], [], []>} : vector<2x8xbf16>, vector<8x16xbf16>, vector<2x16xf32> -> vector<2x16xf32>
      %97 = arith.addf %86, %96 : vector<2x16xf32>
      %c2_i32_70 = arith.constant 2 : i32
      %98 = arith.addi %arg5, %c2_i32_70 : i32
      %c0_71 = arith.constant 0 : index
      %99 = arith.index_cast %98 : i32 to index
      %c1_72 = arith.constant 1 : index
      %c0_73 = arith.constant 0 : index
      %100 = vector.load %arg1[%c0_71, %99, %c1_72, %c0_73] : memref<1x4x4x8xbf16, #tpu.memory_space<vmem>>, vector<1x1x2x8xbf16>
      %101 = vector.shape_cast %100 : vector<1x1x2x8xbf16> to vector<2x8xbf16>
      %cst_74 = arith.constant 0.000000e+00 : bf16
      %102 = vector.broadcast %cst_74 : bf16 to vector<2x8xbf16>
      %103 = arith.cmpf oge, %101, %102 : vector<2x8xbf16>
      %cst_75 = arith.constant 1.000980e-02 : bf16
      %104 = vector.broadcast %cst_75 : bf16 to vector<2x8xbf16>
      %105 = arith.mulf %104, %101 : vector<2x8xbf16>
      %106 = arith.select %103, %101, %105 : vector<2x8xi1>, vector<2x8xbf16>
      %cst_76 = arith.constant dense<0.000000e+00> : vector<2x16xf32>
      %107 = tpu.matmul %106, %15, %cst_76 {dimension_numbers = #tpu.dot_dimension_numbers<[1], [0], [0], [1], [0, 0, 1, 1], [], []>} : vector<2x8xbf16>, vector<8x16xbf16>, vector<2x16xf32> -> vector<2x16xf32>
      %108 = arith.addf %97, %107 : vector<2x16xf32>
      %c2_i32_77 = arith.constant 2 : i32
      %109 = arith.addi %arg5, %c2_i32_77 : i32
      %c0_78 = arith.constant 0 : index
      %110 = arith.index_cast %109 : i32 to index
      %c2_79 = arith.constant 2 : index
      %c0_80 = arith.constant 0 : index
      %111 = vector.load %arg1[%c0_78, %110, %c2_79, %c0_80] : memref<1x4x4x8xbf16, #tpu.memory_space<vmem>>, vector<1x1x2x8xbf16>
      %112 = vector.shape_cast %111 : vector<1x1x2x8xbf16> to vector<2x8xbf16>
      %cst_81 = arith.constant 0.000000e+00 : bf16
      %113 = vector.broadcast %cst_81 : bf16 to vector<2x8xbf16>
      %114 = arith.cmpf oge, %112, %113 : vector<2x8xbf16>
      %cst_82 = arith.constant 1.000980e-02 : bf16
      %115 = vector.broadcast %cst_82 : bf16 to vector<2x8xbf16>
      %116 = arith.mulf %115, %112 : vector<2x8xbf16>
      %117 = arith.select %114, %112, %116 : vector<2x8xi1>, vector<2x8xbf16>
      %cst_83 = arith.constant dense<0.000000e+00> : vector<2x16xf32>
      %118 = tpu.matmul %117, %17, %cst_83 {dimension_numbers = #tpu.dot_dimension_numbers<[1], [0], [0], [1], [0, 0, 1, 1], [], []>} : vector<2x8xbf16>, vector<8x16xbf16>, vector<2x16xf32> -> vector<2x16xf32>
      %119 = arith.addf %108, %118 : vector<2x16xf32>
      %120 = vector.broadcast %18 : vector<1x16xf32> to vector<2x16xf32>
      %121 = arith.addf %119, %120 : vector<2x16xf32>
      %cst_84 = arith.constant 0.000000e+00 : f32
      %122 = vector.broadcast %cst_84 : f32 to vector<2x16xf32>
      %123 = arith.cmpf oge, %121, %122 : vector<2x16xf32>
      %cst_85 = arith.constant 0.00999999977 : f32
      %124 = vector.broadcast %cst_85 : f32 to vector<2x16xf32>
      %125 = arith.mulf %124, %121 : vector<2x16xf32>
      %126 = arith.select %123, %121, %125 : vector<2x16xi1>, vector<2x16xf32>
      %127 = vector.extract_strided_slice %126 {offsets = [0, 0], sizes = [2, 8], strides = [1, 1]} : vector<2x16xf32> to vector<2x8xf32>
      %128 = arith.truncf %127 : vector<2x8xf32> to vector<2x8xbf16>
      %c0_86 = arith.constant 0 : index
      %129 = arith.index_cast %arg5 : i32 to index
      %c0_87 = arith.constant 0 : index
      %c0_88 = arith.constant 0 : index
      %c0_89 = arith.constant 0 : index
      %130 = vector.load %arg4[%c0_86, %129, %c0_87, %c0_88, %c0_89] : memref<1x2x2x2x8xbf16, #tpu.memory_space<vmem>>, vector<1x1x1x2x8xbf16>
      %131 = vector.shape_cast %130 : vector<1x1x1x2x8xbf16> to vector<2x8xbf16>
      %132 = vector.shape_cast %128 : vector<2x8xbf16> to vector<1x1x1x2x8xbf16>
      tpu.vector_store %arg4[%c0_86, %129, %c0_87, %c0_88, %c0_89], %132 {strides = array<i32>} : memref<1x2x2x2x8xbf16, #tpu.memory_space<vmem>>, vector<1x1x1x2x8xbf16>,
      %133 = vector.extract_strided_slice %126 {offsets = [0, 8], sizes = [2, 8], strides = [1, 1]} : vector<2x16xf32> to vector<2x8xf32>
      %134 = arith.truncf %133 : vector<2x8xf32> to vector<2x8xbf16>
      %c0_90 = arith.constant 0 : index
      %135 = arith.index_cast %arg5 : i32 to index
      %c1_91 = arith.constant 1 : index
      %c0_92 = arith.constant 0 : index
      %c0_93 = arith.constant 0 : index
      %136 = vector.load %arg4[%c0_90, %135, %c1_91, %c0_92, %c0_93] : memref<1x2x2x2x8xbf16, #tpu.memory_space<vmem>>, vector<1x1x1x2x8xbf16>
      %137 = vector.shape_cast %136 : vector<1x1x1x2x8xbf16> to vector<2x8xbf16>
      %138 = vector.shape_cast %134 : vector<2x8xbf16> to vector<1x1x1x2x8xbf16>
      tpu.vector_store %arg4[%c0_90, %135, %c1_91, %c0_92, %c0_93], %138 {strides = array<i32>} : memref<1x2x2x2x8xbf16, #tpu.memory_space<vmem>>, vector<1x1x1x2x8xbf16>,
    }
    %c2_i32_20 = arith.constant 2 : i32
    return
  }
  func.func @transform_0(%arg0: i32) -> (i32, i32, i32, i32) {
    %c0_i32 = arith.constant 0 : i32
    %c0_i32_0 = arith.constant 0 : i32
    %c0_i32_1 = arith.constant 0 : i32
    %c0_i32_2 = arith.constant 0 : i32
    return %arg0, %c0_i32, %c0_i32_0, %c0_i32_1 : i32, i32, i32, i32
  }
  func.func @transform_1(%arg0: i32) -> (i32, i32, i32) {
    %c0_i32 = arith.constant 0 : i32
    %c0_i32_0 = arith.constant 0 : i32
    %c0_i32_1 = arith.constant 0 : i32
    %c0_i32_2 = arith.constant 0 : i32
    return %c0_i32, %c0_i32_0, %c0_i32_1 : i32, i32, i32
  }
  func.func @transform_2(%arg0: i32) -> (i32, i32) {
    %c0_i32 = arith.constant 0 : i32
    %c0_i32_0 = arith.constant 0 : i32
    %c0_i32_1 = arith.constant 0 : i32
    return %c0_i32, %c0_i32_0 : i32, i32
  }
  func.func @transform_3(%arg0: i32) -> (i32, i32, i32, i32, i32) {
    %c0_i32 = arith.constant 0 : i32
    %c0_i32_0 = arith.constant 0 : i32
    %c0_i32_1 = arith.constant 0 : i32
    %c0_i32_2 = arith.constant 0 : i32
    %c0_i32_3 = arith.constant 0 : i32
    return %arg0, %c0_i32, %c0_i32_0, %c0_i32_1, %c0_i32_2 : i32, i32, i32, i32, i32
  }
}

module attributes {stable_mosaic.version = 11 : i64} {
  func.func @_conv_kernel(%arg0: i32, %arg1: memref<1x6x6x4xbf16, #tpu.memory_space<vmem>>, %arg2: memref<9x4x8xbf16, #tpu.memory_space<vmem>>, %arg3: memref<1x8xf32, #tpu.memory_space<vmem>>, %arg4: memref<1x4x2x4x4xbf16, #tpu.memory_space<vmem>>) attributes {dimension_semantics = [#tpu.dimension_semantics<parallel>], iteration_bounds = array<i64: 2>, scalar_prefetch = 0 : i64, scratch_operands = 0 : i64, tpu.core_type = #tpu.core_type<tc>, window_params = [{transform_indices = @transform_0, window_bounds = array<i64: 1, 6, 6, 4>}, {pipeline_mode = #tpu.pipeline_mode<synchronous>, transform_indices = @transform_1, window_bounds = array<i64: 9, 4, 8>}, {pipeline_mode = #tpu.pipeline_mode<synchronous>, transform_indices = @transform_2, window_bounds = array<i64: 1, 8>}, {transform_indices = @transform_3, window_bounds = array<i64: 1, 4, 2, 4, 4>}]} {
    %c0 = arith.constant 0 : index
    %c0_0 = arith.constant 0 : index
    %c0_1 = arith.constant 0 : index
    %0 = vector.load %arg2[%c0, %c0_0, %c0_1] : memref<9x4x8xbf16, #tpu.memory_space<vmem>>, vector<1x4x8xbf16>
    %1 = vector.shape_cast %0 : vector<1x4x8xbf16> to vector<4x8xbf16>
    %c1 = arith.constant 1 : index
    %c0_2 = arith.constant 0 : index
    %c0_3 = arith.constant 0 : index
    %2 = vector.load %arg2[%c1, %c0_2, %c0_3] : memref<9x4x8xbf16, #tpu.memory_space<vmem>>, vector<1x4x8xbf16>
    %3 = vector.shape_cast %2 : vector<1x4x8xbf16> to vector<4x8xbf16>
    %c2 = arith.constant 2 : index
    %c0_4 = arith.constant 0 : index
    %c0_5 = arith.constant 0 : index
    %4 = vector.load %arg2[%c2, %c0_4, %c0_5] : memref<9x4x8xbf16, #tpu.memory_space<vmem>>, vector<1x4x8xbf16>
    %5 = vector.shape_cast %4 : vector<1x4x8xbf16> to vector<4x8xbf16>
    %c3 = arith.constant 3 : index
    %c0_6 = arith.constant 0 : index
    %c0_7 = arith.constant 0 : index
    %6 = vector.load %arg2[%c3, %c0_6, %c0_7] : memref<9x4x8xbf16, #tpu.memory_space<vmem>>, vector<1x4x8xbf16>
    %7 = vector.shape_cast %6 : vector<1x4x8xbf16> to vector<4x8xbf16>
    %c4 = arith.constant 4 : index
    %c0_8 = arith.constant 0 : index
    %c0_9 = arith.constant 0 : index
    %8 = vector.load %arg2[%c4, %c0_8, %c0_9] : memref<9x4x8xbf16, #tpu.memory_space<vmem>>, vector<1x4x8xbf16>
    %9 = vector.shape_cast %8 : vector<1x4x8xbf16> to vector<4x8xbf16>
    %c5 = arith.constant 5 : index
    %c0_10 = arith.constant 0 : index
    %c0_11 = arith.constant 0 : index
    %10 = vector.load %arg2[%c5, %c0_10, %c0_11] : memref<9x4x8xbf16, #tpu.memory_space<vmem>>, vector<1x4x8xbf16>
    %11 = vector.shape_cast %10 : vector<1x4x8xbf16> to vector<4x8xbf16>
    %c6 = arith.constant 6 : index
    %c0_12 = arith.constant 0 : index
    %c0_13 = arith.constant 0 : index
    %12 = vector.load %arg2[%c6, %c0_12, %c0_13] : memref<9x4x8xbf16, #tpu.memory_space<vmem>>, vector<1x4x8xbf16>
    %13 = vector.shape_cast %12 : vector<1x4x8xbf16> to vector<4x8xbf16>
    %c7 = arith.constant 7 : index
    %c0_14 = arith.constant 0 : index
    %c0_15 = arith.constant 0 : index
    %14 = vector.load %arg2[%c7, %c0_14, %c0_15] : memref<9x4x8xbf16, #tpu.memory_space<vmem>>, vector<1x4x8xbf16>
    %15 = vector.shape_cast %14 : vector<1x4x8xbf16> to vector<4x8xbf16>
    %c8 = arith.constant 8 : index
    %c0_16 = arith.constant 0 : index
    %c0_17 = arith.constant 0 : index
    %16 = vector.load %arg2[%c8, %c0_16, %c0_17] : memref<9x4x8xbf16, #tpu.memory_space<vmem>>, vector<1x4x8xbf16>
    %17 = vector.shape_cast %16 : vector<1x4x8xbf16> to vector<4x8xbf16>
    %c0_18 = arith.constant 0 : index
    %c0_19 = arith.constant 0 : index
    %18 = vector.load %arg3[%c0_18, %c0_19] : memref<1x8xf32, #tpu.memory_space<vmem>>, vector<1x8xf32>
    %c0_i32 = arith.constant 0 : i32
    %c4_i32 = arith.constant 4 : i32
    %19 = arith.addi %c0_i32, %c4_i32 : i32
    %c1_i32 = arith.constant 1 : i32
    scf.for %arg5 = %c0_i32 to %19 step %c1_i32  : i32 {
      %cst = arith.constant 0.000000e+00 : f32
      %20 = vector.broadcast %cst : f32 to vector<4x8xf32>
      %c0_i32_21 = arith.constant 0 : i32
      %21 = arith.addi %arg5, %c0_i32_21 : i32
      %c0_22 = arith.constant 0 : index
      %22 = arith.index_cast %21 : i32 to index
      %c0_23 = arith.constant 0 : index
      %c0_24 = arith.constant 0 : index
      %23 = vector.load %arg1[%c0_22, %22, %c0_23, %c0_24] : memref<1x6x6x4xbf16, #tpu.memory_space<vmem>>, vector<1x1x4x4xbf16>
      %24 = vector.shape_cast %23 : vector<1x1x4x4xbf16> to vector<4x4xbf16>
      %cst_25 = arith.constant dense<0.000000e+00> : vector<4x8xf32>
      %25 = tpu.matmul %24, %1, %cst_25 {dimension_numbers = #tpu.dot_dimension_numbers<[1], [0], [0], [1], [0, 0, 1, 1], [], []>} : vector<4x4xbf16>, vector<4x8xbf16>, vector<4x8xf32> -> vector<4x8xf32>
      %26 = arith.addf %20, %25 : vector<4x8xf32>
      %c0_i32_26 = arith.constant 0 : i32
      %27 = arith.addi %arg5, %c0_i32_26 : i32
      %c0_27 = arith.constant 0 : index
      %28 = arith.index_cast %27 : i32 to index
      %c1_28 = arith.constant 1 : index
      %c0_29 = arith.constant 0 : index
      %29 = vector.load %arg1[%c0_27, %28, %c1_28, %c0_29] : memref<1x6x6x4xbf16, #tpu.memory_space<vmem>>, vector<1x1x4x4xbf16>
      %30 = vector.shape_cast %29 : vector<1x1x4x4xbf16> to vector<4x4xbf16>
      %cst_30 = arith.constant dense<0.000000e+00> : vector<4x8xf32>
      %31 = tpu.matmul %30, %3, %cst_30 {dimension_numbers = #tpu.dot_dimension_numbers<[1], [0], [0], [1], [0, 0, 1, 1], [], []>} : vector<4x4xbf16>, vector<4x8xbf16>, vector<4x8xf32> -> vector<4x8xf32>
      %32 = arith.addf %26, %31 : vector<4x8xf32>
      %c0_i32_31 = arith.constant 0 : i32
      %33 = arith.addi %arg5, %c0_i32_31 : i32
      %c0_32 = arith.constant 0 : index
      %34 = arith.index_cast %33 : i32 to index
      %c2_33 = arith.constant 2 : index
      %c0_34 = arith.constant 0 : index
      %35 = vector.load %arg1[%c0_32, %34, %c2_33, %c0_34] : memref<1x6x6x4xbf16, #tpu.memory_space<vmem>>, vector<1x1x4x4xbf16>
      %36 = vector.shape_cast %35 : vector<1x1x4x4xbf16> to vector<4x4xbf16>
      %cst_35 = arith.constant dense<0.000000e+00> : vector<4x8xf32>
      %37 = tpu.matmul %36, %5, %cst_35 {dimension_numbers = #tpu.dot_dimension_numbers<[1], [0], [0], [1], [0, 0, 1, 1], [], []>} : vector<4x4xbf16>, vector<4x8xbf16>, vector<4x8xf32> -> vector<4x8xf32>
      %38 = arith.addf %32, %37 : vector<4x8xf32>
      %c1_i32_36 = arith.constant 1 : i32
      %39 = arith.addi %arg5, %c1_i32_36 : i32
      %c0_37 = arith.constant 0 : index
      %40 = arith.index_cast %39 : i32 to index
      %c0_38 = arith.constant 0 : index
      %c0_39 = arith.constant 0 : index
      %41 = vector.load %arg1[%c0_37, %40, %c0_38, %c0_39] : memref<1x6x6x4xbf16, #tpu.memory_space<vmem>>, vector<1x1x4x4xbf16>
      %42 = vector.shape_cast %41 : vector<1x1x4x4xbf16> to vector<4x4xbf16>
      %cst_40 = arith.constant dense<0.000000e+00> : vector<4x8xf32>
      %43 = tpu.matmul %42, %7, %cst_40 {dimension_numbers = #tpu.dot_dimension_numbers<[1], [0], [0], [1], [0, 0, 1, 1], [], []>} : vector<4x4xbf16>, vector<4x8xbf16>, vector<4x8xf32> -> vector<4x8xf32>
      %44 = arith.addf %38, %43 : vector<4x8xf32>
      %c1_i32_41 = arith.constant 1 : i32
      %45 = arith.addi %arg5, %c1_i32_41 : i32
      %c0_42 = arith.constant 0 : index
      %46 = arith.index_cast %45 : i32 to index
      %c1_43 = arith.constant 1 : index
      %c0_44 = arith.constant 0 : index
      %47 = vector.load %arg1[%c0_42, %46, %c1_43, %c0_44] : memref<1x6x6x4xbf16, #tpu.memory_space<vmem>>, vector<1x1x4x4xbf16>
      %48 = vector.shape_cast %47 : vector<1x1x4x4xbf16> to vector<4x4xbf16>
      %cst_45 = arith.constant dense<0.000000e+00> : vector<4x8xf32>
      %49 = tpu.matmul %48, %9, %cst_45 {dimension_numbers = #tpu.dot_dimension_numbers<[1], [0], [0], [1], [0, 0, 1, 1], [], []>} : vector<4x4xbf16>, vector<4x8xbf16>, vector<4x8xf32> -> vector<4x8xf32>
      %50 = arith.addf %44, %49 : vector<4x8xf32>
      %c1_i32_46 = arith.constant 1 : i32
      %51 = arith.addi %arg5, %c1_i32_46 : i32
      %c0_47 = arith.constant 0 : index
      %52 = arith.index_cast %51 : i32 to index
      %c2_48 = arith.constant 2 : index
      %c0_49 = arith.constant 0 : index
      %53 = vector.load %arg1[%c0_47, %52, %c2_48, %c0_49] : memref<1x6x6x4xbf16, #tpu.memory_space<vmem>>, vector<1x1x4x4xbf16>
      %54 = vector.shape_cast %53 : vector<1x1x4x4xbf16> to vector<4x4xbf16>
      %cst_50 = arith.constant dense<0.000000e+00> : vector<4x8xf32>
      %55 = tpu.matmul %54, %11, %cst_50 {dimension_numbers = #tpu.dot_dimension_numbers<[1], [0], [0], [1], [0, 0, 1, 1], [], []>} : vector<4x4xbf16>, vector<4x8xbf16>, vector<4x8xf32> -> vector<4x8xf32>
      %56 = arith.addf %50, %55 : vector<4x8xf32>
      %c2_i32 = arith.constant 2 : i32
      %57 = arith.addi %arg5, %c2_i32 : i32
      %c0_51 = arith.constant 0 : index
      %58 = arith.index_cast %57 : i32 to index
      %c0_52 = arith.constant 0 : index
      %c0_53 = arith.constant 0 : index
      %59 = vector.load %arg1[%c0_51, %58, %c0_52, %c0_53] : memref<1x6x6x4xbf16, #tpu.memory_space<vmem>>, vector<1x1x4x4xbf16>
      %60 = vector.shape_cast %59 : vector<1x1x4x4xbf16> to vector<4x4xbf16>
      %cst_54 = arith.constant dense<0.000000e+00> : vector<4x8xf32>
      %61 = tpu.matmul %60, %13, %cst_54 {dimension_numbers = #tpu.dot_dimension_numbers<[1], [0], [0], [1], [0, 0, 1, 1], [], []>} : vector<4x4xbf16>, vector<4x8xbf16>, vector<4x8xf32> -> vector<4x8xf32>
      %62 = arith.addf %56, %61 : vector<4x8xf32>
      %c2_i32_55 = arith.constant 2 : i32
      %63 = arith.addi %arg5, %c2_i32_55 : i32
      %c0_56 = arith.constant 0 : index
      %64 = arith.index_cast %63 : i32 to index
      %c1_57 = arith.constant 1 : index
      %c0_58 = arith.constant 0 : index
      %65 = vector.load %arg1[%c0_56, %64, %c1_57, %c0_58] : memref<1x6x6x4xbf16, #tpu.memory_space<vmem>>, vector<1x1x4x4xbf16>
      %66 = vector.shape_cast %65 : vector<1x1x4x4xbf16> to vector<4x4xbf16>
      %cst_59 = arith.constant dense<0.000000e+00> : vector<4x8xf32>
      %67 = tpu.matmul %66, %15, %cst_59 {dimension_numbers = #tpu.dot_dimension_numbers<[1], [0], [0], [1], [0, 0, 1, 1], [], []>} : vector<4x4xbf16>, vector<4x8xbf16>, vector<4x8xf32> -> vector<4x8xf32>
      %68 = arith.addf %62, %67 : vector<4x8xf32>
      %c2_i32_60 = arith.constant 2 : i32
      %69 = arith.addi %arg5, %c2_i32_60 : i32
      %c0_61 = arith.constant 0 : index
      %70 = arith.index_cast %69 : i32 to index
      %c2_62 = arith.constant 2 : index
      %c0_63 = arith.constant 0 : index
      %71 = vector.load %arg1[%c0_61, %70, %c2_62, %c0_63] : memref<1x6x6x4xbf16, #tpu.memory_space<vmem>>, vector<1x1x4x4xbf16>
      %72 = vector.shape_cast %71 : vector<1x1x4x4xbf16> to vector<4x4xbf16>
      %cst_64 = arith.constant dense<0.000000e+00> : vector<4x8xf32>
      %73 = tpu.matmul %72, %17, %cst_64 {dimension_numbers = #tpu.dot_dimension_numbers<[1], [0], [0], [1], [0, 0, 1, 1], [], []>} : vector<4x4xbf16>, vector<4x8xbf16>, vector<4x8xf32> -> vector<4x8xf32>
      %74 = arith.addf %68, %73 : vector<4x8xf32>
      %75 = vector.broadcast %18 : vector<1x8xf32> to vector<4x8xf32>
      %76 = arith.addf %74, %75 : vector<4x8xf32>
      %cst_65 = arith.constant 0.000000e+00 : f32
      %77 = vector.broadcast %cst_65 : f32 to vector<4x8xf32>
      %78 = arith.cmpf oge, %76, %77 : vector<4x8xf32>
      %cst_66 = arith.constant 0.00999999977 : f32
      %79 = vector.broadcast %cst_66 : f32 to vector<4x8xf32>
      %80 = arith.mulf %79, %76 : vector<4x8xf32>
      %81 = arith.select %78, %76, %80 : vector<4x8xi1>, vector<4x8xf32>
      %82 = vector.extract_strided_slice %81 {offsets = [0, 0], sizes = [4, 4], strides = [1, 1]} : vector<4x8xf32> to vector<4x4xf32>
      %83 = arith.truncf %82 : vector<4x4xf32> to vector<4x4xbf16>
      %c0_67 = arith.constant 0 : index
      %84 = arith.index_cast %arg5 : i32 to index
      %c0_68 = arith.constant 0 : index
      %c0_69 = arith.constant 0 : index
      %c0_70 = arith.constant 0 : index
      %85 = vector.load %arg4[%c0_67, %84, %c0_68, %c0_69, %c0_70] : memref<1x4x2x4x4xbf16, #tpu.memory_space<vmem>>, vector<1x1x1x4x4xbf16>
      %86 = vector.shape_cast %85 : vector<1x1x1x4x4xbf16> to vector<4x4xbf16>
      %87 = vector.shape_cast %83 : vector<4x4xbf16> to vector<1x1x1x4x4xbf16>
      tpu.vector_store %arg4[%c0_67, %84, %c0_68, %c0_69, %c0_70], %87 {strides = array<i32>} : memref<1x4x2x4x4xbf16, #tpu.memory_space<vmem>>, vector<1x1x1x4x4xbf16>,
      %88 = vector.extract_strided_slice %81 {offsets = [0, 4], sizes = [4, 4], strides = [1, 1]} : vector<4x8xf32> to vector<4x4xf32>
      %89 = arith.truncf %88 : vector<4x4xf32> to vector<4x4xbf16>
      %c0_71 = arith.constant 0 : index
      %90 = arith.index_cast %arg5 : i32 to index
      %c1_72 = arith.constant 1 : index
      %c0_73 = arith.constant 0 : index
      %c0_74 = arith.constant 0 : index
      %91 = vector.load %arg4[%c0_71, %90, %c1_72, %c0_73, %c0_74] : memref<1x4x2x4x4xbf16, #tpu.memory_space<vmem>>, vector<1x1x1x4x4xbf16>
      %92 = vector.shape_cast %91 : vector<1x1x1x4x4xbf16> to vector<4x4xbf16>
      %93 = vector.shape_cast %89 : vector<4x4xbf16> to vector<1x1x1x4x4xbf16>
      tpu.vector_store %arg4[%c0_71, %90, %c1_72, %c0_73, %c0_74], %93 {strides = array<i32>} : memref<1x4x2x4x4xbf16, #tpu.memory_space<vmem>>, vector<1x1x1x4x4xbf16>,
    }
    %c4_i32_20 = arith.constant 4 : i32
    return
  }
  func.func @transform_0(%arg0: i32) -> (i32, i32, i32, i32) {
    %c0_i32 = arith.constant 0 : i32
    %c0_i32_0 = arith.constant 0 : i32
    %c0_i32_1 = arith.constant 0 : i32
    %c0_i32_2 = arith.constant 0 : i32
    return %arg0, %c0_i32, %c0_i32_0, %c0_i32_1 : i32, i32, i32, i32
  }
  func.func @transform_1(%arg0: i32) -> (i32, i32, i32) {
    %c0_i32 = arith.constant 0 : i32
    %c0_i32_0 = arith.constant 0 : i32
    %c0_i32_1 = arith.constant 0 : i32
    %c0_i32_2 = arith.constant 0 : i32
    return %c0_i32, %c0_i32_0, %c0_i32_1 : i32, i32, i32
  }
  func.func @transform_2(%arg0: i32) -> (i32, i32) {
    %c0_i32 = arith.constant 0 : i32
    %c0_i32_0 = arith.constant 0 : i32
    %c0_i32_1 = arith.constant 0 : i32
    return %c0_i32, %c0_i32_0 : i32, i32
  }
  func.func @transform_3(%arg0: i32) -> (i32, i32, i32, i32, i32) {
    %c0_i32 = arith.constant 0 : i32
    %c0_i32_0 = arith.constant 0 : i32
    %c0_i32_1 = arith.constant 0 : i32
    %c0_i32_2 = arith.constant 0 : i32
    %c0_i32_3 = arith.constant 0 : i32
    return %arg0, %c0_i32, %c0_i32_0, %c0_i32_1, %c0_i32_2 : i32, i32, i32, i32, i32
  }
}

module attributes {stable_mosaic.version = 11 : i64} {
  func.func @_conv_kernel(%arg0: i32, %arg1: memref<1x10x10x2xbf16, #tpu.memory_space<vmem>>, %arg2: memref<9x2x4xbf16, #tpu.memory_space<vmem>>, %arg3: memref<1x4xf32, #tpu.memory_space<vmem>>, %arg4: memref<1x8x2x8x2xbf16, #tpu.memory_space<vmem>>) attributes {dimension_semantics = [#tpu.dimension_semantics<parallel>], iteration_bounds = array<i64: 2>, scalar_prefetch = 0 : i64, scratch_operands = 0 : i64, tpu.core_type = #tpu.core_type<tc>, window_params = [{transform_indices = @transform_0, window_bounds = array<i64: 1, 10, 10, 2>}, {pipeline_mode = #tpu.pipeline_mode<synchronous>, transform_indices = @transform_1, window_bounds = array<i64: 9, 2, 4>}, {pipeline_mode = #tpu.pipeline_mode<synchronous>, transform_indices = @transform_2, window_bounds = array<i64: 1, 4>}, {transform_indices = @transform_3, window_bounds = array<i64: 1, 8, 2, 8, 2>}]} {
    %c0 = arith.constant 0 : index
    %c0_0 = arith.constant 0 : index
    %c0_1 = arith.constant 0 : index
    %0 = vector.load %arg2[%c0, %c0_0, %c0_1] : memref<9x2x4xbf16, #tpu.memory_space<vmem>>, vector<1x2x4xbf16>
    %1 = vector.shape_cast %0 : vector<1x2x4xbf16> to vector<2x4xbf16>
    %c1 = arith.constant 1 : index
    %c0_2 = arith.constant 0 : index
    %c0_3 = arith.constant 0 : index
    %2 = vector.load %arg2[%c1, %c0_2, %c0_3] : memref<9x2x4xbf16, #tpu.memory_space<vmem>>, vector<1x2x4xbf16>
    %3 = vector.shape_cast %2 : vector<1x2x4xbf16> to vector<2x4xbf16>
    %c2 = arith.constant 2 : index
    %c0_4 = arith.constant 0 : index
    %c0_5 = arith.constant 0 : index
    %4 = vector.load %arg2[%c2, %c0_4, %c0_5] : memref<9x2x4xbf16, #tpu.memory_space<vmem>>, vector<1x2x4xbf16>
    %5 = vector.shape_cast %4 : vector<1x2x4xbf16> to vector<2x4xbf16>
    %c3 = arith.constant 3 : index
    %c0_6 = arith.constant 0 : index
    %c0_7 = arith.constant 0 : index
    %6 = vector.load %arg2[%c3, %c0_6, %c0_7] : memref<9x2x4xbf16, #tpu.memory_space<vmem>>, vector<1x2x4xbf16>
    %7 = vector.shape_cast %6 : vector<1x2x4xbf16> to vector<2x4xbf16>
    %c4 = arith.constant 4 : index
    %c0_8 = arith.constant 0 : index
    %c0_9 = arith.constant 0 : index
    %8 = vector.load %arg2[%c4, %c0_8, %c0_9] : memref<9x2x4xbf16, #tpu.memory_space<vmem>>, vector<1x2x4xbf16>
    %9 = vector.shape_cast %8 : vector<1x2x4xbf16> to vector<2x4xbf16>
    %c5 = arith.constant 5 : index
    %c0_10 = arith.constant 0 : index
    %c0_11 = arith.constant 0 : index
    %10 = vector.load %arg2[%c5, %c0_10, %c0_11] : memref<9x2x4xbf16, #tpu.memory_space<vmem>>, vector<1x2x4xbf16>
    %11 = vector.shape_cast %10 : vector<1x2x4xbf16> to vector<2x4xbf16>
    %c6 = arith.constant 6 : index
    %c0_12 = arith.constant 0 : index
    %c0_13 = arith.constant 0 : index
    %12 = vector.load %arg2[%c6, %c0_12, %c0_13] : memref<9x2x4xbf16, #tpu.memory_space<vmem>>, vector<1x2x4xbf16>
    %13 = vector.shape_cast %12 : vector<1x2x4xbf16> to vector<2x4xbf16>
    %c7 = arith.constant 7 : index
    %c0_14 = arith.constant 0 : index
    %c0_15 = arith.constant 0 : index
    %14 = vector.load %arg2[%c7, %c0_14, %c0_15] : memref<9x2x4xbf16, #tpu.memory_space<vmem>>, vector<1x2x4xbf16>
    %15 = vector.shape_cast %14 : vector<1x2x4xbf16> to vector<2x4xbf16>
    %c8 = arith.constant 8 : index
    %c0_16 = arith.constant 0 : index
    %c0_17 = arith.constant 0 : index
    %16 = vector.load %arg2[%c8, %c0_16, %c0_17] : memref<9x2x4xbf16, #tpu.memory_space<vmem>>, vector<1x2x4xbf16>
    %17 = vector.shape_cast %16 : vector<1x2x4xbf16> to vector<2x4xbf16>
    %c0_18 = arith.constant 0 : index
    %c0_19 = arith.constant 0 : index
    %18 = vector.load %arg3[%c0_18, %c0_19] : memref<1x4xf32, #tpu.memory_space<vmem>>, vector<1x4xf32>
    %c0_i32 = arith.constant 0 : i32
    %c8_i32 = arith.constant 8 : i32
    %19 = arith.addi %c0_i32, %c8_i32 : i32
    %c1_i32 = arith.constant 1 : i32
    scf.for %arg5 = %c0_i32 to %19 step %c1_i32  : i32 {
      %cst = arith.constant 0.000000e+00 : f32
      %20 = vector.broadcast %cst : f32 to vector<8x4xf32>
      %c0_i32_21 = arith.constant 0 : i32
      %21 = arith.addi %arg5, %c0_i32_21 : i32
      %c0_22 = arith.constant 0 : index
      %22 = arith.index_cast %21 : i32 to index
      %c0_23 = arith.constant 0 : index
      %c0_24 = arith.constant 0 : index
      %23 = vector.load %arg1[%c0_22, %22, %c0_23, %c0_24] : memref<1x10x10x2xbf16, #tpu.memory_space<vmem>>, vector<1x1x8x2xbf16>
      %24 = vector.shape_cast %23 : vector<1x1x8x2xbf16> to vector<8x2xbf16>
      %cst_25 = arith.constant dense<0.000000e+00> : vector<8x4xf32>
      %25 = tpu.matmul %24, %1, %cst_25 {dimension_numbers = #tpu.dot_dimension_numbers<[1], [0], [0], [1], [0, 0, 1, 1], [], []>} : vector<8x2xbf16>, vector<2x4xbf16>, vector<8x4xf32> -> vector<8x4xf32>
      %26 = arith.addf %20, %25 : vector<8x4xf32>
      %c0_i32_26 = arith.constant 0 : i32
      %27 = arith.addi %arg5, %c0_i32_26 : i32
      %c0_27 = arith.constant 0 : index
      %28 = arith.index_cast %27 : i32 to index
      %c1_28 = arith.constant 1 : index
      %c0_29 = arith.constant 0 : index
      %29 = vector.load %arg1[%c0_27, %28, %c1_28, %c0_29] : memref<1x10x10x2xbf16, #tpu.memory_space<vmem>>, vector<1x1x8x2xbf16>
      %30 = vector.shape_cast %29 : vector<1x1x8x2xbf16> to vector<8x2xbf16>
      %cst_30 = arith.constant dense<0.000000e+00> : vector<8x4xf32>
      %31 = tpu.matmul %30, %3, %cst_30 {dimension_numbers = #tpu.dot_dimension_numbers<[1], [0], [0], [1], [0, 0, 1, 1], [], []>} : vector<8x2xbf16>, vector<2x4xbf16>, vector<8x4xf32> -> vector<8x4xf32>
      %32 = arith.addf %26, %31 : vector<8x4xf32>
      %c0_i32_31 = arith.constant 0 : i32
      %33 = arith.addi %arg5, %c0_i32_31 : i32
      %c0_32 = arith.constant 0 : index
      %34 = arith.index_cast %33 : i32 to index
      %c2_33 = arith.constant 2 : index
      %c0_34 = arith.constant 0 : index
      %35 = vector.load %arg1[%c0_32, %34, %c2_33, %c0_34] : memref<1x10x10x2xbf16, #tpu.memory_space<vmem>>, vector<1x1x8x2xbf16>
      %36 = vector.shape_cast %35 : vector<1x1x8x2xbf16> to vector<8x2xbf16>
      %cst_35 = arith.constant dense<0.000000e+00> : vector<8x4xf32>
      %37 = tpu.matmul %36, %5, %cst_35 {dimension_numbers = #tpu.dot_dimension_numbers<[1], [0], [0], [1], [0, 0, 1, 1], [], []>} : vector<8x2xbf16>, vector<2x4xbf16>, vector<8x4xf32> -> vector<8x4xf32>
      %38 = arith.addf %32, %37 : vector<8x4xf32>
      %c1_i32_36 = arith.constant 1 : i32
      %39 = arith.addi %arg5, %c1_i32_36 : i32
      %c0_37 = arith.constant 0 : index
      %40 = arith.index_cast %39 : i32 to index
      %c0_38 = arith.constant 0 : index
      %c0_39 = arith.constant 0 : index
      %41 = vector.load %arg1[%c0_37, %40, %c0_38, %c0_39] : memref<1x10x10x2xbf16, #tpu.memory_space<vmem>>, vector<1x1x8x2xbf16>
      %42 = vector.shape_cast %41 : vector<1x1x8x2xbf16> to vector<8x2xbf16>
      %cst_40 = arith.constant dense<0.000000e+00> : vector<8x4xf32>
      %43 = tpu.matmul %42, %7, %cst_40 {dimension_numbers = #tpu.dot_dimension_numbers<[1], [0], [0], [1], [0, 0, 1, 1], [], []>} : vector<8x2xbf16>, vector<2x4xbf16>, vector<8x4xf32> -> vector<8x4xf32>
      %44 = arith.addf %38, %43 : vector<8x4xf32>
      %c1_i32_41 = arith.constant 1 : i32
      %45 = arith.addi %arg5, %c1_i32_41 : i32
      %c0_42 = arith.constant 0 : index
      %46 = arith.index_cast %45 : i32 to index
      %c1_43 = arith.constant 1 : index
      %c0_44 = arith.constant 0 : index
      %47 = vector.load %arg1[%c0_42, %46, %c1_43, %c0_44] : memref<1x10x10x2xbf16, #tpu.memory_space<vmem>>, vector<1x1x8x2xbf16>
      %48 = vector.shape_cast %47 : vector<1x1x8x2xbf16> to vector<8x2xbf16>
      %cst_45 = arith.constant dense<0.000000e+00> : vector<8x4xf32>
      %49 = tpu.matmul %48, %9, %cst_45 {dimension_numbers = #tpu.dot_dimension_numbers<[1], [0], [0], [1], [0, 0, 1, 1], [], []>} : vector<8x2xbf16>, vector<2x4xbf16>, vector<8x4xf32> -> vector<8x4xf32>
      %50 = arith.addf %44, %49 : vector<8x4xf32>
      %c1_i32_46 = arith.constant 1 : i32
      %51 = arith.addi %arg5, %c1_i32_46 : i32
      %c0_47 = arith.constant 0 : index
      %52 = arith.index_cast %51 : i32 to index
      %c2_48 = arith.constant 2 : index
      %c0_49 = arith.constant 0 : index
      %53 = vector.load %arg1[%c0_47, %52, %c2_48, %c0_49] : memref<1x10x10x2xbf16, #tpu.memory_space<vmem>>, vector<1x1x8x2xbf16>
      %54 = vector.shape_cast %53 : vector<1x1x8x2xbf16> to vector<8x2xbf16>
      %cst_50 = arith.constant dense<0.000000e+00> : vector<8x4xf32>
      %55 = tpu.matmul %54, %11, %cst_50 {dimension_numbers = #tpu.dot_dimension_numbers<[1], [0], [0], [1], [0, 0, 1, 1], [], []>} : vector<8x2xbf16>, vector<2x4xbf16>, vector<8x4xf32> -> vector<8x4xf32>
      %56 = arith.addf %50, %55 : vector<8x4xf32>
      %c2_i32 = arith.constant 2 : i32
      %57 = arith.addi %arg5, %c2_i32 : i32
      %c0_51 = arith.constant 0 : index
      %58 = arith.index_cast %57 : i32 to index
      %c0_52 = arith.constant 0 : index
      %c0_53 = arith.constant 0 : index
      %59 = vector.load %arg1[%c0_51, %58, %c0_52, %c0_53] : memref<1x10x10x2xbf16, #tpu.memory_space<vmem>>, vector<1x1x8x2xbf16>
      %60 = vector.shape_cast %59 : vector<1x1x8x2xbf16> to vector<8x2xbf16>
      %cst_54 = arith.constant dense<0.000000e+00> : vector<8x4xf32>
      %61 = tpu.matmul %60, %13, %cst_54 {dimension_numbers = #tpu.dot_dimension_numbers<[1], [0], [0], [1], [0, 0, 1, 1], [], []>} : vector<8x2xbf16>, vector<2x4xbf16>, vector<8x4xf32> -> vector<8x4xf32>
      %62 = arith.addf %56, %61 : vector<8x4xf32>
      %c2_i32_55 = arith.constant 2 : i32
      %63 = arith.addi %arg5, %c2_i32_55 : i32
      %c0_56 = arith.constant 0 : index
      %64 = arith.index_cast %63 : i32 to index
      %c1_57 = arith.constant 1 : index
      %c0_58 = arith.constant 0 : index
      %65 = vector.load %arg1[%c0_56, %64, %c1_57, %c0_58] : memref<1x10x10x2xbf16, #tpu.memory_space<vmem>>, vector<1x1x8x2xbf16>
      %66 = vector.shape_cast %65 : vector<1x1x8x2xbf16> to vector<8x2xbf16>
      %cst_59 = arith.constant dense<0.000000e+00> : vector<8x4xf32>
      %67 = tpu.matmul %66, %15, %cst_59 {dimension_numbers = #tpu.dot_dimension_numbers<[1], [0], [0], [1], [0, 0, 1, 1], [], []>} : vector<8x2xbf16>, vector<2x4xbf16>, vector<8x4xf32> -> vector<8x4xf32>
      %68 = arith.addf %62, %67 : vector<8x4xf32>
      %c2_i32_60 = arith.constant 2 : i32
      %69 = arith.addi %arg5, %c2_i32_60 : i32
      %c0_61 = arith.constant 0 : index
      %70 = arith.index_cast %69 : i32 to index
      %c2_62 = arith.constant 2 : index
      %c0_63 = arith.constant 0 : index
      %71 = vector.load %arg1[%c0_61, %70, %c2_62, %c0_63] : memref<1x10x10x2xbf16, #tpu.memory_space<vmem>>, vector<1x1x8x2xbf16>
      %72 = vector.shape_cast %71 : vector<1x1x8x2xbf16> to vector<8x2xbf16>
      %cst_64 = arith.constant dense<0.000000e+00> : vector<8x4xf32>
      %73 = tpu.matmul %72, %17, %cst_64 {dimension_numbers = #tpu.dot_dimension_numbers<[1], [0], [0], [1], [0, 0, 1, 1], [], []>} : vector<8x2xbf16>, vector<2x4xbf16>, vector<8x4xf32> -> vector<8x4xf32>
      %74 = arith.addf %68, %73 : vector<8x4xf32>
      %75 = vector.broadcast %18 : vector<1x4xf32> to vector<8x4xf32>
      %76 = arith.addf %74, %75 : vector<8x4xf32>
      %cst_65 = arith.constant 0.000000e+00 : f32
      %77 = vector.broadcast %cst_65 : f32 to vector<8x4xf32>
      %78 = arith.cmpf oge, %76, %77 : vector<8x4xf32>
      %cst_66 = arith.constant 0.00999999977 : f32
      %79 = vector.broadcast %cst_66 : f32 to vector<8x4xf32>
      %80 = arith.mulf %79, %76 : vector<8x4xf32>
      %81 = arith.select %78, %76, %80 : vector<8x4xi1>, vector<8x4xf32>
      %82 = vector.extract_strided_slice %81 {offsets = [0, 0], sizes = [8, 2], strides = [1, 1]} : vector<8x4xf32> to vector<8x2xf32>
      %83 = arith.truncf %82 : vector<8x2xf32> to vector<8x2xbf16>
      %c0_67 = arith.constant 0 : index
      %84 = arith.index_cast %arg5 : i32 to index
      %c0_68 = arith.constant 0 : index
      %c0_69 = arith.constant 0 : index
      %c0_70 = arith.constant 0 : index
      %85 = vector.load %arg4[%c0_67, %84, %c0_68, %c0_69, %c0_70] : memref<1x8x2x8x2xbf16, #tpu.memory_space<vmem>>, vector<1x1x1x8x2xbf16>
      %86 = vector.shape_cast %85 : vector<1x1x1x8x2xbf16> to vector<8x2xbf16>
      %87 = vector.shape_cast %83 : vector<8x2xbf16> to vector<1x1x1x8x2xbf16>
      tpu.vector_store %arg4[%c0_67, %84, %c0_68, %c0_69, %c0_70], %87 {strides = array<i32>} : memref<1x8x2x8x2xbf16, #tpu.memory_space<vmem>>, vector<1x1x1x8x2xbf16>,
      %88 = vector.extract_strided_slice %81 {offsets = [0, 2], sizes = [8, 2], strides = [1, 1]} : vector<8x4xf32> to vector<8x2xf32>
      %89 = arith.truncf %88 : vector<8x2xf32> to vector<8x2xbf16>
      %c0_71 = arith.constant 0 : index
      %90 = arith.index_cast %arg5 : i32 to index
      %c1_72 = arith.constant 1 : index
      %c0_73 = arith.constant 0 : index
      %c0_74 = arith.constant 0 : index
      %91 = vector.load %arg4[%c0_71, %90, %c1_72, %c0_73, %c0_74] : memref<1x8x2x8x2xbf16, #tpu.memory_space<vmem>>, vector<1x1x1x8x2xbf16>
      %92 = vector.shape_cast %91 : vector<1x1x1x8x2xbf16> to vector<8x2xbf16>
      %93 = vector.shape_cast %89 : vector<8x2xbf16> to vector<1x1x1x8x2xbf16>
      tpu.vector_store %arg4[%c0_71, %90, %c1_72, %c0_73, %c0_74], %93 {strides = array<i32>} : memref<1x8x2x8x2xbf16, #tpu.memory_space<vmem>>, vector<1x1x1x8x2xbf16>,
    }
    %c8_i32_20 = arith.constant 8 : i32
    return
  }
  func.func @transform_0(%arg0: i32) -> (i32, i32, i32, i32) {
    %c0_i32 = arith.constant 0 : i32
    %c0_i32_0 = arith.constant 0 : i32
    %c0_i32_1 = arith.constant 0 : i32
    %c0_i32_2 = arith.constant 0 : i32
    return %arg0, %c0_i32, %c0_i32_0, %c0_i32_1 : i32, i32, i32, i32
  }
  func.func @transform_1(%arg0: i32) -> (i32, i32, i32) {
    %c0_i32 = arith.constant 0 : i32
    %c0_i32_0 = arith.constant 0 : i32
    %c0_i32_1 = arith.constant 0 : i32
    %c0_i32_2 = arith.constant 0 : i32
    return %c0_i32, %c0_i32_0, %c0_i32_1 : i32, i32, i32
  }
  func.func @transform_2(%arg0: i32) -> (i32, i32) {
    %c0_i32 = arith.constant 0 : i32
    %c0_i32_0 = arith.constant 0 : i32
    %c0_i32_1 = arith.constant 0 : i32
    return %c0_i32, %c0_i32_0 : i32, i32
  }
  func.func @transform_3(%arg0: i32) -> (i32, i32, i32, i32, i32) {
    %c0_i32 = arith.constant 0 : i32
    %c0_i32_0 = arith.constant 0 : i32
    %c0_i32_1 = arith.constant 0 : i32
    %c0_i32_2 = arith.constant 0 : i32
    %c0_i32_3 = arith.constant 0 : i32
    return %arg0, %c0_i32, %c0_i32_0, %c0_i32_1, %c0_i32_2 : i32, i32, i32, i32, i32
  }
}

module attributes {stable_mosaic.version = 11 : i64} {
  func.func @_conv_kernel(%arg0: i32, %arg1: memref<1x18x18x1xbf16, #tpu.memory_space<vmem>>, %arg2: memref<9x1x3xbf16, #tpu.memory_space<vmem>>, %arg3: memref<1x3xf32, #tpu.memory_space<vmem>>, %arg4: memref<1x16x16x3xf32, #tpu.memory_space<vmem>>) attributes {dimension_semantics = [#tpu.dimension_semantics<parallel>], iteration_bounds = array<i64: 2>, scalar_prefetch = 0 : i64, scratch_operands = 0 : i64, tpu.core_type = #tpu.core_type<tc>, window_params = [{transform_indices = @transform_0, window_bounds = array<i64: 1, 18, 18, 1>}, {pipeline_mode = #tpu.pipeline_mode<synchronous>, transform_indices = @transform_1, window_bounds = array<i64: 9, 1, 3>}, {pipeline_mode = #tpu.pipeline_mode<synchronous>, transform_indices = @transform_2, window_bounds = array<i64: 1, 3>}, {transform_indices = @transform_3, window_bounds = array<i64: 1, 16, 16, 3>}]} {
    %c0 = arith.constant 0 : index
    %c0_0 = arith.constant 0 : index
    %c0_1 = arith.constant 0 : index
    %0 = vector.load %arg2[%c0, %c0_0, %c0_1] : memref<9x1x3xbf16, #tpu.memory_space<vmem>>, vector<1x1x3xbf16>
    %1 = vector.shape_cast %0 : vector<1x1x3xbf16> to vector<1x3xbf16>
    %c1 = arith.constant 1 : index
    %c0_2 = arith.constant 0 : index
    %c0_3 = arith.constant 0 : index
    %2 = vector.load %arg2[%c1, %c0_2, %c0_3] : memref<9x1x3xbf16, #tpu.memory_space<vmem>>, vector<1x1x3xbf16>
    %3 = vector.shape_cast %2 : vector<1x1x3xbf16> to vector<1x3xbf16>
    %c2 = arith.constant 2 : index
    %c0_4 = arith.constant 0 : index
    %c0_5 = arith.constant 0 : index
    %4 = vector.load %arg2[%c2, %c0_4, %c0_5] : memref<9x1x3xbf16, #tpu.memory_space<vmem>>, vector<1x1x3xbf16>
    %5 = vector.shape_cast %4 : vector<1x1x3xbf16> to vector<1x3xbf16>
    %c3 = arith.constant 3 : index
    %c0_6 = arith.constant 0 : index
    %c0_7 = arith.constant 0 : index
    %6 = vector.load %arg2[%c3, %c0_6, %c0_7] : memref<9x1x3xbf16, #tpu.memory_space<vmem>>, vector<1x1x3xbf16>
    %7 = vector.shape_cast %6 : vector<1x1x3xbf16> to vector<1x3xbf16>
    %c4 = arith.constant 4 : index
    %c0_8 = arith.constant 0 : index
    %c0_9 = arith.constant 0 : index
    %8 = vector.load %arg2[%c4, %c0_8, %c0_9] : memref<9x1x3xbf16, #tpu.memory_space<vmem>>, vector<1x1x3xbf16>
    %9 = vector.shape_cast %8 : vector<1x1x3xbf16> to vector<1x3xbf16>
    %c5 = arith.constant 5 : index
    %c0_10 = arith.constant 0 : index
    %c0_11 = arith.constant 0 : index
    %10 = vector.load %arg2[%c5, %c0_10, %c0_11] : memref<9x1x3xbf16, #tpu.memory_space<vmem>>, vector<1x1x3xbf16>
    %11 = vector.shape_cast %10 : vector<1x1x3xbf16> to vector<1x3xbf16>
    %c6 = arith.constant 6 : index
    %c0_12 = arith.constant 0 : index
    %c0_13 = arith.constant 0 : index
    %12 = vector.load %arg2[%c6, %c0_12, %c0_13] : memref<9x1x3xbf16, #tpu.memory_space<vmem>>, vector<1x1x3xbf16>
    %13 = vector.shape_cast %12 : vector<1x1x3xbf16> to vector<1x3xbf16>
    %c7 = arith.constant 7 : index
    %c0_14 = arith.constant 0 : index
    %c0_15 = arith.constant 0 : index
    %14 = vector.load %arg2[%c7, %c0_14, %c0_15] : memref<9x1x3xbf16, #tpu.memory_space<vmem>>, vector<1x1x3xbf16>
    %15 = vector.shape_cast %14 : vector<1x1x3xbf16> to vector<1x3xbf16>
    %c8 = arith.constant 8 : index
    %c0_16 = arith.constant 0 : index
    %c0_17 = arith.constant 0 : index
    %16 = vector.load %arg2[%c8, %c0_16, %c0_17] : memref<9x1x3xbf16, #tpu.memory_space<vmem>>, vector<1x1x3xbf16>
    %17 = vector.shape_cast %16 : vector<1x1x3xbf16> to vector<1x3xbf16>
    %c0_18 = arith.constant 0 : index
    %c0_19 = arith.constant 0 : index
    %18 = vector.load %arg3[%c0_18, %c0_19] : memref<1x3xf32, #tpu.memory_space<vmem>>, vector<1x3xf32>
    %c0_i32 = arith.constant 0 : i32
    %c16_i32 = arith.constant 16 : i32
    %19 = arith.addi %c0_i32, %c16_i32 : i32
    %c1_i32 = arith.constant 1 : i32
    scf.for %arg5 = %c0_i32 to %19 step %c1_i32  : i32 {
      %cst = arith.constant 0.000000e+00 : f32
      %20 = vector.broadcast %cst : f32 to vector<16x3xf32>
      %c0_i32_21 = arith.constant 0 : i32
      %21 = arith.addi %arg5, %c0_i32_21 : i32
      %c0_22 = arith.constant 0 : index
      %22 = arith.index_cast %21 : i32 to index
      %c0_23 = arith.constant 0 : index
      %c0_24 = arith.constant 0 : index
      %23 = vector.load %arg1[%c0_22, %22, %c0_23, %c0_24] : memref<1x18x18x1xbf16, #tpu.memory_space<vmem>>, vector<1x1x16x1xbf16>
      %24 = vector.shape_cast %23 : vector<1x1x16x1xbf16> to vector<16x1xbf16>
      %cst_25 = arith.constant dense<0.000000e+00> : vector<16x3xf32>
      %25 = tpu.matmul %24, %1, %cst_25 {dimension_numbers = #tpu.dot_dimension_numbers<[1], [0], [0], [1], [0, 0, 1, 1], [], []>} : vector<16x1xbf16>, vector<1x3xbf16>, vector<16x3xf32> -> vector<16x3xf32>
      %26 = arith.addf %20, %25 : vector<16x3xf32>
      %c0_i32_26 = arith.constant 0 : i32
      %27 = arith.addi %arg5, %c0_i32_26 : i32
      %c0_27 = arith.constant 0 : index
      %28 = arith.index_cast %27 : i32 to index
      %c1_28 = arith.constant 1 : index
      %c0_29 = arith.constant 0 : index
      %29 = vector.load %arg1[%c0_27, %28, %c1_28, %c0_29] : memref<1x18x18x1xbf16, #tpu.memory_space<vmem>>, vector<1x1x16x1xbf16>
      %30 = vector.shape_cast %29 : vector<1x1x16x1xbf16> to vector<16x1xbf16>
      %cst_30 = arith.constant dense<0.000000e+00> : vector<16x3xf32>
      %31 = tpu.matmul %30, %3, %cst_30 {dimension_numbers = #tpu.dot_dimension_numbers<[1], [0], [0], [1], [0, 0, 1, 1], [], []>} : vector<16x1xbf16>, vector<1x3xbf16>, vector<16x3xf32> -> vector<16x3xf32>
      %32 = arith.addf %26, %31 : vector<16x3xf32>
      %c0_i32_31 = arith.constant 0 : i32
      %33 = arith.addi %arg5, %c0_i32_31 : i32
      %c0_32 = arith.constant 0 : index
      %34 = arith.index_cast %33 : i32 to index
      %c2_33 = arith.constant 2 : index
      %c0_34 = arith.constant 0 : index
      %35 = vector.load %arg1[%c0_32, %34, %c2_33, %c0_34] : memref<1x18x18x1xbf16, #tpu.memory_space<vmem>>, vector<1x1x16x1xbf16>
      %36 = vector.shape_cast %35 : vector<1x1x16x1xbf16> to vector<16x1xbf16>
      %cst_35 = arith.constant dense<0.000000e+00> : vector<16x3xf32>
      %37 = tpu.matmul %36, %5, %cst_35 {dimension_numbers = #tpu.dot_dimension_numbers<[1], [0], [0], [1], [0, 0, 1, 1], [], []>} : vector<16x1xbf16>, vector<1x3xbf16>, vector<16x3xf32> -> vector<16x3xf32>
      %38 = arith.addf %32, %37 : vector<16x3xf32>
      %c1_i32_36 = arith.constant 1 : i32
      %39 = arith.addi %arg5, %c1_i32_36 : i32
      %c0_37 = arith.constant 0 : index
      %40 = arith.index_cast %39 : i32 to index
      %c0_38 = arith.constant 0 : index
      %c0_39 = arith.constant 0 : index
      %41 = vector.load %arg1[%c0_37, %40, %c0_38, %c0_39] : memref<1x18x18x1xbf16, #tpu.memory_space<vmem>>, vector<1x1x16x1xbf16>
      %42 = vector.shape_cast %41 : vector<1x1x16x1xbf16> to vector<16x1xbf16>
      %cst_40 = arith.constant dense<0.000000e+00> : vector<16x3xf32>
      %43 = tpu.matmul %42, %7, %cst_40 {dimension_numbers = #tpu.dot_dimension_numbers<[1], [0], [0], [1], [0, 0, 1, 1], [], []>} : vector<16x1xbf16>, vector<1x3xbf16>, vector<16x3xf32> -> vector<16x3xf32>
      %44 = arith.addf %38, %43 : vector<16x3xf32>
      %c1_i32_41 = arith.constant 1 : i32
      %45 = arith.addi %arg5, %c1_i32_41 : i32
      %c0_42 = arith.constant 0 : index
      %46 = arith.index_cast %45 : i32 to index
      %c1_43 = arith.constant 1 : index
      %c0_44 = arith.constant 0 : index
      %47 = vector.load %arg1[%c0_42, %46, %c1_43, %c0_44] : memref<1x18x18x1xbf16, #tpu.memory_space<vmem>>, vector<1x1x16x1xbf16>
      %48 = vector.shape_cast %47 : vector<1x1x16x1xbf16> to vector<16x1xbf16>
      %cst_45 = arith.constant dense<0.000000e+00> : vector<16x3xf32>
      %49 = tpu.matmul %48, %9, %cst_45 {dimension_numbers = #tpu.dot_dimension_numbers<[1], [0], [0], [1], [0, 0, 1, 1], [], []>} : vector<16x1xbf16>, vector<1x3xbf16>, vector<16x3xf32> -> vector<16x3xf32>
      %50 = arith.addf %44, %49 : vector<16x3xf32>
      %c1_i32_46 = arith.constant 1 : i32
      %51 = arith.addi %arg5, %c1_i32_46 : i32
      %c0_47 = arith.constant 0 : index
      %52 = arith.index_cast %51 : i32 to index
      %c2_48 = arith.constant 2 : index
      %c0_49 = arith.constant 0 : index
      %53 = vector.load %arg1[%c0_47, %52, %c2_48, %c0_49] : memref<1x18x18x1xbf16, #tpu.memory_space<vmem>>, vector<1x1x16x1xbf16>
      %54 = vector.shape_cast %53 : vector<1x1x16x1xbf16> to vector<16x1xbf16>
      %cst_50 = arith.constant dense<0.000000e+00> : vector<16x3xf32>
      %55 = tpu.matmul %54, %11, %cst_50 {dimension_numbers = #tpu.dot_dimension_numbers<[1], [0], [0], [1], [0, 0, 1, 1], [], []>} : vector<16x1xbf16>, vector<1x3xbf16>, vector<16x3xf32> -> vector<16x3xf32>
      %56 = arith.addf %50, %55 : vector<16x3xf32>
      %c2_i32 = arith.constant 2 : i32
      %57 = arith.addi %arg5, %c2_i32 : i32
      %c0_51 = arith.constant 0 : index
      %58 = arith.index_cast %57 : i32 to index
      %c0_52 = arith.constant 0 : index
      %c0_53 = arith.constant 0 : index
      %59 = vector.load %arg1[%c0_51, %58, %c0_52, %c0_53] : memref<1x18x18x1xbf16, #tpu.memory_space<vmem>>, vector<1x1x16x1xbf16>
      %60 = vector.shape_cast %59 : vector<1x1x16x1xbf16> to vector<16x1xbf16>
      %cst_54 = arith.constant dense<0.000000e+00> : vector<16x3xf32>
      %61 = tpu.matmul %60, %13, %cst_54 {dimension_numbers = #tpu.dot_dimension_numbers<[1], [0], [0], [1], [0, 0, 1, 1], [], []>} : vector<16x1xbf16>, vector<1x3xbf16>, vector<16x3xf32> -> vector<16x3xf32>
      %62 = arith.addf %56, %61 : vector<16x3xf32>
      %c2_i32_55 = arith.constant 2 : i32
      %63 = arith.addi %arg5, %c2_i32_55 : i32
      %c0_56 = arith.constant 0 : index
      %64 = arith.index_cast %63 : i32 to index
      %c1_57 = arith.constant 1 : index
      %c0_58 = arith.constant 0 : index
      %65 = vector.load %arg1[%c0_56, %64, %c1_57, %c0_58] : memref<1x18x18x1xbf16, #tpu.memory_space<vmem>>, vector<1x1x16x1xbf16>
      %66 = vector.shape_cast %65 : vector<1x1x16x1xbf16> to vector<16x1xbf16>
      %cst_59 = arith.constant dense<0.000000e+00> : vector<16x3xf32>
      %67 = tpu.matmul %66, %15, %cst_59 {dimension_numbers = #tpu.dot_dimension_numbers<[1], [0], [0], [1], [0, 0, 1, 1], [], []>} : vector<16x1xbf16>, vector<1x3xbf16>, vector<16x3xf32> -> vector<16x3xf32>
      %68 = arith.addf %62, %67 : vector<16x3xf32>
      %c2_i32_60 = arith.constant 2 : i32
      %69 = arith.addi %arg5, %c2_i32_60 : i32
      %c0_61 = arith.constant 0 : index
      %70 = arith.index_cast %69 : i32 to index
      %c2_62 = arith.constant 2 : index
      %c0_63 = arith.constant 0 : index
      %71 = vector.load %arg1[%c0_61, %70, %c2_62, %c0_63] : memref<1x18x18x1xbf16, #tpu.memory_space<vmem>>, vector<1x1x16x1xbf16>
      %72 = vector.shape_cast %71 : vector<1x1x16x1xbf16> to vector<16x1xbf16>
      %cst_64 = arith.constant dense<0.000000e+00> : vector<16x3xf32>
      %73 = tpu.matmul %72, %17, %cst_64 {dimension_numbers = #tpu.dot_dimension_numbers<[1], [0], [0], [1], [0, 0, 1, 1], [], []>} : vector<16x1xbf16>, vector<1x3xbf16>, vector<16x3xf32> -> vector<16x3xf32>
      %74 = arith.addf %68, %73 : vector<16x3xf32>
      %75 = vector.broadcast %18 : vector<1x3xf32> to vector<16x3xf32>
      %76 = arith.addf %74, %75 : vector<16x3xf32>
      %cst_65 = arith.constant 0.000000e+00 : f32
      %77 = vector.broadcast %cst_65 : f32 to vector<16x3xf32>
      %78 = arith.subf %77, %76 : vector<16x3xf32>
      %79 = math.exp %78 : vector<16x3xf32>
      %cst_66 = arith.constant 1.000000e+00 : f32
      %80 = vector.broadcast %cst_66 : f32 to vector<16x3xf32>
      %81 = arith.addf %80, %79 : vector<16x3xf32>
      %cst_67 = arith.constant 1.000000e+00 : f32
      %82 = vector.broadcast %cst_67 : f32 to vector<16x3xf32>
      %83 = arith.divf %82, %81 : vector<16x3xf32>
      %c0_68 = arith.constant 0 : index
      %84 = arith.index_cast %arg5 : i32 to index
      %c0_69 = arith.constant 0 : index
      %c0_70 = arith.constant 0 : index
      %85 = vector.load %arg4[%c0_68, %84, %c0_69, %c0_70] : memref<1x16x16x3xf32, #tpu.memory_space<vmem>>, vector<1x1x16x3xf32>
      %86 = vector.shape_cast %85 : vector<1x1x16x3xf32> to vector<16x3xf32>
      %87 = vector.shape_cast %83 : vector<16x3xf32> to vector<1x1x16x3xf32>
      tpu.vector_store %arg4[%c0_68, %84, %c0_69, %c0_70], %87 {strides = array<i32>} : memref<1x16x16x3xf32, #tpu.memory_space<vmem>>, vector<1x1x16x3xf32>,
    }
    %c16_i32_20 = arith.constant 16 : i32
    return
  }
  func.func @transform_0(%arg0: i32) -> (i32, i32, i32, i32) {
    %c0_i32 = arith.constant 0 : i32
    %c0_i32_0 = arith.constant 0 : i32
    %c0_i32_1 = arith.constant 0 : i32
    %c0_i32_2 = arith.constant 0 : i32
    return %arg0, %c0_i32, %c0_i32_0, %c0_i32_1 : i32, i32, i32, i32
  }
  func.func @transform_1(%arg0: i32) -> (i32, i32, i32) {
    %c0_i32 = arith.constant 0 : i32
    %c0_i32_0 = arith.constant 0 : i32
    %c0_i32_1 = arith.constant 0 : i32
    %c0_i32_2 = arith.constant 0 : i32
    return %c0_i32, %c0_i32_0, %c0_i32_1 : i32, i32, i32
  }
  func.func @transform_2(%arg0: i32) -> (i32, i32) {
    %c0_i32 = arith.constant 0 : i32
    %c0_i32_0 = arith.constant 0 : i32
    %c0_i32_1 = arith.constant 0 : i32
    return %c0_i32, %c0_i32_0 : i32, i32
  }
  func.func @transform_3(%arg0: i32) -> (i32, i32, i32, i32) {
    %c0_i32 = arith.constant 0 : i32
    %c0_i32_0 = arith.constant 0 : i32
    %c0_i32_1 = arith.constant 0 : i32
    %c0_i32_2 = arith.constant 0 : i32
    return %arg0, %c0_i32, %c0_i32_0, %c0_i32_1 : i32, i32, i32, i32
  }
}

</mosaic_0001>

<bundles_post_ra>
// kernel: image_decoder_forward.9
= control target key start
LH: loop header
LB: loop body
LE: loop exit
PB: predicated region body
PF: predicated region fallthrough
CT: control target
= control target key end

     0   :  { %v99_v0 = vmov 0.0   ;;  %vm100_vm0 = vmmov 0   ;;  %vm31_vm1 = vcmask 130048   ;;  %vm79_vm3 = vcmask 253952   ;;  %s133_s1 = inlined_call_operand.vmem [shape: bf16[16,32], index: 1, kind: input, shape index: {}]   ;;  %s134_s0 = inlined_call_operand.vmem [shape: bf16[2,16], index: 0, kind: input, shape index: {}]   ;;  %s135_s2 = inlined_call_operand.vmem [shape: f32[1,32], index: 2, kind: input, shape index: {}]   ;;  %s136_s3 = inlined_call_operand.vmem [shape: bf16[2,32], index: 3, kind: output, shape index: {}]  }
   0x1   :  { %90 = vmatprep.subr.bf16.mxu0 %v99_v0  ;;  %v98_v1 = vld [vmem:[%s133_s1] sm:$0xff]   ;;  %92 = vmatprep.mubr.msk.bf16.mxu0 %vm100_vm0, %v99_v0 }
   0x2   :  { %91 = vmatpush3.bf16.msra.mxu0 %v98_v1  ;;  %v15_v2 = vld [vmem:[%s134_s0] sm:$0x1] }
   0x3   :  { %v85_v3 = vld [vmem:[%s135_s2] ss:$0 sm:$0xff] }
   0x5   :  { %93 = vmatmul.mubr.msk.bf16.vlgmr.msra.gmra.mrb[0].mxu0 %vm31_vm1, %v15_v2 }
  0xd8   :  { %v69_v4 = vpop.f32.mrb[0].mxu0 }
  0xd9   :  { %v70_v5 = vadd.f32 %v85_v3, %v69_v4  ;;  %v94_v6 = vpop.f32.mrb[1].mxu0 }
  0xda   :  { %v72_v7 = vpop.f32.mrb[2].mxu0 }
  0xdb   :  { %vm75_vm2 = vcmp.ge.f32.partialorder %v70_v5, 0.0  ;;  %v76_v8 = vmul.f32 0.01, %v70_v5  ;;  %v95_v9 = vpop.f32.mrb[3].mxu0 }
  0xdd   :  { %v77_v10 = vsel %vm75_vm2, %v70_v5, %v76_v8 }
  0xde   :  { %v78_v11 = vpack.c.bf16 %v77_v10, %v77_v10 }
  0xe0   :  { %80 = vst.msk [vmem:[%s136_s3] sm:$0x1] %vm79_vm3, %v78_v11 }

// kernel: image_decoder_forward.10
= control target key start
LH: loop header
LB: loop body
LE: loop exit
PB: predicated region body
PF: predicated region fallthrough
CT: control target
= control target key end

     0   :  { %v112_v0 = vmov 0.0   ;;  %vm113_vm0 = vmmov 0   ;;  %vm39_vm1 = vcmask 261120   ;;  %vm87_vm3 = vcmask 24576   ;;  %s149_s1 = inlined_call_operand.vmem [shape: bf16[32,4], index: 1, kind: input, shape index: {}]   ;;  %s150_s0 = inlined_call_operand.vmem [shape: bf16[2,32], index: 0, kind: input, shape index: {}]   ;;  %s151_s2 = inlined_call_operand.vmem [shape: f32[1,4], index: 2, kind: input, shape index: {}]   ;;  %s152_s3 = inlined_call_operand.vmem [shape: bf16[2,4], index: 3, kind: output, shape index: {}]  }
   0x1   :  { %100 = vmatprep.subr.bf16.mxu0 %v112_v0  ;;  %v110_v1 = vld [vmem:[%s149_s1] sm:$0xff]   ;;  %104 = vmatprep.mubr.msk.bf16.mxu0 %vm113_vm0, %v112_v0  ;;  %v111_v2 = vld [vmem:[%s149_s1 + $0x8] sm:$0xff]  }
   0x2   :  { %101 = vmatpush3.bf16.msra.mxu0 %v110_v1  ;;  %v15_v3 = vld [vmem:[%s150_s0] sm:$0x1] }
   0x3   :  { %102 = vmatprep.subr.bf16.mxu0 %v112_v0  ;;  %v93_v4 = vld [vmem:[%s151_s2] ss:$0 sm:$0xff] }
   0x6   :  { %103 = vmatpush3.bf16.msra.mxu0 %v111_v2 }
   0x9   :  { %105 = vmatmul.mubr.msk.bf16.vlgmr.msra.gmra.mrb[0].mxu0 %vm39_vm1, %v15_v3 }
  0xdc   :  { %v77_v5 = vpop.f32.mrb[0].mxu0 }
  0xdd   :  { %v78_v6 = vadd.f32 %v93_v4, %v77_v5  ;;  %v106_v7 = vpop.f32.mrb[1].mxu0 }
  0xde   :  { %v80_v8 = vpop.f32.mrb[2].mxu0 }
  0xdf   :  { %vm83_vm2 = vcmp.ge.f32.partialorder %v78_v6, 0.0  ;;  %v84_v9 = vmul.f32 0.01, %v78_v6  ;;  %v107_v10 = vpop.f32.mrb[3].mxu0 }
  0xe1   :  { %v85_v11 = vsel %vm83_vm2, %v78_v6, %v84_v9 }
  0xe2   :  { %v86_v12 = vpack.c.bf16 %v85_v11, %v85_v11 }
  0xe4   :  { %88 = vst.msk [vmem:[%s152_s3] sm:$0x1] %vm87_vm3, %v86_v12 }

// kernel: image_decoder_forward.11
= control target key start
LH: loop header
LB: loop body
LE: loop exit
PB: predicated region body
PF: predicated region fallthrough
CT: control target
= control target key end

     0   :  { %s960_s12 = smov 0   ;;  %s1111_s0 = inlined_call_operand.vmem [shape: bf16[2,4,4,1], index: 0, kind: input, shape index: {}]   ;;  %s1112_s1 = inlined_call_operand.vmem [shape: bf16[9,1,8], index: 1, kind: input, shape index: {}]   ;;  %s1113_s2 = inlined_call_operand.vmem [shape: f32[1,8], index: 2, kind: input, shape index: {}]   ;;  %s1114_s3 = inlined_call_operand.vmem [shape: bf16[2,2,2,8], index: 3, kind: output, shape index: {}]  }
   0x1 LB: > { %s786_s13 = sadd.s32 4294967295, %s931_s12   ;;  %p790_p0 = scmp.ge.s32.totalorder %s931_s12, 1  ;;  %s931_s12 = sphi %s960_s12, %s13_s12  }
   0x2   : > { %p137_p1 = scmp.lt.s32.totalorder %s931_s12, 3 }
   0x4   : > { %p138_p2 = pnand %p790_p0, %p137_p1 }
   0x5   : > { %p160_p3 = scmp.lt.s32.totalorder (!%p138_p2), %s786_s13, 1  ;;  %v971_v0 = vld [vmem:[%s1112_s1] sm:$0x1] (!%p138_p2)  ;;  %v976_v1 = vld [vmem:[%s1112_s1 + $0x1] sm:$0x1] (!%p138_p2)  ;;  %s1028_s17 = smov (!%p138_p2), 0  }
   0x6   : > { %141 = sbr.rel (%p138_p2) target bundleno = 276 (0x114), region = 32  ;;  %v981_v2 = vld [vmem:[%s1112_s1 + $0x2] sm:$0x1] (!%p138_p2)  ;;  %v986_v3 = vld [vmem:[%s1112_s1 + $0x3] sm:$0x1] (!%p138_p2) }
   0x7   : > { %v991_v4 = vld [vmem:[%s1112_s1 + $0x4] sm:$0x1] (!%p138_p2)  ;;  %v996_v5 = vld [vmem:[%s1112_s1 + $0x5] sm:$0x1] (!%p138_p2)  ;;  %v1001_v6 = vld [vmem:[%s1112_s1 + $0x6] sm:$0x1] (!%p138_p2) }
   0x8   : > { %v1006_v7 = vld [vmem:[%s1112_s1 + $0x7] sm:$0x1] (!%p138_p2)  ;;  %v1011_v8 = vld [vmem:[%s1112_s1 + $0x8] sm:$0x1] (!%p138_p2)  ;;  %v1016_v9 = vld [vmem:[%s1113_s2] ss:$0 sm:$0xff] (!%p138_p2) }
   0xd   : > { %s1116_s13 = smov (!%p160_p3, %s786_s13), 1 }
   0xe   : > { %s829_s7 = sshll.u32 %s1116_s13, 3  ;;  %s793_s8 = sshll.u32 %s1116_s13, 1 }
   0xf   : > { %s1021_s11 = scalar_lea.vmem %s1111_s0, %s829_s7  ;;  %s1026_s16 = scalar_lea.vmem %s1114_s3, %s793_s8 }
  0x10 LB: >> { %vm217_vm0 = vcmask 1040384   ;;  %v937_v10 = vmov 0.0   ;;  %v938_v11 = vmov 0   ;;  %vm939_vm1 = vmmov 0   ;;  %s802_s13 = sshll.u32 %s935_s17, 1  ;;  %s716_s19 = scalar_lea.vmem %s1026_s16, %s935_s17  ;;  %s935_s17 = sphi %s1028_s17, %s193_s17  }
  0x11   : >> { %848 = vmatprep.subr.bf16.mxu0 %v937_v10  ;;  %v1034_v12 = vsel %vm217_vm0, 65535, %v938_v11  ;;  %854 = vmatprep.subr.bf16.mxu1 %v937_v10  ;;  %s1047_s18 = scalar_lea.vmem %s1021_s11, %s802_s13  ;;  %vm213_vm2 = vcmask 7168   ;;  %vm717_vm3 = vcmask 57344   ;;  %s193_s17 = sadd.s32 1, %s935_s17  }
  0x12   : >> { %v221_v13 = vand.u32 %v976_v1, %v1034_v12  ;;  %v267_v14 = vand.u32 %v1034_v12, %v971_v0  ;;  %850 = vmatprep.mubr.msk.bf16.mxu0 %vm939_vm1, %v937_v10  ;;  %856 = vmatprep.mubr.msk.bf16.mxu1 %vm939_vm1, %v937_v10  ;;  %v803_v15 = vld.sshfl [vmem:[%s1047_s18] sm:$0x3 pattern:$0x76325410]  ;;  %v374_v17 = vand.u32 %v986_v3, %v1034_v12  ;;  %v809_v24 = vld [vmem:[%s1047_s18 + $0x2] sm:$0x1] }
  0x13   : >> { %v196_v16 = vld [vmem:[%s1047_s18] sm:$0x1]  ;;  %v207_v18 = vshrl.u32 %v803_v15, 16  ;;  %v209_v19 = vshll.u32 %v803_v15, 16  ;;  %v323_v21 = vand.u32 %v981_v2, %v1034_v12  ;;  %v494_v25 = vand.u32 %v996_v5, %v1034_v12  ;;  %v818_v42 = vld [vmem:[%s1047_s18 + $0x4] sm:$0x1] }
  0x14   : >> { %849 = vmatpush3.bf16.msra.mxu0 %v221_v13  ;;  %855 = vmatpush3.bf16.msra.mxu1 %v267_v14  ;;  %v806_v23 = vld.sshfl [vmem:[%s1047_s18] sm:$0x2 pattern:$0x76325410]  ;;  %v437_v30 = vand.u32 %v991_v4, %v1034_v12  ;;  %v608_v36 = vand.u32 %v1006_v7, %v1034_v12  ;;  %v545_v40 = vand.u32 %v1001_v6, %v1034_v12  ;;  %p190_p4 = scmp.ge.s32.totalorder %s193_s17, 2  }
  0x15   : >> { %860 = vmatprep.subr.bf16.mxu0 %v937_v10  ;;  %866 = vmatprep.subr.bf16.mxu1 %v937_v10  ;;  %v211_v20 = vrot.slane %v209_v19, 1  ;;  %v812_v26 = vld.sshfl [vmem:[%s1047_s18 + $0x2] sm:$0x3 pattern:$0x76325410]  ;;  %v318_v27 = vrot.slane %v806_v23, 1  ;;  %v665_v43 = vand.u32 %v1011_v8, %v1034_v12 }
  0x16   : >> { %v429_v28 = vshll.u32 %v812_v26, 16  ;;  %v815_v29 = vld.sshfl [vmem:[%s1047_s18 + $0x2] sm:$0x2 pattern:$0x76325410]  ;;  %v427_v32 = vshrl.u32 %v812_v26, 16 }
  0x17   : >> { %857 = vmatmul.mubr.msk.bf16.vlgmr.msra.gmra.mrb[0].mxu1 %vm213_vm2, %v196_v16  ;;  %v212_v22 = vor.u32 %v211_v20, %v207_v18  ;;  %v821_v31 = vld.sshfl [vmem:[%s1047_s18 + $0x4] sm:$0x3 pattern:$0x76325410]  ;;  %v489_v34 = vrot.slane %v815_v29, 1 }
  0x18   : >> { %867 = vmatpush3.bf16.msra.mxu1 %v374_v17  ;;  %868 = vmatprep.mubr.msk.bf16.mxu1 %vm939_vm1, %v937_v10  ;;  %v431_v33 = vrot.slane %v429_v28, 1  ;;  %v600_v35 = vshll.u32 %v821_v31, 16  ;;  %v598_v38 = vshrl.u32 %v821_v31, 16 }
  0x19   : >> { %878 = vmatprep.subr.bf16.mxu1 %v937_v10  ;;  %851 = vmatmul.mubr.msk.bf16.vlgmr.msra.gmra.mrb[0].mxu0 %vm213_vm2, %v212_v22  ;;  %v824_v44 = vld.sshfl [vmem:[%s1047_s18 + $0x4] sm:$0x2 pattern:$0x76325410] }
  0x1a   : >> { %861 = vmatpush3.bf16.msra.mxu0 %v323_v21  ;;  %862 = vmatprep.mubr.msk.bf16.mxu0 %vm939_vm1, %v937_v10  ;;  %v432_v37 = vor.u32 %v431_v33, %v427_v32  ;;  %v602_v39 = vrot.slane %v600_v35, 1  ;;  %v660_v45 = vrot.slane %v824_v44, 1 }
  0x1b   : >> { %872 = vmatprep.subr.bf16.mxu0 %v937_v10 }
  0x1c   : >> { %v603_v41 = vor.u32 %v602_v39, %v598_v38 }
  0x1f   : >> { %869 = vmatmul.mubr.msk.bf16.vlgmr.msra.gmra.mrb[4].mxu1 %vm213_vm2, %v809_v24 }
  0x20   : >> { %879 = vmatpush3.bf16.msra.mxu1 %v494_v25  ;;  %880 = vmatprep.mubr.msk.bf16.mxu1 %vm939_vm1, %v937_v10 }
  0x21   : >> { %890 = vmatprep.subr.bf16.mxu1 %v937_v10  ;;  %863 = vmatmul.mubr.msk.bf16.vlgmr.msra.gmra.mrb[4].mxu0 %vm213_vm2, %v318_v27 }
  0x22   : >> { %873 = vmatpush3.bf16.msra.mxu0 %v437_v30  ;;  %874 = vmatprep.mubr.msk.bf16.mxu0 %vm939_vm1, %v937_v10 }
  0x23   : >> { %884 = vmatprep.subr.bf16.mxu0 %v937_v10 }
  0x27   : >> { %881 = vmatmul.mubr.msk.bf16.vlgmr.msra.gmra.mrb[8].mxu1 %vm213_vm2, %v489_v34 }
  0x28   : >> { %891 = vmatpush3.bf16.msra.mxu1 %v608_v36  ;;  %892 = vmatprep.mubr.msk.bf16.mxu1 %vm939_vm1, %v937_v10 }
  0x29   : >> { %875 = vmatmul.mubr.msk.bf16.vlgmr.msra.gmra.mrb[8].mxu0 %vm213_vm2, %v432_v37 }
  0x2a   : >> { %885 = vmatpush3.bf16.msra.mxu0 %v545_v40  ;;  %886 = vmatprep.mubr.msk.bf16.mxu0 %vm939_vm1, %v937_v10 }
  0x2b   : >> { %896 = vmatprep.subr.bf16.mxu0 %v937_v10 }
  0x2f   : >> { %893 = vmatmul.mubr.msk.bf16.vlgmr.msra.gmra.mrb[12].mxu1 %vm213_vm2, %v603_v41 }
  0x31   : >> { %887 = vmatmul.mubr.msk.bf16.vlgmr.msra.gmra.mrb[12].mxu0 %vm213_vm2, %v818_v42 }
  0x32   : >> { %897 = vmatpush3.bf16.msra.mxu0 %v665_v43  ;;  %898 = vmatprep.mubr.msk.bf16.mxu0 %vm939_vm1, %v937_v10 }
  0x39   : >> { %899 = vmatmul.mubr.msk.bf16.vlgmr.msra.gmra.mrb[16].mxu0 %vm213_vm2, %v660_v45 }
  0xea   : >> { %v303_v46 = vpop.f32.mrb[0].mxu1 }
  0xeb   : >> { %v858_v47 = vpop.f32.mrb[1].mxu1 }
  0xec   : >> { %v306_v48 = vpop.f32.mrb[2].mxu1  ;;  %v257_v50 = vpop.f32.mrb[0].mxu0 }
  0xed   : >> { %v859_v49 = vpop.f32.mrb[3].mxu1  ;;  %v304_v51 = vadd.f32 %v303_v46, %v257_v50  ;;  %v852_v52 = vpop.f32.mrb[1].mxu0 }
  0xee   : >> { %v260_v53 = vpop.f32.mrb[2].mxu0 }
  0xef   : >> { %v853_v54 = vpop.f32.mrb[3].mxu0 }
  0xf2   : >> { %v410_v55 = vpop.f32.mrb[4].mxu1 }
  0xf3   : >> { %v870_v56 = vpop.f32.mrb[5].mxu1 }
  0xf4   : >> { %v413_v57 = vpop.f32.mrb[6].mxu1  ;;  %v359_v59 = vpop.f32.mrb[4].mxu0 }
  0xf5   : >> { %v871_v58 = vpop.f32.mrb[7].mxu1  ;;  %v365_v60 = vadd.f32 %v359_v59, %v304_v51  ;;  %v864_v61 = vpop.f32.mrb[5].mxu0 }
  0xf6   : >> { %v362_v62 = vpop.f32.mrb[6].mxu0 }
  0xf7   : >> { %v416_v63 = vadd.f32 %v410_v55, %v365_v60  ;;  %v865_v10 = vpop.f32.mrb[7].mxu0 }
  0xfa   : >> { %v530_v11 = vpop.f32.mrb[8].mxu1 }
  0xfb   : >> { %v882_v12 = vpop.f32.mrb[9].mxu1 }
  0xfc   : >> { %v533_v13 = vpop.f32.mrb[10].mxu1  ;;  %v473_v15 = vpop.f32.mrb[8].mxu0 }
  0xfd   : >> { %v883_v14 = vpop.f32.mrb[11].mxu1  ;;  %v479_v16 = vadd.f32 %v473_v15, %v416_v63  ;;  %v876_v17 = vpop.f32.mrb[9].mxu0 }
  0xfe   : >> { %v476_v18 = vpop.f32.mrb[10].mxu0 }
  0xff   : >> { %v536_v19 = vadd.f32 %v530_v11, %v479_v16  ;;  %v877_v20 = vpop.f32.mrb[11].mxu0 }
 0x102   : >> { %v644_v21 = vpop.f32.mrb[12].mxu1 }
 0x103   : >> { %v894_v22 = vpop.f32.mrb[13].mxu1 }
 0x104   : >> { %v647_v23 = vpop.f32.mrb[14].mxu1  ;;  %v581_v25 = vpop.f32.mrb[12].mxu0 }
 0x105   : >> { %v895_v24 = vpop.f32.mrb[15].mxu1  ;;  %v587_v26 = vadd.f32 %v581_v25, %v536_v19  ;;  %v888_v27 = vpop.f32.mrb[13].mxu0 }
 0x106   : >> { %v584_v28 = vpop.f32.mrb[14].mxu0 }
 0x107   : >> { %v650_v29 = vadd.f32 %v644_v21, %v587_v26  ;;  %v889_v30 = vpop.f32.mrb[15].mxu0 }
 0x10c   : >> { %v701_v31 = vpop.f32.mrb[16].mxu0 }
 0x10d   : >> { %v707_v32 = vadd.f32 %v701_v31, %v650_v29  ;;  %v900_v33 = vpop.f32.mrb[17].mxu0  ;;  %192 = sbr.rel (!%p190_p4) target bundleno = 16 (0x10), region = 81 }
 0x10e   : >> { %v704_v34 = vpop.f32.mrb[18].mxu0 }
 0x10f   : >> { %v714_v35 = vadd.f32 %v1016_v9, %v707_v32  ;;  %v901_v36 = vpop.f32.mrb[19].mxu0 }
 0x111   : >> { %v715_v37 = vpack.c.bf16 %v714_v35, %v714_v35 }
 0x113   : >> { %718 = vst.msk [vmem:[%s716_s19] sm:$0x1] %vm717_vm3, %v715_v37 }
 0x114 PF: > { %s13_s12 = sadd.s32 1, %s931_s12  }
 0x115   : > { %p10_p5 = scmp.ge.s32.totalorder %s13_s12, 4  }
 0x117   :  { %12 = sbr.rel (!%p10_p5) target bundleno = 1 (0x1), region = 92 }

// kernel: image_decoder_forward.12
= control target key start
LH: loop header
LB: loop body
LE: loop exit
PB: predicated region body
PF: predicated region fallthrough
CT: control target
= control target key end

     0   :  { %s980_s12 = smov 0   ;;  %s1137_s0 = inlined_call_operand.vmem [shape: bf16[2,4,4,8], index: 0, kind: input, shape index: {}]   ;;  %s1138_s1 = inlined_call_operand.vmem [shape: bf16[9,8,16], index: 1, kind: input, shape index: {}]   ;;  %s1139_s2 = inlined_call_operand.vmem [shape: f32[1,16], index: 2, kind: input, shape index: {}]   ;;  %s1140_s3 = inlined_call_operand.vmem [shape: bf16[2,2,2,16], index: 3, kind: output, shape index: {}]  }
   0x1 LB: > { %s812_s13 = sadd.s32 4294967295, %s951_s12   ;;  %p816_p0 = scmp.ge.s32.totalorder %s951_s12, 1  ;;  %s951_s12 = sphi %s980_s12, %s13_s12  }
   0x2   : > { %p137_p1 = scmp.lt.s32.totalorder %s951_s12, 3 }
   0x4   : > { %p138_p2 = pnand %p816_p0, %p137_p1 }
   0x5   : > { %p160_p3 = scmp.lt.s32.totalorder (!%p138_p2), %s812_s13, 1  ;;  %v991_v0 = vld [vmem:[%s1138_s1] sm:$0xf] (!%p138_p2)  ;;  %v996_v1 = vld [vmem:[%s1138_s1 + $0x4] sm:$0xf] (!%p138_p2)  ;;  %s1048_s17 = smov (!%p138_p2), 0  }
   0x6   : > { %141 = sbr.rel (%p138_p2) target bundleno = 282 (0x11a), region = 32  ;;  %v1001_v2 = vld [vmem:[%s1138_s1 + $0x8] sm:$0xf] (!%p138_p2)  ;;  %v1006_v3 = vld [vmem:[%s1138_s1 + $0xc] sm:$0xf] (!%p138_p2) }
   0x7   : > { %v1011_v4 = vld [vmem:[%s1138_s1 + $0x10] sm:$0xf] (!%p138_p2)  ;;  %v1016_v5 = vld [vmem:[%s1138_s1 + $0x14] sm:$0xf] (!%p138_p2)  ;;  %v1021_v6 = vld [vmem:[%s1138_s1 + $0x18] sm:$0xf] (!%p138_p2) }
   0x8   : > { %v1026_v7 = vld [vmem:[%s1138_s1 + $0x1c] sm:$0xf] (!%p138_p2)  ;;  %v1031_v8 = vld [vmem:[%s1138_s1 + $0x20] sm:$0xf] (!%p138_p2) }
   0x9   : > { %v1036_v9 = vld [vmem:[%s1139_s2] ss:$0 sm:$0xff] (!%p138_p2) }
   0xd   : > { %s1142_s13 = smov (!%p160_p3, %s812_s13), 1 }
   0xe   : > { %s849_s7 = sshll.u32 %s1142_s13, 3  ;;  %s819_s8 = sshll.u32 %s1142_s13, 1 }
   0xf   : > { %s1041_s11 = scalar_lea.vmem %s1137_s0, %s849_s7  ;;  %s1046_s16 = scalar_lea.vmem %s1140_s3, %s819_s8 }
  0x10 LB: >> { %vm224_vm0 = vcmask 1043456   ;;  %v957_v10 = vmov 0.0   ;;  %v958_v13 = vmov 1983009808   ;;  %v209_v15 = vlaneseq  ;;  %s828_s13 = sshll.u32 %s955_s17, 1  ;;  %s742_s19 = scalar_lea.vmem %s1046_s16, %s955_s17  ;;  %s955_s17 = sphi %s1048_s17, %s194_s17  }
  0x11   : >> { %868 = vmatprep.subr.bf16.mxu0 %v957_v10  ;;  %v226_v11 = vsel %vm224_vm0, %v996_v1, 0  ;;  %874 = vmatprep.subr.bf16.mxu1 %v957_v10  ;;  %v272_v12 = vsel %vm224_vm0, %v991_v0, 0  ;;  %v207_v14 = vunpack.c.l.s4 %v958_v13  ;;  %vm959_vm1 = vmmov 0   ;;  %s1065_s18 = scalar_lea.vmem %s1041_s11, %s828_s13  ;;  %s194_s17 = sadd.s32 1, %s955_s17  }
  0x12   : >> { %869 = vmatpush3.bf16.msra.mxu0 %v226_v11  ;;  %875 = vmatpush3.bf16.msra.mxu1 %v272_v12  ;;  %v210_v17 = vshrl.u32 %v209_v15, 7  ;;  %v201_v18 = vld [vmem:[%s1065_s18] sm:$0x3]  ;;  %vm220_vm4 = vcmask 64512   ;;  %v385_v25 = vsel %vm224_vm0, %v1006_v3, 0  ;;  %v331_v43 = vsel %vm224_vm0, %v1001_v2, 0 }
  0x13   : >> { %870 = vmatprep.mubr.msk.bf16.mxu0 %vm959_vm1, %v957_v10  ;;  %876 = vmatprep.mubr.msk.bf16.mxu1 %vm959_vm1, %v957_v10  ;;  %v208_v16 = vunpack.c.0.s8 %v207_v14  ;;  %v197_v19 = vld [vmem:[%s1065_s18] sm:$0x1]  ;;  %vm202_vm2 = vcmp.ge.bf16.partialorder %v201_v18, 0  ;;  %v203_v20 = vmul.bf16 1009007652, %v201_v18  ;;  %v511_v48 = vsel %vm224_vm0, %v1016_v5, 0 }
  0x14   : >> { %880 = vmatprep.subr.bf16.mxu0 %v957_v10  ;;  %886 = vmatprep.subr.bf16.mxu1 %v957_v10  ;;  %vm198_vm3 = vcmp.ge.bf16.partialorder %v197_v19, 0  ;;  %v199_v22 = vmul.bf16 1009007652, %v197_v19  ;;  %v314_v23 = vld [vmem:[%s1065_s18] sm:$0x2]  ;;  %v451_v54 = vsel %vm224_vm0, %v1011_v4, 0 }
  0x15   : >> { %v1071_v21 = vsub.s32 %v208_v16, %v210_v17  ;;  %v204_v24 = vsel %vm202_vm2, %v201_v18, %v203_v20  ;;  %v835_v26 = vld [vmem:[%s1065_s18 + $0x2] sm:$0x3]  ;;  %v316_v31 = vmul.bf16 1009007652, %v314_v23  ;;  %vm315_vm5 = vcmp.ge.bf16.partialorder %v314_v23, 0  ;;  %p191_p4 = scmp.ge.s32.totalorder %s194_s17, 2  }
  0x16   : >> { %v200_v28 = vsel %vm198_vm3, %v197_v19, %v199_v22  ;;  %v833_v29 = vld [vmem:[%s1065_s18 + $0x2] sm:$0x1]  ;;  %v837_v30 = vld [vmem:[%s1065_s18 + $0x2] sm:$0x2]  ;;  %v430_v32 = vmul.bf16 1009007652, %v835_v26 }
  0x17   : >> { %v212_v27 = vrot.slane %v204_v24, %v1071_v21  ;;  %877 = vmatmul.mubr.msk.bf16.vlgmr.msra.gmra.mrb[0].mxu1 %vm220_vm4, %v200_v28  ;;  %vm429_vm6 = vcmp.ge.bf16.partialorder %v835_v26, 0  ;;  %v842_v35 = vld [vmem:[%s1065_s18 + $0x4] sm:$0x3]  ;;  %v379_v36 = vmul.bf16 1009007652, %v833_v29  ;;  %vm378_vm7 = vcmp.ge.bf16.partialorder %v833_v29, 0 }
  0x18   : >> { %887 = vmatpush3.bf16.msra.mxu1 %v385_v25  ;;  %888 = vmatprep.mubr.msk.bf16.mxu1 %vm959_vm1, %v957_v10  ;;  %v496_v37 = vmul.bf16 1009007652, %v837_v30  ;;  %vm495_vm8 = vcmp.ge.bf16.partialorder %v837_v30, 0  ;;  %v317_v39 = vsel %vm315_vm5, %v314_v23, %v316_v31  ;;  %v431_v40 = vsel %vm429_vm6, %v835_v26, %v430_v32  ;;  %v840_v11 = vld [vmem:[%s1065_s18 + $0x4] sm:$0x1] }
  0x19   : >> { %v214_v33 = vshrl.u32 %v212_v27, 16  ;;  %v216_v34 = vshll.u32 %v212_v27, 16  ;;  %898 = vmatprep.subr.bf16.mxu1 %v957_v10  ;;  %vm609_vm9 = vcmp.ge.bf16.partialorder %v842_v35, 0  ;;  %v610_v41 = vmul.bf16 1009007652, %v842_v35 }
  0x1a   : >> { %v380_v44 = vsel %vm378_vm7, %v833_v29, %v379_v36  ;;  %v497_v45 = vsel %vm495_vm8, %v837_v30, %v496_v37  ;;  %v325_v47 = vrot.slane %v317_v39, %v1071_v21  ;;  %v439_v49 = vrot.slane %v431_v40, %v1071_v21  ;;  %v844_v13 = vld [vmem:[%s1065_s18 + $0x4] sm:$0x2] }
  0x1b   : >> { %v218_v38 = vrot.slane %v216_v34, 1  ;;  %v611_v46 = vsel %vm609_vm9, %v842_v35, %v610_v41  ;;  %v505_v50 = vrot.slane %v497_v45, %v1071_v21  ;;  %v631_v59 = vsel %vm224_vm0, %v1026_v7, 0 }
  0x1c   : >> { %v619_v51 = vrot.slane %v611_v46, %v1071_v21  ;;  %v326_v52 = vrot.slane %v325_v47, 1  ;;  %v443_v53 = vshll.u32 %v439_v49, 16  ;;  %v441_v57 = vshrl.u32 %v439_v49, 16 }
  0x1d   : >> { %v219_v42 = vor.u32 %v218_v38, %v214_v33  ;;  %v506_v55 = vrot.slane %v505_v50, 1  ;;  %v565_v63 = vsel %vm224_vm0, %v1021_v6, 0  ;;  %v559_v14 = vmul.bf16 1009007652, %v840_v11 }
  0x1e   : >> { %v623_v56 = vshll.u32 %v619_v51, 16  ;;  %v445_v58 = vrot.slane %v443_v53, 1  ;;  %v621_v60 = vshrl.u32 %v619_v51, 16  ;;  %v676_v15 = vmul.bf16 1009007652, %v844_v13 }
  0x1f   : >> { %871 = vmatmul.mubr.msk.bf16.vlgmr.msra.gmra.mrb[0].mxu0 %vm220_vm4, %v219_v42  ;;  %889 = vmatmul.mubr.msk.bf16.vlgmr.msra.gmra.mrb[4].mxu1 %vm220_vm4, %v380_v44  ;;  %vm558_vm10 = vcmp.ge.bf16.partialorder %v840_v11, 0  ;;  %vm675_vm11 = vcmp.ge.bf16.partialorder %v844_v13, 0  ;;  %v691_v18 = vsel %vm224_vm0, %v1031_v8, 0  ;;  %vm743_vm12 = vcmask 122880  }
  0x20   : >> { %881 = vmatpush3.bf16.msra.mxu0 %v331_v43  ;;  %882 = vmatprep.mubr.msk.bf16.mxu0 %vm959_vm1, %v957_v10  ;;  %v625_v61 = vrot.slane %v623_v56, 1  ;;  %v446_v62 = vor.u32 %v445_v58, %v441_v57  ;;  %v560_v16 = vsel %vm558_vm10, %v840_v11, %v559_v14  ;;  %v677_v17 = vsel %vm675_vm11, %v844_v13, %v676_v15 }
  0x21   : >> { %892 = vmatprep.subr.bf16.mxu0 %v957_v10  ;;  %899 = vmatpush3.bf16.msra.mxu1 %v511_v48  ;;  %v685_v19 = vrot.slane %v677_v17, %v1071_v21 }
  0x22   : >> { %900 = vmatprep.mubr.msk.bf16.mxu1 %vm959_vm1, %v957_v10  ;;  %910 = vmatprep.subr.bf16.mxu1 %v957_v10  ;;  %v626_v12 = vor.u32 %v625_v61, %v621_v60 }
  0x23   : >> { %v686_v20 = vrot.slane %v685_v19, 1 }
  0x27   : >> { %883 = vmatmul.mubr.msk.bf16.vlgmr.msra.gmra.mrb[4].mxu0 %vm220_vm4, %v326_v52  ;;  %901 = vmatmul.mubr.msk.bf16.vlgmr.msra.gmra.mrb[8].mxu1 %vm220_vm4, %v506_v55 }
  0x28   : >> { %893 = vmatpush3.bf16.msra.mxu0 %v451_v54  ;;  %894 = vmatprep.mubr.msk.bf16.mxu0 %vm959_vm1, %v957_v10 }
  0x29   : >> { %904 = vmatprep.subr.bf16.mxu0 %v957_v10  ;;  %911 = vmatpush3.bf16.msra.mxu1 %v631_v59 }
  0x2a   : >> { %912 = vmatprep.mubr.msk.bf16.mxu1 %vm959_vm1, %v957_v10 }
  0x2f   : >> { %895 = vmatmul.mubr.msk.bf16.vlgmr.msra.gmra.mrb[8].mxu0 %vm220_vm4, %v446_v62  ;;  %913 = vmatmul.mubr.msk.bf16.vlgmr.msra.gmra.mrb[12].mxu1 %vm220_vm4, %v626_v12 }
  0x30   : >> { %905 = vmatpush3.bf16.msra.mxu0 %v565_v63  ;;  %906 = vmatprep.mubr.msk.bf16.mxu0 %vm959_vm1, %v957_v10 }
  0x31   : >> { %916 = vmatprep.subr.bf16.mxu0 %v957_v10 }
  0x37   : >> { %907 = vmatmul.mubr.msk.bf16.vlgmr.msra.gmra.mrb[12].mxu0 %vm220_vm4, %v560_v16 }
  0x38   : >> { %917 = vmatpush3.bf16.msra.mxu0 %v691_v18  ;;  %918 = vmatprep.mubr.msk.bf16.mxu0 %vm959_vm1, %v957_v10 }
  0x3f   : >> { %919 = vmatmul.mubr.msk.bf16.vlgmr.msra.gmra.mrb[16].mxu0 %vm220_vm4, %v686_v20 }
  0xea   : >> { %v308_v22 = vpop.f32.mrb[0].mxu1 }
  0xeb   : >> { %v878_v23 = vpop.f32.mrb[1].mxu1 }
  0xec   : >> { %v311_v24 = vpop.f32.mrb[2].mxu1 }
  0xed   : >> { %v879_v25 = vpop.f32.mrb[3].mxu1 }
  0xf2   : >> { %v262_v26 = vpop.f32.mrb[0].mxu0  ;;  %v421_v30 = vpop.f32.mrb[4].mxu1 }
  0xf3   : >> { %v309_v27 = vadd.f32 %v308_v22, %v262_v26  ;;  %v872_v28 = vpop.f32.mrb[1].mxu0  ;;  %v890_v32 = vpop.f32.mrb[5].mxu1 }
  0xf4   : >> { %v265_v29 = vpop.f32.mrb[2].mxu0  ;;  %v424_v33 = vpop.f32.mrb[6].mxu1 }
  0xf5   : >> { %v873_v31 = vpop.f32.mrb[3].mxu0  ;;  %v891_v21 = vpop.f32.mrb[7].mxu1 }
  0xfa   : >> { %v367_v34 = vpop.f32.mrb[4].mxu0  ;;  %v547_v37 = vpop.f32.mrb[8].mxu1 }
  0xfb   : >> { %v373_v35 = vadd.f32 %v367_v34, %v309_v27  ;;  %v884_v36 = vpop.f32.mrb[5].mxu0  ;;  %v902_v40 = vpop.f32.mrb[9].mxu1 }
  0xfc   : >> { %v370_v10 = vpop.f32.mrb[6].mxu0  ;;  %v550_v41 = vpop.f32.mrb[10].mxu1 }
  0xfd   : >> { %v427_v38 = vadd.f32 %v421_v30, %v373_v35  ;;  %v885_v39 = vpop.f32.mrb[7].mxu0  ;;  %v903_v42 = vpop.f32.mrb[11].mxu1 }
 0x102   : >> { %v487_v43 = vpop.f32.mrb[8].mxu0  ;;  %v667_v47 = vpop.f32.mrb[12].mxu1 }
 0x103   : >> { %v493_v44 = vadd.f32 %v487_v43, %v427_v38  ;;  %v896_v45 = vpop.f32.mrb[9].mxu0  ;;  %v914_v50 = vpop.f32.mrb[13].mxu1 }
 0x104   : >> { %v490_v46 = vpop.f32.mrb[10].mxu0  ;;  %v670_v51 = vpop.f32.mrb[14].mxu1 }
 0x105   : >> { %v553_v48 = vadd.f32 %v547_v37, %v493_v44  ;;  %v897_v49 = vpop.f32.mrb[11].mxu0  ;;  %v915_v52 = vpop.f32.mrb[15].mxu1 }
 0x10a   : >> { %v601_v53 = vpop.f32.mrb[12].mxu0 }
 0x10b   : >> { %v607_v54 = vadd.f32 %v601_v53, %v553_v48  ;;  %v908_v55 = vpop.f32.mrb[13].mxu0 }
 0x10c   : >> { %v604_v56 = vpop.f32.mrb[14].mxu0 }
 0x10d   : >> { %v673_v57 = vadd.f32 %v667_v47, %v607_v54  ;;  %v909_v58 = vpop.f32.mrb[15].mxu0 }
 0x112   : >> { %v727_v59 = vpop.f32.mrb[16].mxu0 }
 0x113   : >> { %v733_v60 = vadd.f32 %v727_v59, %v673_v57  ;;  %v920_v61 = vpop.f32.mrb[17].mxu0  ;;  %193 = sbr.rel (!%p191_p4) target bundleno = 16 (0x10), region = 81 }
 0x114   : >> { %v730_v62 = vpop.f32.mrb[18].mxu0 }
 0x115   : >> { %v740_v63 = vadd.f32 %v1036_v9, %v733_v60  ;;  %v921_v11 = vpop.f32.mrb[19].mxu0 }
 0x117   : >> { %v741_v12 = vpack.c.bf16 %v740_v63, %v740_v63 }
 0x119   : >> { %744 = vst.msk [vmem:[%s742_s19] sm:$0x1] %vm743_vm12, %v741_v12 }
 0x11a PF: > { %s13_s12 = sadd.s32 1, %s951_s12  }
 0x11b   : > { %p10_p5 = scmp.ge.s32.totalorder %s13_s12, 4  }
 0x11d   :  { %12 = sbr.rel (!%p10_p5) target bundleno = 1 (0x1), region = 92 }

// kernel: image_decoder_forward.13
= control target key start
LH: loop header
LB: loop body
LE: loop exit
PB: predicated region body
PF: predicated region fallthrough
CT: control target
= control target key end

     0   :  { %s445_s15 = smov 0   ;;  %s505_s0 = inlined_call_operand.vmem [shape: bf16[2,2,2,16], index: 0, kind: input, shape index: {}]   ;;  %s506_s1 = inlined_call_operand.vmem [shape: bf16[1,16,8], index: 1, kind: input, shape index: {}]   ;;  %s507_s2 = inlined_call_operand.vmem [shape: f32[1,8], index: 2, kind: input, shape index: {}]   ;;  %s508_s3 = inlined_call_operand.vmem [shape: bf16[2,2,2,8], index: 3, kind: input, shape index: {}]   ;;  %s509_s4 = inlined_call_operand.vmem [shape: bf16[2,2,2,8], index: 4, kind: output, shape index: {}]  }
   0x1 LB: > { %s363_s16 = sadd.s32 4294967295, %s412_s15   ;;  %p367_p0 = scmp.ge.s32.totalorder %s412_s15, 1  ;;  %s412_s15 = sphi %s445_s15, %s14_s15  }
   0x2   : > { %p170_p1 = scmp.lt.s32.totalorder %s412_s15, 3 }
   0x4   : > { %p171_p2 = pnand %p367_p0, %p170_p1 }
   0x5   : > { %p198_p3 = scmp.lt.s32.totalorder (!%p171_p2), %s363_s16, 1  ;;  %v212_v0 = vld [vmem:[%s506_s1] sm:$0xf] (!%p171_p2)  ;;  %v213_v1 = vld [vmem:[%s506_s1 + $0x4] sm:$0xf] (!%p171_p2)  ;;  %s476_s7 = smov (!%p171_p2), 0  }
   0x6   : > { %174 = sbr.rel (%p171_p2) target bundleno = 241 (0xf1), region = 36  ;;  %v371_v2 = vld [vmem:[%s507_s2] ss:$0 sm:$0xff] (!%p171_p2) }
   0xd   : > { %s511_s16 = smov (!%p198_p3, %s363_s16), 1 }
   0xe   : > { %s462_s23 = sshll.u32 %s511_s16, 1 }
   0xf   : > { %s201_s26 = scalar_lea.vmem %s505_s0, %s462_s23  ;;  %s205_s29 = scalar_lea.vmem %s508_s3, %s462_s23 }
  0x10   : > { %s209_s6 = scalar_lea.vmem %s509_s4, %s462_s23 }
  0x11 LB: >> { %v372_v3 = vcombine.low %v212_v0, %v213_v1  ;;  %v418_v4 = vmov 0.0   ;;  %vm419_vm0 = vmmov 0   ;;  %s221_s10 = scalar_lea.vmem %s201_s26, %s416_s7  ;;  %vm238_vm2 = vcmask 130048   ;;  %s282_s13 = scalar_lea.vmem %s205_s29, %s416_s7  ;;  %s416_s7 = sphi %s476_s7, %s220_s7  }
  0x12   : >> { %378 = vmatprep.subr.bf16.mxu0 %v418_v4  ;;  %380 = vmatprep.mubr.msk.bf16.mxu0 %vm419_vm0, %v418_v4  ;;  %v222_v5 = vld [vmem:[%s221_s10] sm:$0x1]  ;;  %s287_s17 = scalar_lea.vmem %s209_s6, %s416_s7  ;;  %vm288_vm3 = vcmask 57344   ;;  %s220_s7 = sadd.s32 1, %s416_s7  }
  0x13   : >> { %379 = vmatpush3.bf16.msra.mxu0 %v372_v3  ;;  %vm223_vm1 = vcmp.ge.bf16.partialorder %v222_v5, 0  ;;  %v224_v6 = vmul.bf16 1009007652, %v222_v5  ;;  %v283_v8 = vld [vmem:[%s282_s13] sm:$0x1]  ;;  %p217_p4 = scmp.ge.s32.totalorder %s220_s7, 2  }
  0x14   : >> { %v284_v9 = vunpack.c.l.bf16 %v283_v8 }
  0x15   : >> { %v225_v7 = vsel %vm223_vm1, %v222_v5, %v224_v6 }
  0x16   : >> { %381 = vmatmul.mubr.msk.bf16.vlgmr.msra.gmra.mrb[0].mxu0 %vm238_vm2, %v225_v7 }
  0xe9   : >> { %v276_v10 = vpop.f32.mrb[0].mxu0 }
  0xea   : >> { %v277_v11 = vadd.f32 %v371_v2, %v276_v10  ;;  %v382_v12 = vpop.f32.mrb[1].mxu0  ;;  %219 = sbr.rel (!%p217_p4) target bundleno = 17 (0x11), region = 79 }
  0xeb   : >> { %v279_v13 = vpop.f32.mrb[2].mxu0 }
  0xec   : >> { %v285_v14 = vadd.f32 %v284_v9, %v277_v11  ;;  %v383_v15 = vpop.f32.mrb[3].mxu0 }
  0xee   : >> { %v286_v16 = vpack.c.bf16 %v285_v14, %v285_v14 }
  0xf0   : >> { %289 = vst.msk [vmem:[%s287_s17] sm:$0x1] %vm288_vm3, %v286_v16 }
  0xf1 PF: > { %s14_s15 = sadd.s32 1, %s412_s15  }
  0xf2   : > { %p11_p5 = scmp.ge.s32.totalorder %s14_s15, 4  }
  0xf4   :  { %13 = sbr.rel (!%p11_p5) target bundleno = 1 (0x1), region = 90 }

// kernel: image_decoder_forward.14
= control target key start
LH: loop header
LB: loop body
LE: loop exit
PB: predicated region body
PF: predicated region fallthrough
CT: control target
= control target key end

     0   :  { %s1016_s12 = smov 0   ;;  %s1180_s0 = inlined_call_operand.vmem [shape: bf16[2,4,4,8], index: 0, kind: input, shape index: {}]   ;;  %s1181_s1 = inlined_call_operand.vmem [shape: bf16[9,8,16], index: 1, kind: input, shape index: {}]   ;;  %s1182_s2 = inlined_call_operand.vmem [shape: f32[1,16], index: 2, kind: input, shape index: {}]   ;;  %s1183_s3 = inlined_call_operand.vmem [shape: bf16[2,2,2,2,8], index: 3, kind: output, shape index: {}]  }
   0x1 LB: > { %s841_s13 = sadd.s32 4294967295, %s985_s12   ;;  %p845_p0 = scmp.ge.s32.totalorder %s985_s12, 1  ;;  %s985_s12 = sphi %s1016_s12, %s13_s12  }
   0x2   : > { %p137_p1 = scmp.lt.s32.totalorder %s985_s12, 3 }
   0x4   : > { %p138_p2 = pnand %p845_p0, %p137_p1 }
   0x5   : > { %p160_p3 = scmp.lt.s32.totalorder (!%p138_p2), %s841_s13, 1  ;;  %v1027_v0 = vld [vmem:[%s1181_s1] sm:$0xf] (!%p138_p2)  ;;  %v1032_v1 = vld [vmem:[%s1181_s1 + $0x4] sm:$0xf] (!%p138_p2)  ;;  %s1084_s17 = smov (!%p138_p2), 0  }
   0x6   : > { %141 = sbr.rel (%p138_p2) target bundleno = 404 (0x194), region = 32  ;;  %v1037_v2 = vld [vmem:[%s1181_s1 + $0x8] sm:$0xf] (!%p138_p2)  ;;  %v1042_v3 = vld [vmem:[%s1181_s1 + $0xc] sm:$0xf] (!%p138_p2) }
   0x7   : > { %v1047_v4 = vld [vmem:[%s1181_s1 + $0x10] sm:$0xf] (!%p138_p2)  ;;  %v1052_v5 = vld [vmem:[%s1181_s1 + $0x14] sm:$0xf] (!%p138_p2)  ;;  %v1057_v6 = vld [vmem:[%s1181_s1 + $0x18] sm:$0xf] (!%p138_p2) }
   0x8   : > { %v1062_v7 = vld [vmem:[%s1181_s1 + $0x1c] sm:$0xf] (!%p138_p2)  ;;  %v1067_v8 = vld [vmem:[%s1181_s1 + $0x20] sm:$0xf] (!%p138_p2) }
   0x9   : > { %v1072_v9 = vld [vmem:[%s1182_s2] ss:$0 sm:$0xff] (!%p138_p2) }
   0xd   : > { %s1185_s13 = smov (!%p160_p3, %s841_s13), 1 }
   0xe   : > { %s881_s7 = sshll.u32 %s1185_s13, 3  ;;  %s848_s8 = sshll.u32 %s1185_s13, 2 }
   0xf   : > { %s1077_s11 = scalar_lea.vmem %s1180_s0, %s881_s7  ;;  %s1082_s16 = scalar_lea.vmem %s1183_s3, %s848_s8 }
  0x10 LB: >> { %vm224_vm0 = vcmask 1043456   ;;  %v991_v10 = vmov 0.0   ;;  %v992_v13 = vmov 1983009808   ;;  %v209_v15 = vlaneseq  ;;  %s857_s13 = sshll.u32 %s989_s17, 1  ;;  %s995_s20 = smov 120   ;;  %s989_s17 = sphi %s1084_s17, %s194_s17  }
  0x11   : >> { %900 = vmatprep.subr.bf16.mxu0 %v991_v10  ;;  %v226_v11 = vsel %vm224_vm0, %v1032_v1, 0  ;;  %906 = vmatprep.subr.bf16.mxu1 %v991_v10  ;;  %v272_v12 = vsel %vm224_vm0, %v1027_v0, 0  ;;  %v207_v14 = vunpack.c.l.s4 %v992_v13  ;;  %vm993_vm1 = vmmov 0   ;;  %s1103_s18 = scalar_lea.vmem %s1077_s11, %s857_s13  ;;  %s746_s19 = scalar_lea.vmem %s1082_s16, %s857_s13 }
  0x12   : >> { %901 = vmatpush3.bf16.msra.mxu0 %v226_v11  ;;  %907 = vmatpush3.bf16.msra.mxu1 %v272_v12  ;;  %v1105_v17 = vshrl.u32 %v209_v15, 7  ;;  %v201_v18 = vld [vmem:[%s1103_s18] sm:$0x3]  ;;  %vm220_vm4 = vcmask 64512   ;;  %v385_v25 = vsel %vm224_vm0, %v1042_v3, 0  ;;  %v331_v43 = vsel %vm224_vm0, %v1037_v2, 0 }
  0x13   : >> { %902 = vmatprep.mubr.msk.bf16.mxu0 %vm993_vm1, %v991_v10  ;;  %908 = vmatprep.mubr.msk.bf16.mxu1 %vm993_vm1, %v991_v10  ;;  %v208_v16 = vunpack.c.0.s8 %v207_v14  ;;  %v197_v19 = vld [vmem:[%s1103_s18] sm:$0x1]  ;;  %vm202_vm2 = vcmp.ge.bf16.partialorder %v201_v18, 0  ;;  %v203_v20 = vmul.bf16 1009007652, %v201_v18  ;;  %v511_v48 = vsel %vm224_vm0, %v1052_v5, 0 }
  0x14   : >> { %912 = vmatprep.subr.bf16.mxu0 %v991_v10  ;;  %918 = vmatprep.subr.bf16.mxu1 %v991_v10  ;;  %vm198_vm3 = vcmp.ge.bf16.partialorder %v197_v19, 0  ;;  %v199_v22 = vmul.bf16 1009007652, %v197_v19  ;;  %v314_v23 = vld [vmem:[%s1103_s18] sm:$0x2]  ;;  %v451_v54 = vsel %vm224_vm0, %v1047_v4, 0 }
  0x15   : >> { %v1112_v21 = vsub.s32 %v208_v16, %v1105_v17  ;;  %v204_v24 = vsel %vm202_vm2, %v201_v18, %v203_v20  ;;  %v864_v26 = vld [vmem:[%s1103_s18 + $0x2] sm:$0x3]  ;;  %v316_v31 = vmul.bf16 1009007652, %v314_v23  ;;  %vm315_vm5 = vcmp.ge.bf16.partialorder %v314_v23, 0  ;;  %s194_s17 = sadd.s32 1, %s989_s17  }
  0x16   : >> { %v200_v28 = vsel %vm198_vm3, %v197_v19, %v199_v22  ;;  %v862_v29 = vld [vmem:[%s1103_s18 + $0x2] sm:$0x1]  ;;  %v866_v30 = vld [vmem:[%s1103_s18 + $0x2] sm:$0x2]  ;;  %v430_v32 = vmul.bf16 1009007652, %v864_v26 }
  0x17   : >> { %v212_v27 = vrot.slane %v204_v24, %v1112_v21  ;;  %909 = vmatmul.mubr.msk.bf16.vlgmr.msra.gmra.mrb[0].mxu1 %vm220_vm4, %v200_v28  ;;  %vm429_vm6 = vcmp.ge.bf16.partialorder %v864_v26, 0  ;;  %v871_v35 = vld [vmem:[%s1103_s18 + $0x4] sm:$0x3]  ;;  %v379_v36 = vmul.bf16 1009007652, %v862_v29  ;;  %vm378_vm7 = vcmp.ge.bf16.partialorder %v862_v29, 0 }
  0x18   : >> { %919 = vmatpush3.bf16.msra.mxu1 %v385_v25  ;;  %920 = vmatprep.mubr.msk.bf16.mxu1 %vm993_vm1, %v991_v10  ;;  %v496_v37 = vmul.bf16 1009007652, %v866_v30  ;;  %vm495_vm8 = vcmp.ge.bf16.partialorder %v866_v30, 0  ;;  %v317_v39 = vsel %vm315_vm5, %v314_v23, %v316_v31  ;;  %v431_v40 = vsel %vm429_vm6, %v864_v26, %v430_v32  ;;  %v869_v11 = vld [vmem:[%s1103_s18 + $0x4] sm:$0x1]  ;;  %p191_p4 = scmp.ge.s32.totalorder %s194_s17, 2  }
  0x19   : >> { %v214_v33 = vshrl.u32 %v212_v27, 16  ;;  %v216_v34 = vshll.u32 %v212_v27, 16  ;;  %930 = vmatprep.subr.bf16.mxu1 %v991_v10  ;;  %vm609_vm9 = vcmp.ge.bf16.partialorder %v871_v35, 0  ;;  %v610_v41 = vmul.bf16 1009007652, %v871_v35 }
  0x1a   : >> { %v380_v44 = vsel %vm378_vm7, %v862_v29, %v379_v36  ;;  %v497_v45 = vsel %vm495_vm8, %v866_v30, %v496_v37  ;;  %v325_v47 = vrot.slane %v317_v39, %v1112_v21  ;;  %v439_v49 = vrot.slane %v431_v40, %v1112_v21  ;;  %v873_v13 = vld [vmem:[%s1103_s18 + $0x4] sm:$0x2] }
  0x1b   : >> { %v218_v38 = vrot.slane %v216_v34, 1  ;;  %v611_v46 = vsel %vm609_vm9, %v871_v35, %v610_v41  ;;  %v505_v50 = vrot.slane %v497_v45, %v1112_v21  ;;  %v631_v59 = vsel %vm224_vm0, %v1062_v7, 0 }
  0x1c   : >> { %v619_v51 = vrot.slane %v611_v46, %v1112_v21  ;;  %v326_v52 = vrot.slane %v325_v47, 1  ;;  %v443_v53 = vshll.u32 %v439_v49, 16  ;;  %v441_v57 = vshrl.u32 %v439_v49, 16 }
  0x1d   : >> { %v219_v42 = vor.u32 %v218_v38, %v214_v33  ;;  %v506_v55 = vrot.slane %v505_v50, 1  ;;  %v565_v63 = vsel %vm224_vm0, %v1057_v6, 0  ;;  %v559_v14 = vmul.bf16 1009007652, %v869_v11 }
  0x1e   : >> { %v623_v56 = vshll.u32 %v619_v51, 16  ;;  %v445_v58 = vrot.slane %v443_v53, 1  ;;  %v621_v60 = vshrl.u32 %v619_v51, 16  ;;  %v676_v15 = vmul.bf16 1009007652, %v873_v13 }
  0x1f   : >> { %903 = vmatmul.mubr.msk.bf16.vlgmr.msra.gmra.mrb[0].mxu0 %vm220_vm4, %v219_v42  ;;  %921 = vmatmul.mubr.msk.bf16.vlgmr.msra.gmra.mrb[4].mxu1 %vm220_vm4, %v380_v44  ;;  %vm558_vm10 = vcmp.ge.bf16.partialorder %v869_v11, 0  ;;  %vm675_vm11 = vcmp.ge.bf16.partialorder %v873_v13, 0  ;;  %v691_v19 = vsel %vm224_vm0, %v1067_v8, 0  ;;  %vm747_vm13 = vcmask 57344  }
  0x20   : >> { %913 = vmatpush3.bf16.msra.mxu0 %v331_v43  ;;  %914 = vmatprep.mubr.msk.bf16.mxu0 %vm993_vm1, %v991_v10  ;;  %v625_v61 = vrot.slane %v623_v56, 1  ;;  %v446_v62 = vor.u32 %v445_v58, %v441_v57  ;;  %v560_v16 = vsel %vm558_vm10, %v869_v11, %v559_v14  ;;  %v677_v18 = vsel %vm675_vm11, %v873_v13, %v676_v15 }
  0x21   : >> { %924 = vmatprep.subr.bf16.mxu0 %v991_v10  ;;  %931 = vmatpush3.bf16.msra.mxu1 %v511_v48  ;;  %v685_v20 = vrot.slane %v677_v18, %v1112_v21 }
  0x22   : >> { %932 = vmatprep.mubr.msk.bf16.mxu1 %vm993_vm1, %v991_v10  ;;  %942 = vmatprep.subr.bf16.mxu1 %v991_v10  ;;  %v626_v12 = vor.u32 %v625_v61, %v621_v60  ;;  %v994_v60 = vmov 1966171168  }
  0x23   : >> { %v686_v22 = vrot.slane %v685_v20, 1  ;;  %v751_v61 = vunpack.c.l.s4 %v994_v60 }
  0x25   : >> { %v752_v13 = vunpack.c.0.s8 %v751_v61 }
  0x27   : >> { %915 = vmatmul.mubr.msk.bf16.vlgmr.msra.gmra.mrb[4].mxu0 %vm220_vm4, %v326_v52  ;;  %933 = vmatmul.mubr.msk.bf16.vlgmr.msra.gmra.mrb[8].mxu1 %vm220_vm4, %v506_v55  ;;  %v755_v18 = vsub.s32 %v752_v13, %v1105_v17 }
  0x28   : >> { %925 = vmatpush3.bf16.msra.mxu0 %v451_v54  ;;  %926 = vmatprep.mubr.msk.bf16.mxu0 %vm993_vm1, %v991_v10 }
  0x29   : >> { %936 = vmatprep.subr.bf16.mxu0 %v991_v10  ;;  %943 = vmatpush3.bf16.msra.mxu1 %v631_v59 }
  0x2a   : >> { %944 = vmatprep.mubr.msk.bf16.mxu1 %vm993_vm1, %v991_v10 }
  0x2f   : >> { %927 = vmatmul.mubr.msk.bf16.vlgmr.msra.gmra.mrb[8].mxu0 %vm220_vm4, %v446_v62  ;;  %945 = vmatmul.mubr.msk.bf16.vlgmr.msra.gmra.mrb[12].mxu1 %vm220_vm4, %v626_v12 }
  0x30   : >> { %937 = vmatpush3.bf16.msra.mxu0 %v565_v63  ;;  %938 = vmatprep.mubr.msk.bf16.mxu0 %vm993_vm1, %v991_v10 }
  0x31   : >> { %948 = vmatprep.subr.bf16.mxu0 %v991_v10 }
  0x37   : >> { %939 = vmatmul.mubr.msk.bf16.vlgmr.msra.gmra.mrb[12].mxu0 %vm220_vm4, %v560_v16 }
  0x38   : >> { %949 = vmatpush3.bf16.msra.mxu0 %v691_v19  ;;  %950 = vmatprep.mubr.msk.bf16.mxu0 %vm993_vm1, %v991_v10 }
  0x3f   : >> { %951 = vmatmul.mubr.msk.bf16.vlgmr.msra.gmra.mrb[16].mxu0 %vm220_vm4, %v686_v22 }
  0xea   : >> { %v308_v23 = vpop.f32.mrb[0].mxu1 }
  0xeb   : >> { %v910_v24 = vpop.f32.mrb[1].mxu1 }
  0xec   : >> { %v311_v25 = vpop.f32.mrb[2].mxu1 }
  0xed   : >> { %v911_v26 = vpop.f32.mrb[3].mxu1 }
  0xf2   : >> { %v262_v27 = vpop.f32.mrb[0].mxu0  ;;  %v421_v31 = vpop.f32.mrb[4].mxu1 }
  0xf3   : >> { %v309_v28 = vadd.f32 %v308_v23, %v262_v27  ;;  %v904_v29 = vpop.f32.mrb[1].mxu0  ;;  %v922_v33 = vpop.f32.mrb[5].mxu1 }
  0xf4   : >> { %v265_v30 = vpop.f32.mrb[2].mxu0  ;;  %v424_v34 = vpop.f32.mrb[6].mxu1 }
  0xf5   : >> { %v905_v32 = vpop.f32.mrb[3].mxu0  ;;  %v923_v21 = vpop.f32.mrb[7].mxu1 }
  0xfa   : >> { %v367_v35 = vpop.f32.mrb[4].mxu0  ;;  %v547_v38 = vpop.f32.mrb[8].mxu1 }
  0xfb   : >> { %v373_v36 = vadd.f32 %v367_v35, %v309_v28  ;;  %v916_v37 = vpop.f32.mrb[5].mxu0  ;;  %v934_v41 = vpop.f32.mrb[9].mxu1 }
  0xfc   : >> { %v370_v10 = vpop.f32.mrb[6].mxu0  ;;  %v550_v42 = vpop.f32.mrb[10].mxu1 }
  0xfd   : >> { %v427_v39 = vadd.f32 %v421_v31, %v373_v36  ;;  %v917_v40 = vpop.f32.mrb[7].mxu0  ;;  %v935_v43 = vpop.f32.mrb[11].mxu1 }
 0x102   : >> { %v487_v44 = vpop.f32.mrb[8].mxu0  ;;  %v667_v48 = vpop.f32.mrb[12].mxu1 }
 0x103   : >> { %v493_v45 = vadd.f32 %v487_v44, %v427_v39  ;;  %v928_v46 = vpop.f32.mrb[9].mxu0  ;;  %v946_v51 = vpop.f32.mrb[13].mxu1 }
 0x104   : >> { %v490_v47 = vpop.f32.mrb[10].mxu0  ;;  %v670_v52 = vpop.f32.mrb[14].mxu1 }
 0x105   : >> { %v553_v49 = vadd.f32 %v547_v38, %v493_v45  ;;  %v929_v50 = vpop.f32.mrb[11].mxu0  ;;  %v947_v53 = vpop.f32.mrb[15].mxu1 }
 0x10a   : >> { %v601_v54 = vpop.f32.mrb[12].mxu0 }
 0x10b   : >> { %v607_v55 = vadd.f32 %v601_v54, %v553_v49  ;;  %v940_v56 = vpop.f32.mrb[13].mxu0 }
 0x10c   : >> { %v604_v57 = vpop.f32.mrb[14].mxu0 }
 0x10d   : >> { %v673_v58 = vadd.f32 %v667_v48, %v607_v55  ;;  %v941_v59 = vpop.f32.mrb[15].mxu0 }
 0x112   : >> { %v727_v62 = vpop.f32.mrb[16].mxu0 }
 0x113   : >> { %v733_v63 = vadd.f32 %v727_v62, %v673_v58  ;;  %v952_v11 = vpop.f32.mrb[17].mxu0 }
 0x114   : >> { %v730_v12 = vpop.f32.mrb[18].mxu0 }
 0x115   : >> { %v740_v14 = vadd.f32 %v1072_v9, %v733_v63  ;;  %v953_v15 = vpop.f32.mrb[19].mxu0 }
 0x117   : >> { %vm741_vm12 = vcmp.ge.f32.partialorder %v740_v14, 0.0  ;;  %v742_v16 = vmul.f32 0.01, %v740_v14 }
 0x119   : >> { %v743_v19 = vsel %vm741_vm12, %v740_v14, %v742_v16 }
 0x11a   : >> { %v744_v20 = vpack.c.bf16 %v743_v19, %v743_v19 }
 0x11c   : >> { %v756_v22 = vrot.slane %v744_v20, %v755_v18  ;;  %748 = vst.msk [vmem:[%s746_s19] sm:$0x1] %vm747_vm13, %v744_v20 }
 0x11e   : >> { %v763_v23 = vrot.slane %v756_v22, %v755_v18 }
 0x120   : >> { %764 = vrot.lane.b32.xlu0 %v763_v23, %s995_s20 }
 0x18d   : > { %193 = sbr.rel (!%p191_p4) target bundleno = 16 (0x10), region = 82 }
 0x192   : >> { %v765_v24 = vpop.permute.xlu0 %764 }
 0x193   : >> { %878 = vst.msk [vmem:[%s746_s19 + $0x1] sm:$0x1] %vm747_vm13, %v765_v24 }
 0x194 PF: > { %s13_s12 = sadd.s32 1, %s985_s12  }
 0x195   : > { %p10_p5 = scmp.ge.s32.totalorder %s13_s12, 4  }
 0x197   :  { %12 = sbr.rel (!%p10_p5) target bundleno = 1 (0x1), region = 93 }

// kernel: image_decoder_forward.15
= control target key start
LH: loop header
LB: loop body
LE: loop exit
PB: predicated region body
PF: predicated region fallthrough
CT: control target
= control target key end

     0   :  { %s973_s12 = smov 0   ;;  %s1125_s0 = inlined_call_operand.vmem [shape: bf16[2,6,6,4], index: 0, kind: input, shape index: {}]   ;;  %s1126_s1 = inlined_call_operand.vmem [shape: bf16[9,4,8], index: 1, kind: input, shape index: {}]   ;;  %s1127_s2 = inlined_call_operand.vmem [shape: f32[1,8], index: 2, kind: input, shape index: {}]   ;;  %s1128_s3 = inlined_call_operand.vmem [shape: bf16[2,4,2,4,4], index: 3, kind: output, shape index: {}]  }
   0x1 LB: > { %s783_s13 = sadd.s32 4294967295, %s943_s12   ;;  %p787_p0 = scmp.ge.s32.totalorder %s943_s12, 1  ;;  %s943_s12 = sphi %s973_s12, %s13_s12  }
   0x2   : > { %p137_p1 = scmp.lt.s32.totalorder %s943_s12, 3 }
   0x4   : > { %p138_p2 = pnand %p787_p0, %p137_p1 }
   0x5   : > { %p161_p3 = scmp.lt.s32.totalorder (!%p138_p2), %s783_s13, 1  ;;  %v984_v0 = vld [vmem:[%s1126_s1] sm:$0x3] (!%p138_p2)  ;;  %v989_v1 = vld [vmem:[%s1126_s1 + $0x2] sm:$0x3] (!%p138_p2)  ;;  %s1041_s17 = smov (!%p138_p2), 0  }
   0x6   : > { %141 = sbr.rel (%p138_p2) target bundleno = 397 (0x18d), region = 32  ;;  %v994_v2 = vld [vmem:[%s1126_s1 + $0x4] sm:$0x3] (!%p138_p2)  ;;  %v999_v3 = vld [vmem:[%s1126_s1 + $0x6] sm:$0x3] (!%p138_p2) }
   0x7   : > { %v1004_v4 = vld [vmem:[%s1126_s1 + $0x8] sm:$0x3] (!%p138_p2)  ;;  %v1009_v5 = vld [vmem:[%s1126_s1 + $0xa] sm:$0x3] (!%p138_p2)  ;;  %v1014_v6 = vld [vmem:[%s1126_s1 + $0xc] sm:$0x3] (!%p138_p2) }
   0x8   : > { %v1019_v7 = vld [vmem:[%s1126_s1 + $0xe] sm:$0x3] (!%p138_p2)  ;;  %v1024_v8 = vld [vmem:[%s1126_s1 + $0x10] sm:$0x3] (!%p138_p2)  ;;  %v1029_v9 = vld [vmem:[%s1127_s2] ss:$0 sm:$0xff] (!%p138_p2) }
   0xd   : > { %s1130_s13 = smov (!%p161_p3, %s783_s13), 1 }
   0xe   : > { %s906_s7 = smul.u32 24, %s1130_s13  ;;  %s831_s8 = sshll.u32 %s1130_s13, 4 }
   0xf   : > { %s1034_s11 = scalar_lea.vmem %s1128_s3, %s831_s8 }
  0x10   : > { %s1039_s16 = scalar_lea.vmem %s1125_s0, %s906_s7 }
  0x11 LB: >> { %vm214_vm0 = vcmask 1041408   ;;  %v949_v10 = vmov 0.0   ;;  %s799_s13 = sshll.u32 %s947_s17, 2  ;;  %vm950_vm1 = vmmov 0   ;;  %vm210_vm2 = vcmask 31744   ;;  %s952_s20 = smov 124   ;;  %s947_s17 = sphi %s1041_s17, %s195_s17  }
  0x12   : >> { %852 = vmatprep.subr.bf16.mxu0 %v949_v10  ;;  %v216_v11 = vsel %vm214_vm0, %v989_v1, 0  ;;  %858 = vmatprep.subr.bf16.mxu1 %v949_v10  ;;  %v262_v12 = vsel %vm214_vm0, %v984_v0, 0  ;;  %s1060_s18 = scalar_lea.vmem %s1039_s16, %s799_s13  ;;  %v364_v14 = vsel %vm214_vm0, %v999_v3, 0  ;;  %v313_v20 = vsel %vm214_vm0, %v994_v2, 0  ;;  %s691_s19 = scalar_lea.vmem %s1034_s11, %s799_s13 }
  0x13   : >> { %853 = vmatpush3.bf16.msra.mxu0 %v216_v11  ;;  %859 = vmatpush3.bf16.msra.mxu1 %v262_v12  ;;  %v927_v13 = vld [vmem:[%s1060_s18] ss:$0 sps:$4 sm:$0x77]   ;;  %v806_v21 = vld [vmem:[%s1060_s18 + $0x4] sm:$0x3]  ;;  %v474_v22 = vsel %vm214_vm0, %v1009_v5, 0 }
  0x14   : >> { %854 = vmatprep.mubr.msk.bf16.mxu0 %vm950_vm1, %v949_v10  ;;  %860 = vmatprep.mubr.msk.bf16.mxu1 %vm950_vm1, %v949_v10  ;;  %v198_v15 = vld [vmem:[%s1060_s18] sm:$0x3]  ;;  %v204_v16 = vshrl.u32 %v927_v13, 16  ;;  %v206_v17 = vshll.u32 %v927_v13, 16  ;;  %v422_v29 = vsel %vm214_vm0, %v1004_v4, 0  ;;  %v583_v34 = vsel %vm214_vm0, %v1019_v7, 0 }
  0x15   : >> { %864 = vmatprep.subr.bf16.mxu0 %v949_v10  ;;  %870 = vmatprep.subr.bf16.mxu1 %v949_v10  ;;  %v928_v23 = vld [vmem:[%s1060_s18] ss:$0 sps:$4 sm:$0x66]   ;;  %v929_v24 = vld [vmem:[%s1060_s18 + $0x4] ss:$0 sps:$4 sm:$0x77]  }
  0x16   : >> { %861 = vmatmul.mubr.msk.bf16.vlgmr.msra.gmra.mrb[0].mxu1 %vm210_vm2, %v198_v15  ;;  %v208_v18 = vrot.slane %v206_v17, 1  ;;  %v930_v25 = vld [vmem:[%s1060_s18 + $0x4] ss:$0 sps:$4 sm:$0x66]   ;;  %v308_v27 = vrot.slane %v928_v23, 1  ;;  %v414_v28 = vshll.u32 %v929_v24, 16 }
  0x17   : >> { %871 = vmatpush3.bf16.msra.mxu1 %v364_v14  ;;  %872 = vmatprep.mubr.msk.bf16.mxu1 %vm950_vm1, %v949_v10  ;;  %v931_v26 = vld [vmem:[%s1060_s18 + $0x8] ss:$0 sps:$4 sm:$0x77]   ;;  %v469_v30 = vrot.slane %v930_v25, 1  ;;  %v412_v32 = vshrl.u32 %v929_v24, 16  ;;  %v525_v38 = vsel %vm214_vm0, %v1014_v6, 0 }
  0x18   : >> { %882 = vmatprep.subr.bf16.mxu1 %v949_v10  ;;  %v209_v19 = vor.u32 %v208_v18, %v204_v16  ;;  %v575_v31 = vshll.u32 %v931_v26, 16  ;;  %v416_v33 = vrot.slane %v414_v28, 1  ;;  %v573_v35 = vshrl.u32 %v931_v26, 16  ;;  %v815_v40 = vld [vmem:[%s1060_s18 + $0x8] sm:$0x3]  ;;  %s195_s17 = sadd.s32 1, %s947_s17  }
  0x19   : >> { %v635_v41 = vsel %vm214_vm0, %v1024_v8, 0  ;;  %v932_v42 = vld [vmem:[%s1060_s18 + $0x8] ss:$0 sps:$4 sm:$0x66]   ;;  %vm692_vm4 = vcmask 25600   ;;  %p192_p4 = scmp.ge.s32.totalorder %s195_s17, 4  }
  0x1a   : >> { %855 = vmatmul.mubr.msk.bf16.vlgmr.msra.gmra.mrb[0].mxu0 %vm210_vm2, %v209_v19  ;;  %v577_v36 = vrot.slane %v575_v31, 1  ;;  %v417_v37 = vor.u32 %v416_v33, %v412_v32  ;;  %v630_v43 = vrot.slane %v932_v42, 1  ;;  %v698_v31 = vlaneseq }
  0x1b   : >> { %865 = vmatpush3.bf16.msra.mxu0 %v313_v20  ;;  %866 = vmatprep.mubr.msk.bf16.mxu0 %vm950_vm1, %v949_v10 }
  0x1c   : >> { %876 = vmatprep.subr.bf16.mxu0 %v949_v10  ;;  %v578_v39 = vor.u32 %v577_v36, %v573_v35 }
  0x1e   : >> { %873 = vmatmul.mubr.msk.bf16.vlgmr.msra.gmra.mrb[4].mxu1 %vm210_vm2, %v806_v21 }
  0x1f   : >> { %883 = vmatpush3.bf16.msra.mxu1 %v474_v22  ;;  %884 = vmatprep.mubr.msk.bf16.mxu1 %vm950_vm1, %v949_v10 }
  0x20   : >> { %894 = vmatprep.subr.bf16.mxu1 %v949_v10 }
  0x22   : >> { %867 = vmatmul.mubr.msk.bf16.vlgmr.msra.gmra.mrb[4].mxu0 %vm210_vm2, %v308_v27 }
  0x23   : >> { %877 = vmatpush3.bf16.msra.mxu0 %v422_v29  ;;  %878 = vmatprep.mubr.msk.bf16.mxu0 %vm950_vm1, %v949_v10  ;;  %v951_v29 = vmov 1983009808  }
  0x24   : >> { %888 = vmatprep.subr.bf16.mxu0 %v949_v10 }
  0x26   : >> { %885 = vmatmul.mubr.msk.bf16.vlgmr.msra.gmra.mrb[8].mxu1 %vm210_vm2, %v469_v30  ;;  %v696_v30 = vunpack.c.l.s4 %v951_v29 }
  0x27   : >> { %895 = vmatpush3.bf16.msra.mxu1 %v583_v34  ;;  %896 = vmatprep.mubr.msk.bf16.mxu1 %vm950_vm1, %v949_v10 }
  0x28   : >> { %v697_v36 = vunpack.c.0.s8 %v696_v30 }
  0x2a   : >> { %879 = vmatmul.mubr.msk.bf16.vlgmr.msra.gmra.mrb[8].mxu0 %vm210_vm2, %v417_v37  ;;  %v699_v37 = vshrl.u32 %v698_v31, 7 }
  0x2b   : >> { %889 = vmatpush3.bf16.msra.mxu0 %v525_v38  ;;  %890 = vmatprep.mubr.msk.bf16.mxu0 %vm950_vm1, %v949_v10 }
  0x2c   : >> { %900 = vmatprep.subr.bf16.mxu0 %v949_v10 }
  0x2e   : >> { %897 = vmatmul.mubr.msk.bf16.vlgmr.msra.gmra.mrb[12].mxu1 %vm210_vm2, %v578_v39 }
  0x32   : >> { %891 = vmatmul.mubr.msk.bf16.vlgmr.msra.gmra.mrb[12].mxu0 %vm210_vm2, %v815_v40 }
  0x33   : >> { %901 = vmatpush3.bf16.msra.mxu0 %v635_v41  ;;  %902 = vmatprep.mubr.msk.bf16.mxu0 %vm950_vm1, %v949_v10  ;;  %v700_v41 = vsub.s32 %v697_v36, %v699_v37 }
  0x3a   : >> { %903 = vmatmul.mubr.msk.bf16.vlgmr.msra.gmra.mrb[16].mxu0 %vm210_vm2, %v630_v43 }
  0xe9   : >> { %v298_v44 = vpop.f32.mrb[0].mxu1 }
  0xea   : >> { %v862_v45 = vpop.f32.mrb[1].mxu1 }
  0xeb   : >> { %v301_v46 = vpop.f32.mrb[2].mxu1 }
  0xec   : >> { %v863_v47 = vpop.f32.mrb[3].mxu1 }
  0xed   : >> { %v252_v48 = vpop.f32.mrb[0].mxu0 }
  0xee   : >> { %v299_v49 = vadd.f32 %v298_v44, %v252_v48  ;;  %v856_v50 = vpop.f32.mrb[1].mxu0 }
  0xef   : >> { %v255_v51 = vpop.f32.mrb[2].mxu0 }
  0xf0   : >> { %v857_v53 = vpop.f32.mrb[3].mxu0 }
  0xf1   : >> { %v400_v52 = vpop.f32.mrb[4].mxu1 }
  0xf2   : >> { %v874_v54 = vpop.f32.mrb[5].mxu1 }
  0xf3   : >> { %v403_v55 = vpop.f32.mrb[6].mxu1 }
  0xf4   : >> { %v875_v56 = vpop.f32.mrb[7].mxu1 }
  0xf5   : >> { %v349_v57 = vpop.f32.mrb[4].mxu0 }
  0xf6   : >> { %v355_v58 = vadd.f32 %v349_v57, %v299_v49  ;;  %v868_v59 = vpop.f32.mrb[5].mxu0 }
  0xf7   : >> { %v352_v60 = vpop.f32.mrb[6].mxu0 }
  0xf8   : >> { %v406_v62 = vadd.f32 %v400_v52, %v355_v58  ;;  %v869_v63 = vpop.f32.mrb[7].mxu0 }
  0xf9   : >> { %v510_v61 = vpop.f32.mrb[8].mxu1 }
  0xfa   : >> { %v886_v10 = vpop.f32.mrb[9].mxu1 }
  0xfb   : >> { %v513_v11 = vpop.f32.mrb[10].mxu1 }
  0xfc   : >> { %v887_v12 = vpop.f32.mrb[11].mxu1 }
  0xfd   : >> { %v458_v13 = vpop.f32.mrb[8].mxu0 }
  0xfe   : >> { %v464_v14 = vadd.f32 %v458_v13, %v406_v62  ;;  %v880_v15 = vpop.f32.mrb[9].mxu0 }
  0xff   : >> { %v461_v16 = vpop.f32.mrb[10].mxu0 }
 0x100   : >> { %v516_v18 = vadd.f32 %v510_v61, %v464_v14  ;;  %v881_v19 = vpop.f32.mrb[11].mxu0 }
 0x101   : >> { %v619_v17 = vpop.f32.mrb[12].mxu1 }
 0x102   : >> { %v898_v20 = vpop.f32.mrb[13].mxu1 }
 0x103   : >> { %v622_v21 = vpop.f32.mrb[14].mxu1 }
 0x104   : >> { %v899_v22 = vpop.f32.mrb[15].mxu1 }
 0x105   : >> { %v561_v23 = vpop.f32.mrb[12].mxu0 }
 0x106   : >> { %v567_v24 = vadd.f32 %v561_v23, %v516_v18  ;;  %v892_v25 = vpop.f32.mrb[13].mxu0 }
 0x107   : >> { %v564_v26 = vpop.f32.mrb[14].mxu0 }
 0x108   : >> { %v625_v27 = vadd.f32 %v619_v17, %v567_v24  ;;  %v893_v28 = vpop.f32.mrb[15].mxu0 }
 0x10d   : >> { %v671_v32 = vpop.f32.mrb[16].mxu0 }
 0x10e   : >> { %v677_v33 = vadd.f32 %v671_v32, %v625_v27  ;;  %v904_v34 = vpop.f32.mrb[17].mxu0 }
 0x10f   : >> { %v674_v35 = vpop.f32.mrb[18].mxu0 }
 0x110   : >> { %v684_v38 = vadd.f32 %v1029_v9, %v677_v33  ;;  %v905_v39 = vpop.f32.mrb[19].mxu0 }
 0x112   : >> { %vm685_vm3 = vcmp.ge.f32.partialorder %v684_v38, 0.0  ;;  %v686_v40 = vmul.f32 0.01, %v684_v38 }
 0x114   : >> { %v687_v42 = vsel %vm685_vm3, %v684_v38, %v686_v40 }
 0x115   : >> { %v688_v43 = vpack.c.bf16 %v687_v42, %v687_v42 }
 0x117   : >> { %v701_v44 = vrot.slane %v688_v43, %v700_v41  ;;  %693 = vst.msk [vmem:[%s691_s19] sm:$0x3] %vm692_vm4, %v688_v43 }
 0x119   : >> { %702 = vrot.lane.b32.xlu0 %v701_v44, %s952_s20 }
 0x186   : > { %194 = sbr.rel (!%p192_p4) target bundleno = 17 (0x11), region = 82 }
 0x18b   : >> { %v703_v45 = vpop.permute.xlu0 %702 }
 0x18c   : >> { %828 = vst.msk [vmem:[%s691_s19 + $0x2] sm:$0x3] %vm692_vm4, %v703_v45 }
 0x18d PF: > { %s13_s12 = sadd.s32 1, %s943_s12  }
 0x18e   : > { %p10_p5 = scmp.ge.s32.totalorder %s13_s12, 4  }
 0x190   :  { %12 = sbr.rel (!%p10_p5) target bundleno = 1 (0x1), region = 93 }

// kernel: image_decoder_forward.16
= control target key start
LH: loop header
LB: loop body
LE: loop exit
PB: predicated region body
PF: predicated region fallthrough
CT: control target
= control target key end

     0   :  { %s981_s12 = smov 0   ;;  %s1135_s0 = inlined_call_operand.vmem [shape: bf16[2,10,10,2], index: 0, kind: input, shape index: {}]   ;;  %s1136_s1 = inlined_call_operand.vmem [shape: bf16[9,2,4], index: 1, kind: input, shape index: {}]   ;;  %s1137_s2 = inlined_call_operand.vmem [shape: f32[1,4], index: 2, kind: input, shape index: {}]   ;;  %s1138_s3 = inlined_call_operand.vmem [shape: bf16[2,8,2,8,2], index: 3, kind: output, shape index: {}]  }
   0x1 LB: > { %s788_s13 = sadd.s32 4294967295, %s952_s12   ;;  %p792_p0 = scmp.ge.s32.totalorder %s952_s12, 1  ;;  %s952_s12 = sphi %s981_s12, %s13_s12  }
   0x2   : > { %p137_p1 = scmp.lt.s32.totalorder %s952_s12, 3 }
   0x4   : > { %p138_p2 = pnand %p792_p0, %p137_p1 }
   0x5   : > { %p161_p3 = scmp.lt.s32.totalorder (!%p138_p2), %s788_s13, 1  ;;  %v992_v0 = vld [vmem:[%s1136_s1] sm:$0x1] (!%p138_p2)  ;;  %v997_v1 = vld [vmem:[%s1136_s1 + $0x1] sm:$0x1] (!%p138_p2)  ;;  %s1049_s17 = smov (!%p138_p2), 0  }
   0x6   : > { %141 = sbr.rel (%p138_p2) target bundleno = 397 (0x18d), region = 32  ;;  %v1002_v2 = vld [vmem:[%s1136_s1 + $0x2] sm:$0x1] (!%p138_p2)  ;;  %v1007_v3 = vld [vmem:[%s1136_s1 + $0x3] sm:$0x1] (!%p138_p2) }
   0x7   : > { %v1012_v4 = vld [vmem:[%s1136_s1 + $0x4] sm:$0x1] (!%p138_p2)  ;;  %v1017_v5 = vld [vmem:[%s1136_s1 + $0x5] sm:$0x1] (!%p138_p2)  ;;  %v1022_v6 = vld [vmem:[%s1136_s1 + $0x6] sm:$0x1] (!%p138_p2) }
   0x8   : > { %v1027_v7 = vld [vmem:[%s1136_s1 + $0x7] sm:$0x1] (!%p138_p2)  ;;  %v1032_v8 = vld [vmem:[%s1136_s1 + $0x8] sm:$0x1] (!%p138_p2)  ;;  %v1037_v9 = vld [vmem:[%s1137_s2] ss:$0 sm:$0xff] (!%p138_p2) }
   0xd   : > { %s1140_s13 = smov (!%p161_p3, %s788_s13), 1 }
   0xe   : > { %s916_s7 = smul.u32 80, %s1140_s13  ;;  %s839_s8 = sshll.u32 %s1140_s13, 6 }
   0xf   : > { %s1042_s11 = scalar_lea.vmem %s1138_s3, %s839_s8 }
  0x10   : > { %s1047_s16 = scalar_lea.vmem %s1135_s0, %s916_s7 }
  0x11 LB: >> { %vm217_vm0 = vcmask 1040384   ;;  %v958_v10 = vmov 0.0   ;;  %s840_s13 = sshll.u32 %s956_s17, 3  ;;  %vm213_vm1 = vcmask 15360   ;;  %vm959_vm2 = vmmov 0   ;;  %s960_s20 = smov 126   ;;  %s956_s17 = sphi %s1049_s17, %s195_s17  }
  0x12   : >> { %862 = vmatprep.subr.bf16.mxu0 %v958_v10  ;;  %v219_v11 = vsel %vm217_vm0, %v997_v1, 0  ;;  %868 = vmatprep.subr.bf16.mxu1 %v958_v10  ;;  %v265_v12 = vsel %vm217_vm0, %v992_v0, 0  ;;  %s1068_s18 = scalar_lea.vmem %s1047_s16, %s840_s13  ;;  %v368_v13 = vsel %vm217_vm0, %v1007_v3, 0  ;;  %v316_v28 = vsel %vm217_vm0, %v1002_v2, 0  ;;  %s701_s19 = scalar_lea.vmem %s1042_s11, %s840_s13 }
  0x13   : >> { %863 = vmatpush3.bf16.msra.mxu0 %v219_v11  ;;  %869 = vmatpush3.bf16.msra.mxu1 %v265_v12  ;;  %v199_v14 = vld [vmem:[%s1068_s18] sm:$0xf]  ;;  %v200_v15 = vld [vmem:[%s1068_s18 + $0x4] sm:$0x1]  ;;  %v812_v20 = vld [vmem:[%s1068_s18 + $0x8] sm:$0xf] }
  0x14   : >> { %864 = vmatprep.mubr.msk.bf16.mxu0 %vm959_vm2, %v958_v10  ;;  %870 = vmatprep.mubr.msk.bf16.mxu1 %vm959_vm2, %v958_v10  ;;  %v806_v16 = vcombine.low %v199_v14, %v200_v15  ;;  %v307_v19 = vld [vmem:[%s1068_s18] sm:$0xe]  ;;  %v814_v22 = vld [vmem:[%s1068_s18 + $0x8] sm:$0xf]  ;;  %v815_v23 = vld [vmem:[%s1068_s18 + $0xc] sm:$0x1] }
  0x15   : >> { %874 = vmatprep.subr.bf16.mxu0 %v958_v10  ;;  %880 = vmatprep.subr.bf16.mxu1 %v958_v10  ;;  %v818_v24 = vld [vmem:[%s1068_s18 + $0x8] sm:$0xe]  ;;  %v824_v25 = vld [vmem:[%s1068_s18 + $0x10] sm:$0xf]  ;;  %v825_v26 = vld [vmem:[%s1068_s18 + $0x14] sm:$0x1]  ;;  %v809_v29 = vcombine.low %v307_v19, %v200_v15  ;;  %v816_v31 = vcombine.low %v814_v22, %v815_v23 }
  0x16   : >> { %871 = vmatmul.mubr.msk.bf16.vlgmr.msra.gmra.mrb[0].mxu1 %vm213_vm1, %v199_v14  ;;  %v207_v17 = vshrl.u32 %v806_v16, 16  ;;  %v209_v18 = vshll.u32 %v806_v16, 16  ;;  %v481_v30 = vsel %vm217_vm0, %v1017_v5, 0  ;;  %v819_v32 = vcombine.low %v818_v24, %v815_v23  ;;  %v822_v47 = vld [vmem:[%s1068_s18 + $0x10] sm:$0xf]  ;;  %s195_s17 = sadd.s32 1, %s956_s17  }
  0x17   : >> { %881 = vmatpush3.bf16.msra.mxu1 %v368_v13  ;;  %882 = vmatprep.mubr.msk.bf16.mxu1 %vm959_vm2, %v958_v10  ;;  %v826_v33 = vcombine.low %v824_v25, %v825_v26  ;;  %v311_v34 = vrot.slane %v809_v29, 1  ;;  %v421_v35 = vshll.u32 %v816_v31, 16  ;;  %v429_v38 = vsel %vm217_vm0, %v1012_v4, 0  ;;  %v828_v48 = vld [vmem:[%s1068_s18 + $0x10] sm:$0xe]  ;;  %p192_p4 = scmp.ge.s32.totalorder %s195_s17, 8  }
  0x18   : >> { %892 = vmatprep.subr.bf16.mxu1 %v958_v10  ;;  %v211_v21 = vrot.slane %v209_v18, 1  ;;  %v476_v36 = vrot.slane %v819_v32, 1  ;;  %v594_v39 = vsel %vm217_vm0, %v1027_v7, 0  ;;  %v419_v40 = vshrl.u32 %v816_v31, 16 }
  0x19   : >> { %v586_v37 = vshll.u32 %v826_v33, 16  ;;  %v423_v41 = vrot.slane %v421_v35, 1  ;;  %v584_v42 = vshrl.u32 %v826_v33, 16  ;;  %v533_v46 = vsel %vm217_vm0, %v1022_v6, 0 }
  0x1a   : >> { %v212_v27 = vor.u32 %v211_v21, %v207_v17  ;;  %v646_v49 = vsel %vm217_vm0, %v1032_v8, 0  ;;  %v829_v50 = vcombine.low %v828_v48, %v825_v26  ;;  %vm702_vm4 = vcmask 11264  }
  0x1b   : >> { %v588_v43 = vrot.slane %v586_v37, 1  ;;  %v424_v44 = vor.u32 %v423_v41, %v419_v40 }
  0x1c   : >> { %865 = vmatmul.mubr.msk.bf16.vlgmr.msra.gmra.mrb[0].mxu0 %vm213_vm1, %v212_v27  ;;  %v641_v51 = vrot.slane %v829_v50, 1 }
  0x1d   : >> { %875 = vmatpush3.bf16.msra.mxu0 %v316_v28  ;;  %876 = vmatprep.mubr.msk.bf16.mxu0 %vm959_vm2, %v958_v10  ;;  %v589_v45 = vor.u32 %v588_v43, %v584_v42 }
  0x1e   : >> { %883 = vmatmul.mubr.msk.bf16.vlgmr.msra.gmra.mrb[4].mxu1 %vm213_vm1, %v812_v20  ;;  %886 = vmatprep.subr.bf16.mxu0 %v958_v10 }
  0x1f   : >> { %893 = vmatpush3.bf16.msra.mxu1 %v481_v30  ;;  %894 = vmatprep.mubr.msk.bf16.mxu1 %vm959_vm2, %v958_v10 }
  0x20   : >> { %904 = vmatprep.subr.bf16.mxu1 %v958_v10 }
  0x24   : >> { %877 = vmatmul.mubr.msk.bf16.vlgmr.msra.gmra.mrb[4].mxu0 %vm213_vm1, %v311_v34 }
  0x25   : >> { %887 = vmatpush3.bf16.msra.mxu0 %v429_v38  ;;  %888 = vmatprep.mubr.msk.bf16.mxu0 %vm959_vm2, %v958_v10 }
  0x26   : >> { %895 = vmatmul.mubr.msk.bf16.vlgmr.msra.gmra.mrb[8].mxu1 %vm213_vm1, %v476_v36  ;;  %898 = vmatprep.subr.bf16.mxu0 %v958_v10 }
  0x27   : >> { %905 = vmatpush3.bf16.msra.mxu1 %v594_v39  ;;  %906 = vmatprep.mubr.msk.bf16.mxu1 %vm959_vm2, %v958_v10 }
  0x2c   : >> { %889 = vmatmul.mubr.msk.bf16.vlgmr.msra.gmra.mrb[8].mxu0 %vm213_vm1, %v424_v44 }
  0x2d   : >> { %899 = vmatpush3.bf16.msra.mxu0 %v533_v46  ;;  %900 = vmatprep.mubr.msk.bf16.mxu0 %vm959_vm2, %v958_v10 }
  0x2e   : >> { %907 = vmatmul.mubr.msk.bf16.vlgmr.msra.gmra.mrb[12].mxu1 %vm213_vm1, %v589_v45  ;;  %910 = vmatprep.subr.bf16.mxu0 %v958_v10 }
  0x34   : >> { %901 = vmatmul.mubr.msk.bf16.vlgmr.msra.gmra.mrb[12].mxu0 %vm213_vm1, %v822_v47 }
  0x35   : >> { %911 = vmatpush3.bf16.msra.mxu0 %v646_v49  ;;  %912 = vmatprep.mubr.msk.bf16.mxu0 %vm959_vm2, %v958_v10 }
  0x3c   : >> { %913 = vmatmul.mubr.msk.bf16.vlgmr.msra.gmra.mrb[16].mxu0 %vm213_vm1, %v641_v51 }
  0xe9   : >> { %v301_v52 = vpop.f32.mrb[0].mxu1 }
  0xea   : >> { %v872_v53 = vpop.f32.mrb[1].mxu1 }
  0xeb   : >> { %v304_v54 = vpop.f32.mrb[2].mxu1 }
  0xec   : >> { %v873_v55 = vpop.f32.mrb[3].mxu1 }
  0xef   : >> { %v255_v56 = vpop.f32.mrb[0].mxu0 }
  0xf0   : >> { %v302_v58 = vadd.f32 %v301_v52, %v255_v56  ;;  %v866_v59 = vpop.f32.mrb[1].mxu0 }
  0xf1   : >> { %v404_v57 = vpop.f32.mrb[4].mxu1  ;;  %v258_v61 = vpop.f32.mrb[2].mxu0 }
  0xf2   : >> { %v884_v60 = vpop.f32.mrb[5].mxu1  ;;  %v867_v63 = vpop.f32.mrb[3].mxu0 }
  0xf3   : >> { %v407_v62 = vpop.f32.mrb[6].mxu1 }
  0xf4   : >> { %v885_v11 = vpop.f32.mrb[7].mxu1 }
  0xf7   : >> { %v352_v12 = vpop.f32.mrb[4].mxu0 }
  0xf8   : >> { %v358_v14 = vadd.f32 %v352_v12, %v302_v58  ;;  %v878_v10 = vpop.f32.mrb[5].mxu0 }
  0xf9   : >> { %v517_v13 = vpop.f32.mrb[8].mxu1  ;;  %v355_v16 = vpop.f32.mrb[6].mxu0 }
  0xfa   : >> { %v896_v15 = vpop.f32.mrb[9].mxu1  ;;  %v410_v18 = vadd.f32 %v404_v57, %v358_v14  ;;  %v879_v19 = vpop.f32.mrb[7].mxu0 }
  0xfb   : >> { %v520_v17 = vpop.f32.mrb[10].mxu1 }
  0xfc   : >> { %v897_v20 = vpop.f32.mrb[11].mxu1 }
  0xff   : >> { %v465_v21 = vpop.f32.mrb[8].mxu0 }
 0x100   : >> { %v471_v23 = vadd.f32 %v465_v21, %v410_v18  ;;  %v890_v24 = vpop.f32.mrb[9].mxu0 }
 0x101   : >> { %v630_v22 = vpop.f32.mrb[12].mxu1  ;;  %v468_v26 = vpop.f32.mrb[10].mxu0 }
 0x102   : >> { %v908_v25 = vpop.f32.mrb[13].mxu1  ;;  %v523_v28 = vadd.f32 %v517_v13, %v471_v23  ;;  %v891_v29 = vpop.f32.mrb[11].mxu0 }
 0x103   : >> { %v633_v27 = vpop.f32.mrb[14].mxu1 }
 0x104   : >> { %v909_v30 = vpop.f32.mrb[15].mxu1 }
 0x107   : >> { %v569_v31 = vpop.f32.mrb[12].mxu0 }
 0x108   : >> { %v575_v32 = vadd.f32 %v569_v31, %v523_v28  ;;  %v902_v33 = vpop.f32.mrb[13].mxu0 }
 0x109   : >> { %v572_v34 = vpop.f32.mrb[14].mxu0 }
 0x10a   : >> { %v636_v35 = vadd.f32 %v630_v22, %v575_v32  ;;  %v903_v36 = vpop.f32.mrb[15].mxu0 }
 0x10f   : >> { %v682_v37 = vpop.f32.mrb[16].mxu0 }
 0x110   : >> { %v688_v38 = vadd.f32 %v682_v37, %v636_v35  ;;  %v914_v39 = vpop.f32.mrb[17].mxu0 }
 0x111   : >> { %v685_v40 = vpop.f32.mrb[18].mxu0 }
 0x112   : >> { %v695_v41 = vadd.f32 %v1037_v9, %v688_v38  ;;  %v915_v42 = vpop.f32.mrb[19].mxu0 }
 0x114   : >> { %v697_v43 = vmul.f32 0.01, %v695_v41  ;;  %vm696_vm3 = vcmp.ge.f32.partialorder %v695_v41, 0.0 }
 0x116   : >> { %v698_v44 = vsel %vm696_vm3, %v695_v41, %v697_v43 }
 0x117   : >> { %v699_v45 = vpack.c.bf16 %v698_v44, %v698_v44 }
 0x119   : >> { %707 = vrot.lane.b32.xlu0 %v699_v45, %s960_s20  ;;  %703 = vst.msk [vmem:[%s701_s19] sm:$0xf] %vm702_vm4, %v699_v45 }
 0x186   : > { %194 = sbr.rel (!%p192_p4) target bundleno = 17 (0x11), region = 82 }
 0x18b   : >> { %v708_v46 = vpop.permute.xlu0 %707 }
 0x18c   : >> { %836 = vst.msk [vmem:[%s701_s19 + $0x4] sm:$0xf] %vm702_vm4, %v708_v46 }
 0x18d PF: > { %s13_s12 = sadd.s32 1, %s952_s12  }
 0x18e   : > { %p10_p5 = scmp.ge.s32.totalorder %s13_s12, 4  }
 0x190   :  { %12 = sbr.rel (!%p10_p5) target bundleno = 1 (0x1), region = 93 }

// kernel: image_decoder_forward.17
= control target key start
LH: loop header
LB: loop body
LE: loop exit
PB: predicated region body
PF: predicated region fallthrough
CT: control target
= control target key end

     0   :  { %s1053_s12 = smov 0   ;;  %s1216_s0 = inlined_call_operand.vmem [shape: bf16[2,18,18,1], index: 0, kind: input, shape index: {}]   ;;  %s1217_s1 = inlined_call_operand.vmem [shape: bf16[9,1,3], index: 1, kind: input, shape index: {}]   ;;  %s1218_s2 = inlined_call_operand.vmem [shape: f32[1,3], index: 2, kind: input, shape index: {}]   ;;  %s1219_s3 = inlined_call_operand.vmem [shape: f32[2,16,16,3], index: 3, kind: output, shape index: {}]  }
   0x1 LB: > { %s848_s13 = sadd.s32 4294967295, %s1024_s12   ;;  %p852_p0 = scmp.ge.s32.totalorder %s1024_s12, 1  ;;  %s1024_s12 = sphi %s1053_s12, %s13_s12  }
   0x2   : > { %p137_p1 = scmp.lt.s32.totalorder %s1024_s12, 3 }
   0x4   : > { %p138_p2 = pnand %p852_p0, %p137_p1 }
   0x5   : > { %p161_p3 = scmp.lt.s32.totalorder (!%p138_p2), %s848_s13, 1  ;;  %v1064_v0 = vld [vmem:[%s1217_s1] sm:$0x1] (!%p138_p2)  ;;  %v1069_v1 = vld [vmem:[%s1217_s1 + $0x1] sm:$0x1] (!%p138_p2)  ;;  %s1121_s17 = smov (!%p138_p2), 0  }
   0x6   : > { %141 = sbr.rel (%p138_p2) target bundleno = 309 (0x135), region = 32  ;;  %v1074_v2 = vld [vmem:[%s1217_s1 + $0x2] sm:$0x1] (!%p138_p2)  ;;  %v1079_v3 = vld [vmem:[%s1217_s1 + $0x3] sm:$0x1] (!%p138_p2) }
   0x7   : > { %v1084_v4 = vld [vmem:[%s1217_s1 + $0x4] sm:$0x1] (!%p138_p2)  ;;  %v1089_v5 = vld [vmem:[%s1217_s1 + $0x5] sm:$0x1] (!%p138_p2)  ;;  %v1094_v6 = vld [vmem:[%s1217_s1 + $0x6] sm:$0x1] (!%p138_p2) }
   0x8   : > { %v1099_v7 = vld [vmem:[%s1217_s1 + $0x7] sm:$0x1] (!%p138_p2)  ;;  %v1104_v8 = vld [vmem:[%s1217_s1 + $0x8] sm:$0x1] (!%p138_p2)  ;;  %v1109_v9 = vld [vmem:[%s1218_s2] ss:$0 sm:$0xff] (!%p138_p2) }
   0xd   : > { %s1221_s13 = smov (!%p161_p3, %s848_s13), 1 }
   0xe   : > { %s975_s7 = smul.u32 216, %s1221_s13  ;;  %s901_s8 = sshll.u32 %s1221_s13, 8 }
   0xf   : > { %s1114_s11 = scalar_lea.vmem %s1219_s3, %s901_s8 }
  0x10   : > { %s1119_s16 = scalar_lea.vmem %s1216_s0, %s975_s7 }
  0x11 LB: >> { %vm227_vm0 = vcmask 1040384   ;;  %v1030_v10 = vmov 0.0   ;;  %v1031_v11 = vmov 0   ;;  %vm1032_vm1 = vmmov 0   ;;  %s902_s13 = smul.u32 12, %s1028_s17  ;;  %s898_s19 = sshll.u32 %s1028_s17, 4  ;;  %s1028_s17 = sphi %s1121_s17, %s195_s17  }
  0x12   : >> { %921 = vmatprep.subr.bf16.mxu0 %v1030_v10  ;;  %v1127_v12 = vsel %vm227_vm0, 65535, %v1031_v11  ;;  %927 = vmatprep.subr.bf16.mxu1 %v1030_v10  ;;  %vm223_vm2 = vcmask 7168   ;;  %vm210_vm3 = vsmask.f32 7424  ;;  %vm324_vm4 = vcmask 1046528   ;;  %s774_s20 = scalar_lea.vmem %s1114_s11, %s898_s19  ;;  %s195_s17 = sadd.s32 1, %s1028_s17  }
  0x13   : >> { %v231_v13 = vand.u32 %v1069_v1, %v1127_v12  ;;  %v277_v14 = vand.u32 %v1127_v12, %v1064_v0  ;;  %923 = vmatprep.mubr.msk.bf16.mxu0 %vm1032_vm1, %v1030_v10  ;;  %929 = vmatprep.mubr.msk.bf16.mxu1 %vm1032_vm1, %v1030_v10  ;;  %s1140_s18 = scalar_lea.vmem %s1119_s16, %s902_s13  ;;  %v392_v17 = vand.u32 %v1079_v3, %v1127_v12  ;;  %vm775_vm5 = vcmask 23552   ;;  %p192_p4 = scmp.ge.s32.totalorder %s195_s17, 16  }
  0x14   : >> { %v199_v15 = vld [vmem:[%s1140_s18] sm:$0xf]  ;;  %v200_v16 = vld [vmem:[%s1140_s18 + $0x4] sm:$0xf]  ;;  %v875_v24 = vld [vmem:[%s1140_s18 + $0xc] sm:$0xf]  ;;  %v332_v30 = vand.u32 %v1074_v2, %v1127_v12  ;;  %v520_v37 = vand.u32 %v1089_v5, %v1127_v12  ;;  %v464_v48 = vand.u32 %v1084_v4, %v1127_v12  ;;  %v652_v53 = vand.u32 %v1099_v7, %v1127_v12 }
  0x15   : >> { %922 = vmatpush3.bf16.msra.mxu0 %v231_v13  ;;  %928 = vmatpush3.bf16.msra.mxu1 %v277_v14  ;;  %v865_v18 = vcombine.low %v199_v15, %v200_v16  ;;  %v996_v19 = vld [vmem:[%s1140_s18 + $0x8] ss:$0 sps:$4 sm:$0x11]   ;;  %v320_v23 = vld [vmem:[%s1140_s18] sm:$0xe]  ;;  %v998_v35 = vld [vmem:[%s1140_s18 + $0xc] sm:$0xff]   ;;  %v580_v63 = vand.u32 %v1094_v6, %v1127_v12  ;;  %v708_v15 = vand.u32 %v1104_v8, %v1127_v12 }
  0x16   : >> { %933 = vmatprep.subr.bf16.mxu0 %v1030_v10  ;;  %939 = vmatprep.subr.bf16.mxu1 %v1030_v10  ;;  %v219_v22 = vshll.u32 %v996_v19, 16  ;;  %v876_v25 = vld [vmem:[%s1140_s18 + $0x10] sm:$0xf]  ;;  %v881_v28 = vld [vmem:[%s1140_s18 + $0xc] sm:$0xe]  ;;  %v869_v31 = vcombine.low %v320_v23, %v200_v16  ;;  %v326_v41 = vrot.slane %v996_v19, 1 }
  0x17   : >> { %v212_v20 = vshrl.u32 %v865_v18, 16  ;;  %v214_v21 = vshll.u32 %v865_v18, 16  ;;  %v878_v32 = vcombine.low %v875_v24, %v876_v25  ;;  %v888_v33 = vld [vmem:[%s1140_s18 + $0x18] sm:$0xf]  ;;  %v889_v34 = vld [vmem:[%s1140_s18 + $0x1c] sm:$0xf]  ;;  %v882_v38 = vcombine.low %v881_v28, %v876_v25 }
  0x18   : >> { %930 = vmatmul.mubr.msk.bf16.vlgmr.msra.gmra.mrb[0].mxu1 %vm223_vm2, %v865_v18  ;;  %v221_v27 = vrot.slane %v219_v22, 1  ;;  %v891_v39 = vcombine.low %v888_v33, %v889_v34  ;;  %v325_v40 = vrot.slane %v869_v31, 1  ;;  %v1000_v42 = vld [vmem:[%s1140_s18 + $0x14] ss:$0 sps:$4 sm:$0x11]   ;;  %v1002_v14 = vld [vmem:[%s1140_s18 + $0x18] sm:$0xff]  }
  0x19   : >> { %940 = vmatpush3.bf16.msra.mxu1 %v392_v17  ;;  %941 = vmatprep.mubr.msk.bf16.mxu1 %vm1032_vm1, %v1030_v10  ;;  %v216_v26 = vrot.slane %v214_v21, 1  ;;  %v451_v43 = vshll.u32 %v878_v32, 16  ;;  %v513_v44 = vrot.slane %v882_v38, 1  ;;  %v514_v45 = vrot.slane %v1000_v42, 1  ;;  %v894_v13 = vld [vmem:[%s1140_s18 + $0x18] sm:$0xe] }
  0x1a   : >> { %951 = vmatprep.subr.bf16.mxu1 %v1030_v10  ;;  %v1004_v46 = vld [vmem:[%s1140_s18 + $0x20] ss:$0 sps:$4 sm:$0x11]   ;;  %v639_v47 = vshll.u32 %v891_v39, 16  ;;  %v327_v49 = vsel %vm324_vm4, %v325_v40, %v326_v41  ;;  %v449_v50 = vshrl.u32 %v878_v32, 16  ;;  %v456_v52 = vshll.u32 %v1000_v42, 16 }
  0x1b   : >> { %v217_v29 = vor.u32 %v216_v26, %v212_v20  ;;  %v453_v51 = vrot.slane %v451_v43, 1  ;;  %v515_v54 = vsel %vm324_vm4, %v513_v44, %v514_v45  ;;  %v637_v55 = vshrl.u32 %v891_v39, 16 }
  0x1c   : >> { %v641_v56 = vrot.slane %v639_v47, 1  ;;  %v644_v57 = vshll.u32 %v1004_v46, 16  ;;  %v458_v59 = vrot.slane %v456_v52, 1  ;;  %v895_v16 = vcombine.low %v894_v13, %v889_v34 }
  0x1d   : >> { %v222_v36 = vsel %vm210_vm3, %v217_v29, %v221_v27  ;;  %v454_v58 = vor.u32 %v453_v51, %v449_v50  ;;  %v702_v18 = vrot.slane %v1004_v46, 1 }
  0x1e   : >> { %924 = vmatmul.mubr.msk.bf16.vlgmr.msra.gmra.mrb[0].mxu0 %vm223_vm2, %v222_v36  ;;  %v642_v60 = vor.u32 %v641_v56, %v637_v55  ;;  %v646_v61 = vrot.slane %v644_v57, 1  ;;  %v701_v17 = vrot.slane %v895_v16, 1 }
  0x1f   : >> { %934 = vmatpush3.bf16.msra.mxu0 %v332_v30  ;;  %935 = vmatprep.mubr.msk.bf16.mxu0 %vm1032_vm1, %v1030_v10  ;;  %v459_v62 = vsel %vm210_vm3, %v454_v58, %v458_v59 }
  0x20   : >> { %945 = vmatprep.subr.bf16.mxu0 %v1030_v10  ;;  %942 = vmatmul.mubr.msk.bf16.vlgmr.msra.gmra.mrb[4].mxu1 %vm223_vm2, %v998_v35  ;;  %v647_v11 = vsel %vm210_vm3, %v642_v60, %v646_v61  ;;  %v703_v19 = vsel %vm324_vm4, %v701_v17, %v702_v18 }
  0x21   : >> { %952 = vmatpush3.bf16.msra.mxu1 %v520_v37  ;;  %953 = vmatprep.mubr.msk.bf16.mxu1 %vm1032_vm1, %v1030_v10 }
  0x22   : >> { %963 = vmatprep.subr.bf16.mxu1 %v1030_v10 }
  0x26   : >> { %936 = vmatmul.mubr.msk.bf16.vlgmr.msra.gmra.mrb[4].mxu0 %vm223_vm2, %v327_v49 }
  0x27   : >> { %946 = vmatpush3.bf16.msra.mxu0 %v464_v48  ;;  %947 = vmatprep.mubr.msk.bf16.mxu0 %vm1032_vm1, %v1030_v10 }
  0x28   : >> { %957 = vmatprep.subr.bf16.mxu0 %v1030_v10  ;;  %954 = vmatmul.mubr.msk.bf16.vlgmr.msra.gmra.mrb[8].mxu1 %vm223_vm2, %v515_v54 }
  0x29   : >> { %964 = vmatpush3.bf16.msra.mxu1 %v652_v53  ;;  %965 = vmatprep.mubr.msk.bf16.mxu1 %vm1032_vm1, %v1030_v10 }
  0x2e   : >> { %948 = vmatmul.mubr.msk.bf16.vlgmr.msra.gmra.mrb[8].mxu0 %vm223_vm2, %v459_v62 }
  0x2f   : >> { %958 = vmatpush3.bf16.msra.mxu0 %v580_v63  ;;  %959 = vmatprep.mubr.msk.bf16.mxu0 %vm1032_vm1, %v1030_v10 }
  0x30   : >> { %969 = vmatprep.subr.bf16.mxu0 %v1030_v10  ;;  %966 = vmatmul.mubr.msk.bf16.vlgmr.msra.gmra.mrb[12].mxu1 %vm223_vm2, %v647_v11 }
  0x36   : >> { %960 = vmatmul.mubr.msk.bf16.vlgmr.msra.gmra.mrb[12].mxu0 %vm223_vm2, %v1002_v14 }
  0x37   : >> { %970 = vmatpush3.bf16.msra.mxu0 %v708_v15  ;;  %971 = vmatprep.mubr.msk.bf16.mxu0 %vm1032_vm1, %v1030_v10 }
  0x3e   : >> { %972 = vmatmul.mubr.msk.bf16.vlgmr.msra.gmra.mrb[16].mxu0 %vm223_vm2, %v703_v19 }
  0xeb   : >> { %v313_v20 = vpop.f32.mrb[0].mxu1 }
  0xec   : >> { %v931_v21 = vpop.f32.mrb[1].mxu1 }
  0xed   : >> { %v316_v22 = vpop.f32.mrb[2].mxu1 }
  0xee   : >> { %v932_v23 = vpop.f32.mrb[3].mxu1 }
  0xf1   : >> { %v267_v24 = vpop.f32.mrb[0].mxu0 }
  0xf2   : >> { %v314_v25 = vadd.f32 %v313_v20, %v267_v24  ;;  %v925_v12 = vpop.f32.mrb[1].mxu0 }
  0xf3   : >> { %v270_v26 = vpop.f32.mrb[2].mxu0  ;;  %v428_v27 = vpop.f32.mrb[4].mxu1 }
  0xf4   : >> { %v317_v28 = vadd.f32 %v316_v22, %v270_v26  ;;  %v926_v29 = vpop.f32.mrb[3].mxu0  ;;  %v943_v30 = vpop.f32.mrb[5].mxu1 }
  0xf5   : >> { %v431_v31 = vpop.f32.mrb[6].mxu1 }
  0xf6   : >> { %v944_v10 = vpop.f32.mrb[7].mxu1 }
  0xf9   : >> { %v368_v32 = vpop.f32.mrb[4].mxu0 }
  0xfa   : >> { %v375_v33 = vadd.f32 %v368_v32, %v314_v25  ;;  %v937_v34 = vpop.f32.mrb[5].mxu0 }
  0xfb   : >> { %v371_v35 = vpop.f32.mrb[6].mxu0  ;;  %v556_v36 = vpop.f32.mrb[8].mxu1 }
  0xfc   : >> { %v376_v37 = vadd.f32 %v371_v35, %v317_v28  ;;  %v435_v38 = vadd.f32 %v428_v27, %v375_v33  ;;  %v938_v39 = vpop.f32.mrb[7].mxu0  ;;  %v955_v40 = vpop.f32.mrb[9].mxu1 }
  0xfd   : >> { %v559_v41 = vpop.f32.mrb[10].mxu1 }
  0xfe   : >> { %v436_v42 = vadd.f32 %v431_v31, %v376_v37  ;;  %v956_v43 = vpop.f32.mrb[11].mxu1 }
 0x101   : >> { %v500_v44 = vpop.f32.mrb[8].mxu0 }
 0x102   : >> { %v507_v45 = vadd.f32 %v500_v44, %v435_v38  ;;  %v949_v46 = vpop.f32.mrb[9].mxu0 }
 0x103   : >> { %v503_v47 = vpop.f32.mrb[10].mxu0  ;;  %v688_v48 = vpop.f32.mrb[12].mxu1 }
 0x104   : >> { %v508_v49 = vadd.f32 %v503_v47, %v436_v42  ;;  %v563_v50 = vadd.f32 %v556_v36, %v507_v45  ;;  %v950_v51 = vpop.f32.mrb[11].mxu0  ;;  %v967_v52 = vpop.f32.mrb[13].mxu1 }
 0x105   : >> { %v691_v53 = vpop.f32.mrb[14].mxu1 }
 0x106   : >> { %v564_v54 = vadd.f32 %v559_v41, %v508_v49  ;;  %v968_v55 = vpop.f32.mrb[15].mxu1 }
 0x109   : >> { %v616_v56 = vpop.f32.mrb[12].mxu0 }
 0x10a   : >> { %v623_v57 = vadd.f32 %v616_v56, %v563_v50  ;;  %v961_v58 = vpop.f32.mrb[13].mxu0 }
 0x10b   : >> { %v619_v59 = vpop.f32.mrb[14].mxu0 }
 0x10c   : >> { %v624_v60 = vadd.f32 %v619_v59, %v564_v54  ;;  %v695_v61 = vadd.f32 %v688_v48, %v623_v57  ;;  %v962_v62 = vpop.f32.mrb[15].mxu0 }
 0x10e   : >> { %v696_v63 = vadd.f32 %v691_v53, %v624_v60 }
 0x111   : >> { %v744_v11 = vpop.f32.mrb[16].mxu0 }
 0x112   : >> { %v751_v13 = vadd.f32 %v744_v11, %v695_v61  ;;  %v973_v14 = vpop.f32.mrb[17].mxu0 }
 0x113   : >> { %v747_v15 = vpop.f32.mrb[18].mxu0 }
 0x114   : >> { %v759_v16 = vadd.f32 %v1109_v9, %v751_v13  ;;  %v752_v17 = vadd.f32 %v747_v15, %v696_v63  ;;  %v974_v18 = vpop.f32.mrb[19].mxu0 }
 0x116   : >> { %v761_v19 = vsub.f32 0.0, %v759_v16  ;;  %v760_v20 = vadd.f32 %v1109_v9, %v752_v17 }
 0x118   : >> { %v763_v21 = vmul.f32 1.442695, %v761_v19  ;;  %v762_v22 = vsub.f32 0.0, %v760_v20 }
 0x11a   : >> { %1006 = vpow2.f32 %v763_v21  ;;  %v765_v23 = vmul.f32 1.442695, %v762_v22 }
 0x11c   : >> { %1008 = vpow2.f32 %v765_v23 }
 0x124   : >> { %v1007_v24 = vpop.eup %1006 }
 0x125   : >> { %v767_v25 = vadd.f32 1.0, %v1007_v24 }
 0x126   : >> { %v1009_v12 = vpop.eup %1008 }
 0x127   : >> { %1010 = vrcp.f32 %v767_v25  ;;  %v768_v26 = vadd.f32 1.0, %v1009_v12 }
 0x129   : >> { %1012 = vrcp.f32 %v768_v26 }
 0x12e   : > { %194 = sbr.rel (!%p192_p4) target bundleno = 17 (0x11), region = 81 }
 0x131   : >> { %v1011_v27 = vpop.eup %1010 }
 0x132   : >> { %776 = vst.msk [vmem:[%s774_s20] sm:$0xff] %vm775_vm5, %v1011_v27 }
 0x133   : >> { %v1013_v28 = vpop.eup %1012 }
 0x134   : >> { %777 = vst.msk [vmem:[%s774_s20 + $0x8] sm:$0xff] %vm775_vm5, %v1013_v28 }
 0x135 PF: > { %s13_s12 = sadd.s32 1, %s1024_s12  }
 0x136   : > { %p10_p5 = scmp.ge.s32.totalorder %s13_s12, 4  }
 0x138   :  { %12 = sbr.rel (!%p10_p5) target bundleno = 1 (0x1), region = 92 }

</bundles_post_ra>
